<compile_context>
chip_gen: v7x
topology: tpu7x:2x2x1
jax: 0.10.0
libtpu: 0.0.40
codegen_flags: <defaults>
</compile_context>

<pallas_src>
import jax
import jax.numpy as jnp
from jax.experimental import pallas as pl
from jax.experimental.pallas import tpu as pltpu

LANE = 128
SCRATCH_LPAD = 8          # left zero-pad (sublane aligned) for the h halo scratch


def _round_up(x, m):
    return (x + m - 1) // m * m


def _elu(x):
    # ELU(alpha=1): x if x > 0 else exp(x) - 1   (f32; exp goes to the EUP)
    return jnp.where(x > 0, x, jnp.exp(jnp.minimum(x, 0.0)) - 1.0)


# ---------------- fused Pallas kernel (hot path) ----------------

def resnet_block_kernel(xh_ref, w1_ref, b1_ref, w2_ref, b2_ref,
                        wn_ref, bn_ref, o_ref, h_scr):
    """conv1+BN1+ELU -> conv2+BN2 ; shortcut(+BN3) ; add ; ELU, one image."""
    _, hp2, wp2, cin = xh_ref.shape          # (1, H+2, W+2, Cin_p)
    hh = hp2 - 2
    ww = wp2 - 2
    cout = o_ref.shape[-1]

    xt = xh_ref[0]                           # (H+2, W+2, Cin_p) bf16 halo tile

    # ---- conv1 (9 shifted MXU matmuls) + folded BN1 bias + ELU ----
    acc1 = jnp.zeros((hh * ww, cout), jnp.float32)
    for dy in range(3):
        for dx in range(3):
            xs = xt[dy:dy + hh, dx:dx + ww, :].reshape(hh * ww, cin)
            acc1 += jnp.dot(xs, w1_ref[dy, dx],
                            preferred_element_type=jnp.float32)
    h1 = _elu(acc1 + b1_ref[...])            # (H*W, Cout_p) f32; dropout1 = id

    # ---- stage h with a zero halo in VMEM (aligned, unmasked store) ----
    h_scr[...] = jnp.zeros_like(h_scr)       # borders stay zero
    h_scr[1:hh + 1, SCRATCH_LPAD:SCRATCH_LPAD + ww, :] = h1.reshape(hh, ww, cout)
    ht = h_scr[...].astype(jnp.bfloat16)     # (H+2, W+pad, Cout_p)

    # ---- conv2 (9 shifted MXU matmuls) + folded BN2 bias ----
    acc2 = jnp.zeros((hh * ww, cout), jnp.float32)
    for dy in range(3):
        for dx in range(3):
            c0 = SCRATCH_LPAD - 1 + dx
            hs = ht[dy:dy + hh, c0:c0 + ww, :].reshape(hh * ww, cout)
            acc2 += jnp.dot(hs, w2_ref[dy, dx],
                            preferred_element_type=jnp.float32)
    acc2 = acc2 + b2_ref[...]

    # ---- shortcut (nin 1x1 conv or scaled identity) + folded BN3 ----
    xc = xt[1:hh + 1, 1:ww + 1, :].reshape(hh * ww, cin)
    sc = jnp.dot(xc, wn_ref[...], preferred_element_type=jnp.float32) + bn_ref[...]

    # ---- residual add + ELU (dropout2 = identity, eval mode) ----
    out = _elu(sc + acc2)
    o_ref[...] = out.reshape(1, hh, ww, cout).astype(o_ref.dtype)


# ---------------- pallas_call plumbing ----------------

def _resident_spec(shape):
    nd = len(shape)
    return pl.BlockSpec(shape, lambda i: (0,) * nd)


def _fused_call(xh, w1, b1, w2, b2, wn, bn, h, w, cout_p):
    n = xh.shape[0]
    cin_p = xh.shape[-1]
    rows = n * h * w
    cost = pl.CostEstimate(
        flops=2 * rows * cout_p * (9 * cin_p + 9 * cout_p + cin_p),
        transcendentals=2 * rows * cout_p,
        bytes_accessed=(xh.size * 2 + (w1.size + w2.size + wn.size) * 2
                        + (b1.size + b2.size + bn.size) * 4
                        + rows * cout_p * 4),
    )
    scratch_w = w + 2 * SCRATCH_LPAD         # left pad 8 (aligned) + right zeros
    return pl.pallas_call(
        resnet_block_kernel,
        out_shape=jax.ShapeDtypeStruct((n, h, w, cout_p), jnp.float32),
        grid=(n,),
        in_specs=[
            pl.BlockSpec((1, h + 2, w + 2, cin_p), lambda i: (i, 0, 0, 0)),
            _resident_spec(w1.shape),
            _resident_spec(b1.shape),
            _resident_spec(w2.shape),
            _resident_spec(b2.shape),
            _resident_spec(wn.shape),
            _resident_spec(bn.shape),
        ],
        out_specs=pl.BlockSpec((1, h, w, cout_p), lambda i: (i, 0, 0, 0)),
        scratch_shapes=[pltpu.VMEM((h + 2, scratch_w, cout_p), jnp.float32)],
        compiler_params=pltpu.CompilerParams(
            dimension_semantics=("parallel",),
            vmem_limit_bytes=32 * 1024 * 1024,
        ),
        cost_estimate=cost,
    )(xh, w1, b1, w2, b2, wn, bn)


# ---------------- plain-JAX glue (layout / BN folding only) ----------------

def _bn_affine(p, eps=1e-5):
    scale = p['gamma'] / jnp.sqrt(p['var'] + eps)
    shift = p['beta'] - p['mean'] * scale
    return scale, shift


def _taps_from_oihw(w_oihw):
    # (Cout, Cin, kH, kW) -> (kH, kW, Cin, Cout)
    return jnp.transpose(w_oihw, (2, 3, 1, 0))


def _pad_last(a, c):
    return jnp.pad(a, [(0, 0)] * (a.ndim - 1) + [(0, c - a.shape[-1])])


def _pad_last2(a, r, c):
    return jnp.pad(a, [(0, 0)] * (a.ndim - 2)
                   + [(0, r - a.shape[-2]), (0, c - a.shape[-1])])


def resnet_block_forward(x_nchw, params):
    x = jnp.transpose(x_nchw, (0, 2, 3, 1)).astype(jnp.float32)   # NCHW -> NHWC
    n, h, w, cin = x.shape
    cout = params['conv1_b'].shape[0]
    cin_p = _round_up(cin, LANE)
    cout_p = _round_up(cout, LANE)

    s1, t1 = _bn_affine(params['norm1'])
    s2, t2 = _bn_affine(params['norm2'])
    s3, t3 = _bn_affine(params['norm3'])

    # conv1 with norm1 folded in
    w1 = _taps_from_oihw(params['conv1_w']) * s1                  # (3,3,Cin,Cout)
    w1 = _pad_last2(w1, cin_p, cout_p).astype(jnp.bfloat16)
    b1 = _pad_last(params['conv1_b'] * s1 + t1, cout_p).reshape(1, cout_p)

    # conv2 with norm2 folded in
    w2 = _taps_from_oihw(params['conv2_w']) * s2                  # (3,3,Cout,Cout)
    w2 = _pad_last2(w2, cout_p, cout_p).astype(jnp.bfloat16)
    b2 = _pad_last(params['conv2_b'] * s2 + t2, cout_p).reshape(1, cout_p)

    # shortcut path with norm3 folded in (nin 1x1 conv when Cin != Cout,
    # otherwise identity, matching the reference module's default shortcut)
    if cin != cout:
        wn = params['nin_w'][:, :, 0, 0].T * s3                   # (Cin, Cout)
        bn = params['nin_b'] * s3 + t3
    else:
        wn = jnp.eye(cin, dtype=jnp.float32) * s3
        bn = t3
    wn = _pad_last2(wn, cin_p, cout_p).astype(jnp.bfloat16)
    bn = _pad_last(bn, cout_p).reshape(1, cout_p)

    # Input: 1-pixel spatial halo, channels zero-padded to lane multiple, bf16.
    xh = jnp.pad(x, ((0, 0), (1, 1), (1, 1), (0, cin_p - cin))).astype(jnp.bfloat16)

    out = _fused_call(xh, w1, b1, w2, b2, wn, bn, h, w, cout_p)   # (N,H,W,Cout_p)
    out = out[:, :, :, :cout]
    return jnp.transpose(out, (0, 3, 1, 2))                       # back to NCHW


# ---------------- pure-JAX reference (eval-mode module semantics) ----------------

def reference_forward(x, params, eps=1e-5):
    def conv(z, wgt, bias, pad):
        y = jax.lax.conv_general_dilated(
            z, wgt, window_strides=(1, 1), padding=[(pad, pad), (pad, pad)],
            dimension_numbers=('NCHW', 'OIHW', 'NCHW'))
        return y + bias[None, :, None, None]

    def bn(z, p):
        s = p['gamma'] / jnp.sqrt(p['var'] + eps)
        t = p['beta'] - p['mean'] * s
        return z * s[None, :, None, None] + t[None, :, None, None]

    h = conv(x, params['conv1_w'], params['conv1_b'], 1)
    h = _elu(bn(h, params['norm1']))
    h = conv(h, params['conv2_w'], params['conv2_b'], 1)
    h = bn(h, params['norm2'])
    cin, cout = x.shape[1], params['conv1_b'].shape[0]
    if cin != cout:
        x = conv(x, params['nin_w'], params['nin_b'], 0)
    return _elu(bn(x, params['norm3']) + h)


# ---------------- deterministic parameter init ----------------

def init_params(key, cin, cout, k=3):
    keys = jax.random.split(key, 18)

    def conv_w(kk, co, ci, ks):
        bound = 1.0 / jnp.sqrt(ci * ks * ks)
        return jax.random.uniform(kk, (co, ci, ks, ks), jnp.float32, -bound, bound)

    def conv_b(kk, co, ci, ks):
        bound = 1.0 / jnp.sqrt(ci * ks * ks)
        return jax.random.uniform(kk, (co,), jnp.float32, -bound, bound)

    params = {
        'conv1_w': conv_w(keys[0], cout, cin, k),
        'conv1_b': conv_b(keys[1], cout, cin, k),
        'conv2_w': conv_w(keys[2], cout, cout, k),
        'conv2_b': conv_b(keys[3], cout, cout, k),
        'nin_w':   conv_w(keys[4], cout, cin, 1),
        'nin_b':   conv_b(keys[5], cout, cin, 1),
    }
    for i, name in enumerate(['norm1', 'norm2', 'norm3']):
        kg, kb, km, kv = keys[6 + 4 * i: 10 + 4 * i]
        params[name] = {
            'gamma': 1.0 + 0.1 * jax.random.normal(kg, (cout,), jnp.float32),
            'beta':        0.1 * jax.random.normal(kb, (cout,), jnp.float32),
            'mean':        0.05 * jax.random.normal(km, (cout,), jnp.float32),
            'var':   1.0 + 0.1 * jnp.abs(jax.random.normal(kv, (cout,), jnp.float32)),
        }
    return params


if __name__ == "__main__":
    key = jax.random.PRNGKey(0)
    kx, kp = jax.random.split(key)

    N, Cin, H, W = 2, 4, 16, 16
    Cout = 8                                  # in != out -> nin_shortcut path

    x = jax.random.normal(kx, (N, Cin, H, W), jnp.float32)
    params = init_params(kp, Cin, Cout)

    fwd = jax.jit(lambda xx: resnet_block_forward(xx, params))
    y = fwd(x)
    jax.block_until_ready(y)
    assert y.shape == (N, Cout, H, W)
    assert bool(jnp.all(jnp.isfinite(y)))

    # Loose tolerance: kernel runs MXU operands in bf16, reference is f32.
    y_ref = jax.jit(lambda xx: reference_forward(xx, params))(x)
    max_err = float(jnp.max(jnp.abs(y - y_ref)))
    assert jnp.allclose(y, y_ref, atol=5e-2, rtol=5e-2), max_err

    print("KERNEL_OK")
</pallas_src>

<mosaic_0001>
module attributes {stable_mosaic.version = 11 : i64} {
  func.func @resnet_block_kernel(%arg0: i32, %arg1: memref<1x18x18x128xbf16, #tpu.memory_space<vmem>>, %arg2: memref<3x3x128x128xbf16, #tpu.memory_space<vmem>>, %arg3: memref<1x128xf32, #tpu.memory_space<vmem>>, %arg4: memref<3x3x128x128xbf16, #tpu.memory_space<vmem>>, %arg5: memref<1x128xf32, #tpu.memory_space<vmem>>, %arg6: memref<128x128xbf16, #tpu.memory_space<vmem>>, %arg7: memref<1x128xf32, #tpu.memory_space<vmem>>, %arg8: memref<1x16x16x128xf32, #tpu.memory_space<vmem>>, %arg9: memref<18x32x128xf32, #tpu.memory_space<vmem>>) attributes {dimension_semantics = [#tpu.dimension_semantics<parallel>], iteration_bounds = array<i64: 2>, scalar_prefetch = 0 : i64, scratch_operands = 1 : i64, tpu.core_type = #tpu.core_type<tc>, window_params = [{transform_indices = @transform_0, window_bounds = array<i64: 1, 18, 18, 128>}, {pipeline_mode = #tpu.pipeline_mode<synchronous>, transform_indices = @transform_1, window_bounds = array<i64: 3, 3, 128, 128>}, {pipeline_mode = #tpu.pipeline_mode<synchronous>, transform_indices = @transform_2, window_bounds = array<i64: 1, 128>}, {pipeline_mode = #tpu.pipeline_mode<synchronous>, transform_indices = @transform_3, window_bounds = array<i64: 3, 3, 128, 128>}, {pipeline_mode = #tpu.pipeline_mode<synchronous>, transform_indices = @transform_4, window_bounds = array<i64: 1, 128>}, {pipeline_mode = #tpu.pipeline_mode<synchronous>, transform_indices = @transform_5, window_bounds = array<i64: 128, 128>}, {pipeline_mode = #tpu.pipeline_mode<synchronous>, transform_indices = @transform_6, window_bounds = array<i64: 1, 128>}, {transform_indices = @transform_7, window_bounds = array<i64: 1, 16, 16, 128>}]} {
    %c0 = arith.constant 0 : index
    %c0_0 = arith.constant 0 : index
    %c0_1 = arith.constant 0 : index
    %c0_2 = arith.constant 0 : index
    %0 = vector.load %arg1[%c0, %c0_0, %c0_1, %c0_2] : memref<1x18x18x128xbf16, #tpu.memory_space<vmem>>, vector<1x18x18x128xbf16>
    %1 = vector.shape_cast %0 : vector<1x18x18x128xbf16> to vector<18x18x128xbf16>
    %cst = arith.constant 0.000000e+00 : f32
    %2 = vector.broadcast %cst : f32 to vector<256x128xf32>
    %3 = vector.extract_strided_slice %1 {offsets = [0, 0, 0], sizes = [16, 16, 128], strides = [1, 1, 1]} : vector<18x18x128xbf16> to vector<16x16x128xbf16>
    %4 = vector.shape_cast %3 : vector<16x16x128xbf16> to vector<256x128xbf16>
    %c0_3 = arith.constant 0 : index
    %c0_4 = arith.constant 0 : index
    %c0_5 = arith.constant 0 : index
    %c0_6 = arith.constant 0 : index
    %5 = vector.load %arg2[%c0_3, %c0_4, %c0_5, %c0_6] : memref<3x3x128x128xbf16, #tpu.memory_space<vmem>>, vector<1x1x128x128xbf16>
    %6 = vector.shape_cast %5 : vector<1x1x128x128xbf16> to vector<128x128xbf16>
    %cst_7 = arith.constant dense<0.000000e+00> : vector<256x128xf32>
    %7 = tpu.matmul %4, %6, %cst_7 {dimension_numbers = #tpu.dot_dimension_numbers<[1], [0], [0], [1], [0, 0, 1, 1], [], []>} : vector<256x128xbf16>, vector<128x128xbf16>, vector<256x128xf32> -> vector<256x128xf32>
    %8 = arith.addf %2, %7 : vector<256x128xf32>
    %9 = vector.extract_strided_slice %1 {offsets = [0, 1, 0], sizes = [16, 16, 128], strides = [1, 1, 1]} : vector<18x18x128xbf16> to vector<16x16x128xbf16>
    %10 = vector.shape_cast %9 : vector<16x16x128xbf16> to vector<256x128xbf16>
    %c0_8 = arith.constant 0 : index
    %c1 = arith.constant 1 : index
    %c0_9 = arith.constant 0 : index
    %c0_10 = arith.constant 0 : index
    %11 = vector.load %arg2[%c0_8, %c1, %c0_9, %c0_10] : memref<3x3x128x128xbf16, #tpu.memory_space<vmem>>, vector<1x1x128x128xbf16>
    %12 = vector.shape_cast %11 : vector<1x1x128x128xbf16> to vector<128x128xbf16>
    %cst_11 = arith.constant dense<0.000000e+00> : vector<256x128xf32>
    %13 = tpu.matmul %10, %12, %cst_11 {dimension_numbers = #tpu.dot_dimension_numbers<[1], [0], [0], [1], [0, 0, 1, 1], [], []>} : vector<256x128xbf16>, vector<128x128xbf16>, vector<256x128xf32> -> vector<256x128xf32>
    %14 = arith.addf %8, %13 : vector<256x128xf32>
    %15 = vector.extract_strided_slice %1 {offsets = [0, 2, 0], sizes = [16, 16, 128], strides = [1, 1, 1]} : vector<18x18x128xbf16> to vector<16x16x128xbf16>
    %16 = vector.shape_cast %15 : vector<16x16x128xbf16> to vector<256x128xbf16>
    %c0_12 = arith.constant 0 : index
    %c2 = arith.constant 2 : index
    %c0_13 = arith.constant 0 : index
    %c0_14 = arith.constant 0 : index
    %17 = vector.load %arg2[%c0_12, %c2, %c0_13, %c0_14] : memref<3x3x128x128xbf16, #tpu.memory_space<vmem>>, vector<1x1x128x128xbf16>
    %18 = vector.shape_cast %17 : vector<1x1x128x128xbf16> to vector<128x128xbf16>
    %cst_15 = arith.constant dense<0.000000e+00> : vector<256x128xf32>
    %19 = tpu.matmul %16, %18, %cst_15 {dimension_numbers = #tpu.dot_dimension_numbers<[1], [0], [0], [1], [0, 0, 1, 1], [], []>} : vector<256x128xbf16>, vector<128x128xbf16>, vector<256x128xf32> -> vector<256x128xf32>
    %20 = arith.addf %14, %19 : vector<256x128xf32>
    %21 = vector.extract_strided_slice %1 {offsets = [1, 0, 0], sizes = [16, 16, 128], strides = [1, 1, 1]} : vector<18x18x128xbf16> to vector<16x16x128xbf16>
    %22 = vector.shape_cast %21 : vector<16x16x128xbf16> to vector<256x128xbf16>
    %c1_16 = arith.constant 1 : index
    %c0_17 = arith.constant 0 : index
    %c0_18 = arith.constant 0 : index
    %c0_19 = arith.constant 0 : index
    %23 = vector.load %arg2[%c1_16, %c0_17, %c0_18, %c0_19] : memref<3x3x128x128xbf16, #tpu.memory_space<vmem>>, vector<1x1x128x128xbf16>
    %24 = vector.shape_cast %23 : vector<1x1x128x128xbf16> to vector<128x128xbf16>
    %cst_20 = arith.constant dense<0.000000e+00> : vector<256x128xf32>
    %25 = tpu.matmul %22, %24, %cst_20 {dimension_numbers = #tpu.dot_dimension_numbers<[1], [0], [0], [1], [0, 0, 1, 1], [], []>} : vector<256x128xbf16>, vector<128x128xbf16>, vector<256x128xf32> -> vector<256x128xf32>
    %26 = arith.addf %20, %25 : vector<256x128xf32>
    %27 = vector.extract_strided_slice %1 {offsets = [1, 1, 0], sizes = [16, 16, 128], strides = [1, 1, 1]} : vector<18x18x128xbf16> to vector<16x16x128xbf16>
    %28 = vector.shape_cast %27 : vector<16x16x128xbf16> to vector<256x128xbf16>
    %c1_21 = arith.constant 1 : index
    %c1_22 = arith.constant 1 : index
    %c0_23 = arith.constant 0 : index
    %c0_24 = arith.constant 0 : index
    %29 = vector.load %arg2[%c1_21, %c1_22, %c0_23, %c0_24] : memref<3x3x128x128xbf16, #tpu.memory_space<vmem>>, vector<1x1x128x128xbf16>
    %30 = vector.shape_cast %29 : vector<1x1x128x128xbf16> to vector<128x128xbf16>
    %cst_25 = arith.constant dense<0.000000e+00> : vector<256x128xf32>
    %31 = tpu.matmul %28, %30, %cst_25 {dimension_numbers = #tpu.dot_dimension_numbers<[1], [0], [0], [1], [0, 0, 1, 1], [], []>} : vector<256x128xbf16>, vector<128x128xbf16>, vector<256x128xf32> -> vector<256x128xf32>
    %32 = arith.addf %26, %31 : vector<256x128xf32>
    %33 = vector.extract_strided_slice %1 {offsets = [1, 2, 0], sizes = [16, 16, 128], strides = [1, 1, 1]} : vector<18x18x128xbf16> to vector<16x16x128xbf16>
    %34 = vector.shape_cast %33 : vector<16x16x128xbf16> to vector<256x128xbf16>
    %c1_26 = arith.constant 1 : index
    %c2_27 = arith.constant 2 : index
    %c0_28 = arith.constant 0 : index
    %c0_29 = arith.constant 0 : index
    %35 = vector.load %arg2[%c1_26, %c2_27, %c0_28, %c0_29] : memref<3x3x128x128xbf16, #tpu.memory_space<vmem>>, vector<1x1x128x128xbf16>
    %36 = vector.shape_cast %35 : vector<1x1x128x128xbf16> to vector<128x128xbf16>
    %cst_30 = arith.constant dense<0.000000e+00> : vector<256x128xf32>
    %37 = tpu.matmul %34, %36, %cst_30 {dimension_numbers = #tpu.dot_dimension_numbers<[1], [0], [0], [1], [0, 0, 1, 1], [], []>} : vector<256x128xbf16>, vector<128x128xbf16>, vector<256x128xf32> -> vector<256x128xf32>
    %38 = arith.addf %32, %37 : vector<256x128xf32>
    %39 = vector.extract_strided_slice %1 {offsets = [2, 0, 0], sizes = [16, 16, 128], strides = [1, 1, 1]} : vector<18x18x128xbf16> to vector<16x16x128xbf16>
    %40 = vector.shape_cast %39 : vector<16x16x128xbf16> to vector<256x128xbf16>
    %c2_31 = arith.constant 2 : index
    %c0_32 = arith.constant 0 : index
    %c0_33 = arith.constant 0 : index
    %c0_34 = arith.constant 0 : index
    %41 = vector.load %arg2[%c2_31, %c0_32, %c0_33, %c0_34] : memref<3x3x128x128xbf16, #tpu.memory_space<vmem>>, vector<1x1x128x128xbf16>
    %42 = vector.shape_cast %41 : vector<1x1x128x128xbf16> to vector<128x128xbf16>
    %cst_35 = arith.constant dense<0.000000e+00> : vector<256x128xf32>
    %43 = tpu.matmul %40, %42, %cst_35 {dimension_numbers = #tpu.dot_dimension_numbers<[1], [0], [0], [1], [0, 0, 1, 1], [], []>} : vector<256x128xbf16>, vector<128x128xbf16>, vector<256x128xf32> -> vector<256x128xf32>
    %44 = arith.addf %38, %43 : vector<256x128xf32>
    %45 = vector.extract_strided_slice %1 {offsets = [2, 1, 0], sizes = [16, 16, 128], strides = [1, 1, 1]} : vector<18x18x128xbf16> to vector<16x16x128xbf16>
    %46 = vector.shape_cast %45 : vector<16x16x128xbf16> to vector<256x128xbf16>
    %c2_36 = arith.constant 2 : index
    %c1_37 = arith.constant 1 : index
    %c0_38 = arith.constant 0 : index
    %c0_39 = arith.constant 0 : index
    %47 = vector.load %arg2[%c2_36, %c1_37, %c0_38, %c0_39] : memref<3x3x128x128xbf16, #tpu.memory_space<vmem>>, vector<1x1x128x128xbf16>
    %48 = vector.shape_cast %47 : vector<1x1x128x128xbf16> to vector<128x128xbf16>
    %cst_40 = arith.constant dense<0.000000e+00> : vector<256x128xf32>
    %49 = tpu.matmul %46, %48, %cst_40 {dimension_numbers = #tpu.dot_dimension_numbers<[1], [0], [0], [1], [0, 0, 1, 1], [], []>} : vector<256x128xbf16>, vector<128x128xbf16>, vector<256x128xf32> -> vector<256x128xf32>
    %50 = arith.addf %44, %49 : vector<256x128xf32>
    %51 = vector.extract_strided_slice %1 {offsets = [2, 2, 0], sizes = [16, 16, 128], strides = [1, 1, 1]} : vector<18x18x128xbf16> to vector<16x16x128xbf16>
    %52 = vector.shape_cast %51 : vector<16x16x128xbf16> to vector<256x128xbf16>
    %c2_41 = arith.constant 2 : index
    %c2_42 = arith.constant 2 : index
    %c0_43 = arith.constant 0 : index
    %c0_44 = arith.constant 0 : index
    %53 = vector.load %arg2[%c2_41, %c2_42, %c0_43, %c0_44] : memref<3x3x128x128xbf16, #tpu.memory_space<vmem>>, vector<1x1x128x128xbf16>
    %54 = vector.shape_cast %53 : vector<1x1x128x128xbf16> to vector<128x128xbf16>
    %cst_45 = arith.constant dense<0.000000e+00> : vector<256x128xf32>
    %55 = tpu.matmul %52, %54, %cst_45 {dimension_numbers = #tpu.dot_dimension_numbers<[1], [0], [0], [1], [0, 0, 1, 1], [], []>} : vector<256x128xbf16>, vector<128x128xbf16>, vector<256x128xf32> -> vector<256x128xf32>
    %56 = arith.addf %50, %55 : vector<256x128xf32>
    %c0_46 = arith.constant 0 : index
    %c0_47 = arith.constant 0 : index
    %57 = vector.load %arg3[%c0_46, %c0_47] : memref<1x128xf32, #tpu.memory_space<vmem>>, vector<1x128xf32>
    %58 = vector.broadcast %57 : vector<1x128xf32> to vector<256x128xf32>
    %59 = arith.addf %56, %58 : vector<256x128xf32>
    %cst_48 = arith.constant 0.000000e+00 : f32
    %60 = vector.broadcast %cst_48 : f32 to vector<256x128xf32>
    %61 = arith.cmpf ogt, %59, %60 : vector<256x128xf32>
    %cst_49 = arith.constant 0.000000e+00 : f32
    %62 = vector.broadcast %cst_49 : f32 to vector<256x128xf32>
    %63 = arith.minimumf %59, %62 : vector<256x128xf32>
    %64 = math.exp %63 : vector<256x128xf32>
    %cst_50 = arith.constant 1.000000e+00 : f32
    %65 = vector.broadcast %cst_50 : f32 to vector<256x128xf32>
    %66 = arith.subf %64, %65 : vector<256x128xf32>
    %67 = arith.select %61, %59, %66 : vector<256x128xi1>, vector<256x128xf32>
    %cst_51 = arith.constant 0.000000e+00 : f32
    %68 = vector.broadcast %cst_51 : f32 to vector<18x32x128xf32>
    %c0_52 = arith.constant 0 : index
    %c0_53 = arith.constant 0 : index
    %c0_54 = arith.constant 0 : index
    %69 = vector.load %arg9[%c0_52, %c0_53, %c0_54] : memref<18x32x128xf32, #tpu.memory_space<vmem>>, vector<18x32x128xf32>
    tpu.vector_store %arg9[%c0_52, %c0_53, %c0_54], %68 {strides = array<i32>} : memref<18x32x128xf32, #tpu.memory_space<vmem>>, vector<18x32x128xf32>,
    %70 = vector.shape_cast %67 : vector<256x128xf32> to vector<16x16x128xf32>
    %c1_55 = arith.constant 1 : index
    %c8 = arith.constant 8 : index
    %c0_56 = arith.constant 0 : index
    %71 = vector.load %arg9[%c1_55, %c8, %c0_56] : memref<18x32x128xf32, #tpu.memory_space<vmem>>, vector<16x16x128xf32>
    tpu.vector_store %arg9[%c1_55, %c8, %c0_56], %70 {strides = array<i32>} : memref<18x32x128xf32, #tpu.memory_space<vmem>>, vector<16x16x128xf32>,
    %c0_57 = arith.constant 0 : index
    %c0_58 = arith.constant 0 : index
    %c0_59 = arith.constant 0 : index
    %72 = vector.load %arg9[%c0_57, %c0_58, %c0_59] : memref<18x32x128xf32, #tpu.memory_space<vmem>>, vector<18x32x128xf32>
    %73 = arith.truncf %72 : vector<18x32x128xf32> to vector<18x32x128xbf16>
    %cst_60 = arith.constant 0.000000e+00 : f32
    %74 = vector.broadcast %cst_60 : f32 to vector<256x128xf32>
    %75 = vector.extract_strided_slice %73 {offsets = [0, 7, 0], sizes = [16, 16, 128], strides = [1, 1, 1]} : vector<18x32x128xbf16> to vector<16x16x128xbf16>
    %76 = vector.shape_cast %75 : vector<16x16x128xbf16> to vector<256x128xbf16>
    %c0_61 = arith.constant 0 : index
    %c0_62 = arith.constant 0 : index
    %c0_63 = arith.constant 0 : index
    %c0_64 = arith.constant 0 : index
    %77 = vector.load %arg4[%c0_61, %c0_62, %c0_63, %c0_64] : memref<3x3x128x128xbf16, #tpu.memory_space<vmem>>, vector<1x1x128x128xbf16>
    %78 = vector.shape_cast %77 : vector<1x1x128x128xbf16> to vector<128x128xbf16>
    %cst_65 = arith.constant dense<0.000000e+00> : vector<256x128xf32>
    %79 = tpu.matmul %76, %78, %cst_65 {dimension_numbers = #tpu.dot_dimension_numbers<[1], [0], [0], [1], [0, 0, 1, 1], [], []>} : vector<256x128xbf16>, vector<128x128xbf16>, vector<256x128xf32> -> vector<256x128xf32>
    %80 = arith.addf %74, %79 : vector<256x128xf32>
    %81 = vector.extract_strided_slice %73 {offsets = [0, 8, 0], sizes = [16, 16, 128], strides = [1, 1, 1]} : vector<18x32x128xbf16> to vector<16x16x128xbf16>
    %82 = vector.shape_cast %81 : vector<16x16x128xbf16> to vector<256x128xbf16>
    %c0_66 = arith.constant 0 : index
    %c1_67 = arith.constant 1 : index
    %c0_68 = arith.constant 0 : index
    %c0_69 = arith.constant 0 : index
    %83 = vector.load %arg4[%c0_66, %c1_67, %c0_68, %c0_69] : memref<3x3x128x128xbf16, #tpu.memory_space<vmem>>, vector<1x1x128x128xbf16>
    %84 = vector.shape_cast %83 : vector<1x1x128x128xbf16> to vector<128x128xbf16>
    %cst_70 = arith.constant dense<0.000000e+00> : vector<256x128xf32>
    %85 = tpu.matmul %82, %84, %cst_70 {dimension_numbers = #tpu.dot_dimension_numbers<[1], [0], [0], [1], [0, 0, 1, 1], [], []>} : vector<256x128xbf16>, vector<128x128xbf16>, vector<256x128xf32> -> vector<256x128xf32>
    %86 = arith.addf %80, %85 : vector<256x128xf32>
    %87 = vector.extract_strided_slice %73 {offsets = [0, 9, 0], sizes = [16, 16, 128], strides = [1, 1, 1]} : vector<18x32x128xbf16> to vector<16x16x128xbf16>
    %88 = vector.shape_cast %87 : vector<16x16x128xbf16> to vector<256x128xbf16>
    %c0_71 = arith.constant 0 : index
    %c2_72 = arith.constant 2 : index
    %c0_73 = arith.constant 0 : index
    %c0_74 = arith.constant 0 : index
    %89 = vector.load %arg4[%c0_71, %c2_72, %c0_73, %c0_74] : memref<3x3x128x128xbf16, #tpu.memory_space<vmem>>, vector<1x1x128x128xbf16>
    %90 = vector.shape_cast %89 : vector<1x1x128x128xbf16> to vector<128x128xbf16>
    %cst_75 = arith.constant dense<0.000000e+00> : vector<256x128xf32>
    %91 = tpu.matmul %88, %90, %cst_75 {dimension_numbers = #tpu.dot_dimension_numbers<[1], [0], [0], [1], [0, 0, 1, 1], [], []>} : vector<256x128xbf16>, vector<128x128xbf16>, vector<256x128xf32> -> vector<256x128xf32>
    %92 = arith.addf %86, %91 : vector<256x128xf32>
    %93 = vector.extract_strided_slice %73 {offsets = [1, 7, 0], sizes = [16, 16, 128], strides = [1, 1, 1]} : vector<18x32x128xbf16> to vector<16x16x128xbf16>
    %94 = vector.shape_cast %93 : vector<16x16x128xbf16> to vector<256x128xbf16>
    %c1_76 = arith.constant 1 : index
    %c0_77 = arith.constant 0 : index
    %c0_78 = arith.constant 0 : index
    %c0_79 = arith.constant 0 : index
    %95 = vector.load %arg4[%c1_76, %c0_77, %c0_78, %c0_79] : memref<3x3x128x128xbf16, #tpu.memory_space<vmem>>, vector<1x1x128x128xbf16>
    %96 = vector.shape_cast %95 : vector<1x1x128x128xbf16> to vector<128x128xbf16>
    %cst_80 = arith.constant dense<0.000000e+00> : vector<256x128xf32>
    %97 = tpu.matmul %94, %96, %cst_80 {dimension_numbers = #tpu.dot_dimension_numbers<[1], [0], [0], [1], [0, 0, 1, 1], [], []>} : vector<256x128xbf16>, vector<128x128xbf16>, vector<256x128xf32> -> vector<256x128xf32>
    %98 = arith.addf %92, %97 : vector<256x128xf32>
    %99 = vector.extract_strided_slice %73 {offsets = [1, 8, 0], sizes = [16, 16, 128], strides = [1, 1, 1]} : vector<18x32x128xbf16> to vector<16x16x128xbf16>
    %100 = vector.shape_cast %99 : vector<16x16x128xbf16> to vector<256x128xbf16>
    %c1_81 = arith.constant 1 : index
    %c1_82 = arith.constant 1 : index
    %c0_83 = arith.constant 0 : index
    %c0_84 = arith.constant 0 : index
    %101 = vector.load %arg4[%c1_81, %c1_82, %c0_83, %c0_84] : memref<3x3x128x128xbf16, #tpu.memory_space<vmem>>, vector<1x1x128x128xbf16>
    %102 = vector.shape_cast %101 : vector<1x1x128x128xbf16> to vector<128x128xbf16>
    %cst_85 = arith.constant dense<0.000000e+00> : vector<256x128xf32>
    %103 = tpu.matmul %100, %102, %cst_85 {dimension_numbers = #tpu.dot_dimension_numbers<[1], [0], [0], [1], [0, 0, 1, 1], [], []>} : vector<256x128xbf16>, vector<128x128xbf16>, vector<256x128xf32> -> vector<256x128xf32>
    %104 = arith.addf %98, %103 : vector<256x128xf32>
    %105 = vector.extract_strided_slice %73 {offsets = [1, 9, 0], sizes = [16, 16, 128], strides = [1, 1, 1]} : vector<18x32x128xbf16> to vector<16x16x128xbf16>
    %106 = vector.shape_cast %105 : vector<16x16x128xbf16> to vector<256x128xbf16>
    %c1_86 = arith.constant 1 : index
    %c2_87 = arith.constant 2 : index
    %c0_88 = arith.constant 0 : index
    %c0_89 = arith.constant 0 : index
    %107 = vector.load %arg4[%c1_86, %c2_87, %c0_88, %c0_89] : memref<3x3x128x128xbf16, #tpu.memory_space<vmem>>, vector<1x1x128x128xbf16>
    %108 = vector.shape_cast %107 : vector<1x1x128x128xbf16> to vector<128x128xbf16>
    %cst_90 = arith.constant dense<0.000000e+00> : vector<256x128xf32>
    %109 = tpu.matmul %106, %108, %cst_90 {dimension_numbers = #tpu.dot_dimension_numbers<[1], [0], [0], [1], [0, 0, 1, 1], [], []>} : vector<256x128xbf16>, vector<128x128xbf16>, vector<256x128xf32> -> vector<256x128xf32>
    %110 = arith.addf %104, %109 : vector<256x128xf32>
    %111 = vector.extract_strided_slice %73 {offsets = [2, 7, 0], sizes = [16, 16, 128], strides = [1, 1, 1]} : vector<18x32x128xbf16> to vector<16x16x128xbf16>
    %112 = vector.shape_cast %111 : vector<16x16x128xbf16> to vector<256x128xbf16>
    %c2_91 = arith.constant 2 : index
    %c0_92 = arith.constant 0 : index
    %c0_93 = arith.constant 0 : index
    %c0_94 = arith.constant 0 : index
    %113 = vector.load %arg4[%c2_91, %c0_92, %c0_93, %c0_94] : memref<3x3x128x128xbf16, #tpu.memory_space<vmem>>, vector<1x1x128x128xbf16>
    %114 = vector.shape_cast %113 : vector<1x1x128x128xbf16> to vector<128x128xbf16>
    %cst_95 = arith.constant dense<0.000000e+00> : vector<256x128xf32>
    %115 = tpu.matmul %112, %114, %cst_95 {dimension_numbers = #tpu.dot_dimension_numbers<[1], [0], [0], [1], [0, 0, 1, 1], [], []>} : vector<256x128xbf16>, vector<128x128xbf16>, vector<256x128xf32> -> vector<256x128xf32>
    %116 = arith.addf %110, %115 : vector<256x128xf32>
    %117 = vector.extract_strided_slice %73 {offsets = [2, 8, 0], sizes = [16, 16, 128], strides = [1, 1, 1]} : vector<18x32x128xbf16> to vector<16x16x128xbf16>
    %118 = vector.shape_cast %117 : vector<16x16x128xbf16> to vector<256x128xbf16>
    %c2_96 = arith.constant 2 : index
    %c1_97 = arith.constant 1 : index
    %c0_98 = arith.constant 0 : index
    %c0_99 = arith.constant 0 : index
    %119 = vector.load %arg4[%c2_96, %c1_97, %c0_98, %c0_99] : memref<3x3x128x128xbf16, #tpu.memory_space<vmem>>, vector<1x1x128x128xbf16>
    %120 = vector.shape_cast %119 : vector<1x1x128x128xbf16> to vector<128x128xbf16>
    %cst_100 = arith.constant dense<0.000000e+00> : vector<256x128xf32>
    %121 = tpu.matmul %118, %120, %cst_100 {dimension_numbers = #tpu.dot_dimension_numbers<[1], [0], [0], [1], [0, 0, 1, 1], [], []>} : vector<256x128xbf16>, vector<128x128xbf16>, vector<256x128xf32> -> vector<256x128xf32>
    %122 = arith.addf %116, %121 : vector<256x128xf32>
    %123 = vector.extract_strided_slice %73 {offsets = [2, 9, 0], sizes = [16, 16, 128], strides = [1, 1, 1]} : vector<18x32x128xbf16> to vector<16x16x128xbf16>
    %124 = vector.shape_cast %123 : vector<16x16x128xbf16> to vector<256x128xbf16>
    %c2_101 = arith.constant 2 : index
    %c2_102 = arith.constant 2 : index
    %c0_103 = arith.constant 0 : index
    %c0_104 = arith.constant 0 : index
    %125 = vector.load %arg4[%c2_101, %c2_102, %c0_103, %c0_104] : memref<3x3x128x128xbf16, #tpu.memory_space<vmem>>, vector<1x1x128x128xbf16>
    %126 = vector.shape_cast %125 : vector<1x1x128x128xbf16> to vector<128x128xbf16>
    %cst_105 = arith.constant dense<0.000000e+00> : vector<256x128xf32>
    %127 = tpu.matmul %124, %126, %cst_105 {dimension_numbers = #tpu.dot_dimension_numbers<[1], [0], [0], [1], [0, 0, 1, 1], [], []>} : vector<256x128xbf16>, vector<128x128xbf16>, vector<256x128xf32> -> vector<256x128xf32>
    %128 = arith.addf %122, %127 : vector<256x128xf32>
    %c0_106 = arith.constant 0 : index
    %c0_107 = arith.constant 0 : index
    %129 = vector.load %arg5[%c0_106, %c0_107] : memref<1x128xf32, #tpu.memory_space<vmem>>, vector<1x128xf32>
    %130 = vector.broadcast %129 : vector<1x128xf32> to vector<256x128xf32>
    %131 = arith.addf %128, %130 : vector<256x128xf32>
    %132 = vector.extract_strided_slice %1 {offsets = [1, 1, 0], sizes = [16, 16, 128], strides = [1, 1, 1]} : vector<18x18x128xbf16> to vector<16x16x128xbf16>
    %133 = vector.shape_cast %132 : vector<16x16x128xbf16> to vector<256x128xbf16>
    %c0_108 = arith.constant 0 : index
    %c0_109 = arith.constant 0 : index
    %134 = vector.load %arg6[%c0_108, %c0_109] : memref<128x128xbf16, #tpu.memory_space<vmem>>, vector<128x128xbf16>
    %cst_110 = arith.constant dense<0.000000e+00> : vector<256x128xf32>
    %135 = tpu.matmul %133, %134, %cst_110 {dimension_numbers = #tpu.dot_dimension_numbers<[1], [0], [0], [1], [0, 0, 1, 1], [], []>} : vector<256x128xbf16>, vector<128x128xbf16>, vector<256x128xf32> -> vector<256x128xf32>
    %c0_111 = arith.constant 0 : index
    %c0_112 = arith.constant 0 : index
    %136 = vector.load %arg7[%c0_111, %c0_112] : memref<1x128xf32, #tpu.memory_space<vmem>>, vector<1x128xf32>
    %137 = vector.broadcast %136 : vector<1x128xf32> to vector<256x128xf32>
    %138 = arith.addf %135, %137 : vector<256x128xf32>
    %139 = arith.addf %138, %131 : vector<256x128xf32>
    %cst_113 = arith.constant 0.000000e+00 : f32
    %140 = vector.broadcast %cst_113 : f32 to vector<256x128xf32>
    %141 = arith.cmpf ogt, %139, %140 : vector<256x128xf32>
    %cst_114 = arith.constant 0.000000e+00 : f32
    %142 = vector.broadcast %cst_114 : f32 to vector<256x128xf32>
    %143 = arith.minimumf %139, %142 : vector<256x128xf32>
    %144 = math.exp %143 : vector<256x128xf32>
    %cst_115 = arith.constant 1.000000e+00 : f32
    %145 = vector.broadcast %cst_115 : f32 to vector<256x128xf32>
    %146 = arith.subf %144, %145 : vector<256x128xf32>
    %147 = arith.select %141, %139, %146 : vector<256x128xi1>, vector<256x128xf32>
    %148 = vector.shape_cast %147 : vector<256x128xf32> to vector<1x16x16x128xf32>
    %c0_116 = arith.constant 0 : index
    %c0_117 = arith.constant 0 : index
    %c0_118 = arith.constant 0 : index
    %c0_119 = arith.constant 0 : index
    %149 = vector.load %arg8[%c0_116, %c0_117, %c0_118, %c0_119] : memref<1x16x16x128xf32, #tpu.memory_space<vmem>>, vector<1x16x16x128xf32>
    tpu.vector_store %arg8[%c0_116, %c0_117, %c0_118, %c0_119], %148 {strides = array<i32>} : memref<1x16x16x128xf32, #tpu.memory_space<vmem>>, vector<1x16x16x128xf32>,
    return
  }
  func.func @transform_0(%arg0: i32) -> (i32, i32, i32, i32) {
    %c0_i32 = arith.constant 0 : i32
    %c0_i32_0 = arith.constant 0 : i32
    %c0_i32_1 = arith.constant 0 : i32
    %c0_i32_2 = arith.constant 0 : i32
    return %arg0, %c0_i32, %c0_i32_0, %c0_i32_1 : i32, i32, i32, i32
  }
  func.func @transform_1(%arg0: i32) -> (i32, i32, i32, i32) {
    %c0_i32 = arith.constant 0 : i32
    %c0_i32_0 = arith.constant 0 : i32
    %c0_i32_1 = arith.constant 0 : i32
    %c0_i32_2 = arith.constant 0 : i32
    %c0_i32_3 = arith.constant 0 : i32
    return %c0_i32, %c0_i32_0, %c0_i32_1, %c0_i32_2 : i32, i32, i32, i32
  }
  func.func @transform_2(%arg0: i32) -> (i32, i32) {
    %c0_i32 = arith.constant 0 : i32
    %c0_i32_0 = arith.constant 0 : i32
    %c0_i32_1 = arith.constant 0 : i32
    return %c0_i32, %c0_i32_0 : i32, i32
  }
  func.func @transform_3(%arg0: i32) -> (i32, i32, i32, i32) {
    %c0_i32 = arith.constant 0 : i32
    %c0_i32_0 = arith.constant 0 : i32
    %c0_i32_1 = arith.constant 0 : i32
    %c0_i32_2 = arith.constant 0 : i32
    %c0_i32_3 = arith.constant 0 : i32
    return %c0_i32, %c0_i32_0, %c0_i32_1, %c0_i32_2 : i32, i32, i32, i32
  }
  func.func @transform_4(%arg0: i32) -> (i32, i32) {
    %c0_i32 = arith.constant 0 : i32
    %c0_i32_0 = arith.constant 0 : i32
    %c0_i32_1 = arith.constant 0 : i32
    return %c0_i32, %c0_i32_0 : i32, i32
  }
  func.func @transform_5(%arg0: i32) -> (i32, i32) {
    %c0_i32 = arith.constant 0 : i32
    %c0_i32_0 = arith.constant 0 : i32
    %c0_i32_1 = arith.constant 0 : i32
    return %c0_i32, %c0_i32_0 : i32, i32
  }
  func.func @transform_6(%arg0: i32) -> (i32, i32) {
    %c0_i32 = arith.constant 0 : i32
    %c0_i32_0 = arith.constant 0 : i32
    %c0_i32_1 = arith.constant 0 : i32
    return %c0_i32, %c0_i32_0 : i32, i32
  }
  func.func @transform_7(%arg0: i32) -> (i32, i32, i32, i32) {
    %c0_i32 = arith.constant 0 : i32
    %c0_i32_0 = arith.constant 0 : i32
    %c0_i32_1 = arith.constant 0 : i32
    %c0_i32_2 = arith.constant 0 : i32
    return %arg0, %c0_i32, %c0_i32_0, %c0_i32_1 : i32, i32, i32, i32
  }
}

</mosaic_0001>

<bundles_post_ra>
// kernel: _lambda_.1
= control target key start
LH: loop header
LB: loop body
LE: loop exit
PB: predicated region body
PF: predicated region fallthrough
CT: control target
= control target key end

     0   :  { %s10206_s24 = smov 0   ;;  %s12722_s0 = inlined_call_operand.vmem [shape: bf16[2,18,18,128], index: 0, kind: input, shape index: {}]   ;;  %s12723_s1 = inlined_call_operand.vmem [shape: bf16[3,3,128,128], index: 1, kind: input, shape index: {}]   ;;  %s12724_s2 = inlined_call_operand.vmem [shape: f32[1,128], index: 2, kind: input, shape index: {}]   ;;  %s12725_s3 = inlined_call_operand.vmem [shape: bf16[3,3,128,128], index: 3, kind: input, shape index: {}]   ;;  %s12726_s4 = inlined_call_operand.vmem [shape: f32[1,128], index: 4, kind: input, shape index: {}]   ;;  %s12727_s5 = inlined_call_operand.vmem [shape: bf16[128,128], index: 5, kind: input, shape index: {}]   ;;  %s12728_s6 = inlined_call_operand.vmem [shape: f32[1,128], index: 6, kind: input, shape index: {}]   ;;  %s12729_s7 = inlined_call_operand.vmem [shape: f32[2,16,16,128], index: 7, kind: output, shape index: {}]  }
   0x1 LB: > { %s7286_s25 = sadd.s32 4294967295, %s10161_s24   ;;  %p7290_p0 = scmp.ge.s32.totalorder %s10161_s24, 1  ;;  %s10161_s24 = sphi %s10206_s24, %s17_s24  }
   0x2   : > { %p237_p1 = scmp.lt.s32.totalorder %s10161_s24, 3 }
   0x4   : > { %p238_p2 = pnand %p7290_p0, %p237_p1 }
   0x6   : > { %241 = sbr.rel (%p238_p2) target bundleno = 1676 (0x68c), region = 48 }
   0xd   : > { %v9848_v0 = vld [vmem:[%s12723_s1 + $0x40] sm:$0xff]   ;;  %p269_p3 = scmp.lt.s32.totalorder %s7286_s25, 1  ;;  %v9849_v1 = vld [vmem:[%s12723_s1 + $0x48] sm:$0xff]   ;;  %v9850_v2 = vld [vmem:[%s12723_s1 + $0x50] sm:$0xff]   ;;  %vm350_vm0 = vsmask.f32 3328 }
   0xe   : > { %8300 = vmatprep.subr.bf16.mxu0 %v9848_v0  ;;  %v9851_v3 = vld [vmem:[%s12723_s1 + $0x58] sm:$0xff]   ;;  %vm351_vm1 = vsmask.f32 7440  ;;  %v9852_v17 = vld [vmem:[%s12723_s1 + $0x60] sm:$0xff]   ;;  %v9853_v36 = vld [vmem:[%s12723_s1 + $0x68] sm:$0xff]   ;;  %vm1348_vm3 = vcmask 1042432  }
   0xf   : > { %s13062_s25 = smov (!%p269_p3, %s7286_s25), 1  ;;  %8301 = vmatpush3.bf16.msra.mxu0 %v9848_v0  ;;  %vm10261_vm2 = vmor %vm350_vm0, %vm351_vm1  ;;  %v9854_v56 = vld [vmem:[%s12723_s1 + $0x70] sm:$0xff]   ;;  %vm1349_vm4 = vcmask 1046532   ;;  %vm4206_vm10 = vcmask 1043456  }
  0x10   : > { %8302 = vmatprep.subr.bf16.mxu0 %v9849_v1  ;;  %s9836_s9 = smul.u32 216, %s13062_s25  ;;  %vm10673_vm5 = vmor %vm1348_vm3, %vm1349_vm4  ;;  %s7843_s8 = sshll.u32 %s13062_s25, 8 }
  0x11   : > { %s12541_s10 = scalar_lea.vmem %s12729_s7, %s7843_s8 }
  0x12   : > { %s10229_s12 = scalar_lea.vmem %s12722_s0, %s9836_s9 }
  0x13   : > { %8303 = vmatpush3.bf16.msra.mxu0 %v9849_v1  ;;  %v10235_v4 = vld [vmem:[%s10229_s12] sm:$0xf]  ;;  %v10238_v5 = vld [vmem:[%s10229_s12 + $0x4] sm:$0xf]  ;;  %v282_v6 = vld [vmem:[%s10229_s12 + $0x8] sm:$0x1] }
  0x14   : > { %8304 = vmatprep.subr.bf16.mxu0 %v9850_v2  ;;  %v354_v7 = vshrl.u32 %v10235_v4, 16  ;;  %v357_v8 = vshll.u32 %v10235_v4, 16  ;;  %v363_v9 = vshll.u32 %v10238_v5, 16  ;;  %v367_v10 = vshrl.u32 %v10238_v5, 16  ;;  %v10246_v12 = vld [vmem:[%s10229_s12 + $0xc] sm:$0xf] }
  0x15   : > { %v373_v11 = vshll.u32 %v282_v6, 16  ;;  %v10249_v15 = vld [vmem:[%s10229_s12 + $0x10] sm:$0xf]  ;;  %v285_v16 = vld [vmem:[%s10229_s12 + $0x14] sm:$0x1]  ;;  %v378_v20 = vshrl.u32 %v10246_v12, 16 }
  0x16   : > { %v356_v13 = vrot.slane %v354_v7, 4  ;;  %v359_v14 = vrot.slane %v357_v8, 5  ;;  %v365_v18 = vrot.slane %v363_v9, 5  ;;  %v369_v19 = vrot.slane %v367_v10, 4  ;;  %v10266_v30 = vld [vmem:[%s10229_s12 + $0x18] sm:$0xf] }
  0x17   : > { %8305 = vmatpush3.bf16.msra.mxu0 %v9850_v2  ;;  %v381_v22 = vshll.u32 %v10246_v12, 16  ;;  %v387_v23 = vshll.u32 %v10249_v15, 16  ;;  %v391_v24 = vshrl.u32 %v10249_v15, 16  ;;  %v375_v27 = vrot.slane %v373_v11, 5  ;;  %v10269_v35 = vld [vmem:[%s10229_s12 + $0x1c] sm:$0xf] }
  0x18   : > { %8306 = vmatprep.subr.bf16.mxu0 %v9851_v3  ;;  %v360_v21 = vor.u32 %v359_v14, %v356_v13  ;;  %v370_v26 = vor.u32 %v369_v19, %v365_v18  ;;  %v380_v28 = vrot.slane %v378_v20, 4  ;;  %v397_v29 = vshll.u32 %v285_v16, 16  ;;  %v288_v44 = vld [vmem:[%s10229_s12 + $0x20] sm:$0x1]  ;;  %v10281_v46 = vld [vmem:[%s10229_s12 + $0x24] sm:$0xf] }
  0x19   : > { %v383_v32 = vrot.slane %v381_v22, 5  ;;  %v389_v33 = vrot.slane %v387_v23, 5  ;;  %v393_v34 = vrot.slane %v391_v24, 4  ;;  %v402_v39 = vshrl.u32 %v10266_v30, 16  ;;  %v10287_v51 = vld [vmem:[%s10229_s12 + $0x28] sm:$0xf] }
  0x1a   : > { %v361_v31 = vrot.slane %v360_v21, 4  ;;  %v371_v37 = vrot.slane %v370_v26, 4  ;;  %v399_v38 = vrot.slane %v397_v29, 5  ;;  %v405_v40 = vshll.u32 %v10266_v30, 16  ;;  %v10298_v63 = vld [vmem:[%s10229_s12 + $0x2c] sm:$0x1] }
  0x1b   : > { %8307 = vmatpush3.bf16.msra.mxu0 %v9851_v3  ;;  %v384_v42 = vor.u32 %v383_v32, %v380_v28  ;;  %v394_v43 = vor.u32 %v393_v34, %v389_v33  ;;  %v411_v45 = vshll.u32 %v10269_v35, 16  ;;  %v404_v48 = vrot.slane %v402_v39, 4  ;;  %v10303_v2 = vld [vmem:[%s10229_s12 + $0x30] sm:$0xf]  ;;  %v10308_v9 = vld [vmem:[%s10229_s12 + $0x34] sm:$0xf] }
  0x1c   : > { %8308 = vmatprep.subr.bf16.mxu0 %v9852_v17  ;;  %v366_v41 = vsel %vm10261_vm2, %v361_v31, %v365_v18  ;;  %v376_v47 = vsel %vm10261_vm2, %v371_v37, %v375_v27  ;;  %v407_v49 = vrot.slane %v405_v40, 5  ;;  %v415_v50 = vshrl.u32 %v10269_v35, 16  ;;  %v10312_v16 = vld [vmem:[%s10229_s12 + $0x38] sm:$0x1]  ;;  %v10322_v22 = vld [vmem:[%s10229_s12 + $0x3c] sm:$0xf] }
  0x1d   : > { %v7310_v52 = vcombine.low %v366_v41, %v376_v47  ;;  %v385_v53 = vrot.slane %v384_v42, 4  ;;  %v395_v54 = vrot.slane %v394_v43, 4  ;;  %v413_v55 = vrot.slane %v411_v45, 5  ;;  %v9856_v39 = vld [vmem:[%s12723_s1] sm:$0xff]  }
  0x1e   : > { %v408_v57 = vor.u32 %v407_v49, %v404_v48  ;;  %v417_v58 = vrot.slane %v415_v50, 4  ;;  %v421_v59 = vshll.u32 %v288_v44, 16  ;;  %v426_v60 = vshrl.u32 %v10281_v46, 16  ;;  %v10342_v48 = vld [vmem:[%s10229_s12 + $0x44] sm:$0x1] }
  0x1f   : > { %8309 = vmatpush3.bf16.msra.mxu0 %v9852_v17  ;;  %8316 = vmatprep.mubr.bf16.mxu0 %v7310_v52  ;;  %v390_v61 = vsel %vm10261_vm2, %v385_v53, %v389_v33  ;;  %v400_v62 = vsel %vm10261_vm2, %v395_v54, %v399_v38  ;;  %v429_v0 = vshll.u32 %v10281_v46, 16  ;;  %v435_v1 = vshll.u32 %v10287_v51, 16  ;;  %v9855_v17 = vld [vmem:[%s12723_s1 + $0x78] sm:$0xff]   ;;  %v10332_v38 = vld [vmem:[%s10229_s12 + $0x40] sm:$0xf] }
  0x20   : > { %8310 = vmatprep.subr.bf16.mxu0 %v9853_v36  ;;  %v10305_v3 = vcombine.low %v390_v61, %v400_v62  ;;  %v409_v6 = vrot.slane %v408_v57, 4  ;;  %v418_v7 = vor.u32 %v417_v58, %v413_v55  ;;  %v423_v8 = vrot.slane %v421_v59, 5  ;;  %v10346_v50 = vld [vmem:[%s10229_s12 + $0x48] sm:$0xf] }
  0x21   : > { %v428_v10 = vrot.slane %v426_v60, 4  ;;  %v431_v11 = vrot.slane %v429_v0, 5  ;;  %v437_v13 = vrot.slane %v435_v1, 5  ;;  %v439_v14 = vshrl.u32 %v10287_v51, 16  ;;  %v9857_v61 = vld [vmem:[%s12723_s1 + $0x8] sm:$0xff]  }
  0x22   : > { %12879 = vst [vmem:[#allocation3_spill] sm:$0xff] %v10305_v3  ;;  %v414_v18 = vsel %vm10261_vm2, %v409_v6, %v413_v55  ;;  %v419_v19 = vrot.slane %v418_v7, 4  ;;  %v445_v20 = vshll.u32 %v10298_v63, 16  ;;  %v450_v21 = vshrl.u32 %v10303_v2, 16 }
  0x23   : > { %8311 = vmatpush3.bf16.msra.mxu0 %v9853_v36  ;;  %v432_v23 = vor.u32 %v431_v11, %v428_v10  ;;  %v441_v24 = vrot.slane %v439_v14, 4  ;;  %v453_v26 = vshll.u32 %v10303_v2, 16  ;;  %v459_v27 = vshll.u32 %v10308_v9, 16  ;;  %v10364_v10 = vld [vmem:[%s10229_s12 + $0x50] sm:$0x1] }
  0x24   : > { %8312 = vmatprep.subr.bf16.mxu0 %v9854_v56  ;;  %v424_v28 = vsel %vm10261_vm2, %v419_v19, %v423_v8  ;;  %v447_v29 = vrot.slane %v445_v20, 5  ;;  %v452_v31 = vrot.slane %v450_v21, 4  ;;  %v463_v32 = vshrl.u32 %v10308_v9, 16  ;;  %v10375_v19 = vld [vmem:[%s10229_s12 + $0x54] sm:$0xf] }
  0x25   : > { %v10329_v33 = vcombine.low %v414_v18, %v424_v28  ;;  %v433_v34 = vrot.slane %v432_v23, 4  ;;  %v442_v36 = vor.u32 %v441_v24, %v437_v13  ;;  %v455_v37 = vrot.slane %v453_v26, 5  ;;  %v9858_v24 = vld [vmem:[%s12723_s1 + $0x10] sm:$0xff]  }
  0x26   : > { %v461_v40 = vrot.slane %v459_v27, 5  ;;  %v465_v41 = vrot.slane %v463_v32, 4  ;;  %v469_v42 = vshll.u32 %v10312_v16, 16  ;;  %v474_v43 = vshrl.u32 %v10322_v22, 16  ;;  %v10383_v27 = vld [vmem:[%s10229_s12 + $0x58] sm:$0xf] }
  0x27   : > { %8313 = vmatpush3.bf16.msra.mxu0 %v9854_v56  ;;  %12880 = vst [vmem:[#allocation4_spill] sm:$0xff] %v10329_v33  ;;  %v438_v44 = vsel %vm10261_vm2, %v433_v34, %v437_v13  ;;  %v443_v45 = vrot.slane %v442_v36, 4  ;;  %v456_v47 = vor.u32 %v455_v37, %v452_v31  ;;  %v477_v49 = vshll.u32 %v10322_v22, 16  ;;  %v10350_v56 = vld [vmem:[%s10229_s12 + $0x4c] sm:$0xf] }
  0x28   : > { %8314 = vmatprep.subr.bf16.mxu0 %v9855_v17  ;;  %v466_v52 = vor.u32 %v465_v41, %v461_v40  ;;  %v471_v53 = vrot.slane %v469_v42, 5  ;;  %v476_v54 = vrot.slane %v474_v43, 4  ;;  %v483_v55 = vshll.u32 %v10332_v38, 16  ;;  %v10388_v34 = vld [vmem:[%s10229_s12 + $0x5c] sm:$0x1] }
  0x29   : > { %v448_v57 = vsel %vm10261_vm2, %v443_v45, %v447_v29  ;;  %v457_v58 = vrot.slane %v456_v47, 4  ;;  %v479_v59 = vrot.slane %v477_v49, 5  ;;  %v487_v60 = vshrl.u32 %v10332_v38, 16  ;;  %v10399_v45 = vld [vmem:[%s10229_s12 + $0x60] sm:$0xf] }
  0x2a   : > { %v467_v62 = vrot.slane %v466_v52, 4  ;;  %v10358_v0 = vrot.slane %v483_v55, 5  ;;  %v493_v1 = vshll.u32 %v10342_v48, 16  ;;  %v10361_v6 = vcombine.low %v438_v44, %v448_v57 }
  0x2b   : > { %8315 = vmatpush3.bf16.msra.mxu0 %v9855_v17  ;;  %v480_v7 = vor.u32 %v479_v59, %v476_v54  ;;  %v489_v8 = vrot.slane %v487_v60, 4  ;;  %v498_v11 = vshrl.u32 %v10346_v50, 16  ;;  %v462_v13 = vsel %vm10261_vm2, %v457_v58, %v461_v40  ;;  %v10403_v54 = vld [vmem:[%s10229_s12 + $0x64] sm:$0xf]  ;;  %v9859_v60 = vld [vmem:[%s12723_s1 + $0x18] sm:$0xff]  }
  0x2c   : > { %8348 = vmatprep.subr.bf16.mxu0 %v9856_v39  ;;  %12881 = vst [vmem:[#allocation5_spill] sm:$0xff] %v10361_v6  ;;  %v472_v14 = vsel %vm10261_vm2, %v467_v62, %v471_v53  ;;  %v501_v17 = vshll.u32 %v10346_v50, 16  ;;  %v507_v18 = vshll.u32 %v10350_v56, 16  ;;  %v495_v23 = vrot.slane %v493_v1, 5  ;;  %v10414_v1 = vld [vmem:[%s10229_s12 + $0x68] sm:$0x1] }
  0x2d   : > { %v481_v20 = vrot.slane %v480_v7, 4  ;;  %v490_v21 = vor.u32 %v489_v8, %v10358_v0  ;;  %v500_v26 = vrot.slane %v498_v11, 4  ;;  %v511_v31 = vshrl.u32 %v10350_v56, 16  ;;  %12883 = vst [vmem:[#allocation7_spill] sm:$0xff] %v10414_v1 }
  0x2e   : > { %8317 = vmatmul.mubr.bf16.vlgmr.msra.gmra.mrb[0].mxu0 %v10305_v3  ;;  %v503_v28 = vrot.slane %v501_v17, 5  ;;  %v509_v29 = vrot.slane %v507_v18, 5  ;;  %v517_v32 = vshll.u32 %v10364_v10, 16  ;;  %v10390_v36 = vcombine.low %v462_v13, %v472_v14  ;;  %v10423_v17 = vld [vmem:[%s10229_s12 + $0x6c] sm:$0xf] }
  0x2f   : > { %8349 = vmatpush3.bf16.msra.mxu0 %v9856_v39  ;;  %8320 = vmatprep.mubr.bf16.mxu0 %v10329_v33  ;;  %v491_v37 = vrot.slane %v490_v21, 4  ;;  %v522_v39 = vshrl.u32 %v10375_v19, 16  ;;  %v525_v40 = vshll.u32 %v10375_v19, 16  ;;  %v486_v41 = vsel %vm10261_vm2, %v481_v20, %v10358_v0  ;;  %v10550_v33 = vld [vmem:[%s10229_s12 + $0xa8] sm:$0xf] }
  0x30   : > { %8350 = vmatprep.subr.bf16.mxu0 %v9857_v61  ;;  %12882 = vst [vmem:[#allocation6_spill] sm:$0xff] %v10390_v36  ;;  %v504_v42 = vor.u32 %v503_v28, %v500_v26  ;;  %v513_v43 = vrot.slane %v511_v31, 4  ;;  %v531_v44 = vshll.u32 %v10383_v27, 16  ;;  %v519_v47 = vrot.slane %v517_v32, 5  ;;  %v10428_v26 = vld [vmem:[%s10229_s12 + $0x70] sm:$0xf] }
  0x31   : > { %v524_v49 = vrot.slane %v522_v39, 4  ;;  %v527_v52 = vrot.slane %v525_v40, 5  ;;  %v535_v53 = vshrl.u32 %v10383_v27, 16  ;;  %v496_v55 = vsel %vm10261_vm2, %v491_v37, %v495_v23 }
  0x32   : > { %v505_v57 = vrot.slane %v504_v42, 4  ;;  %v514_v58 = vor.u32 %v513_v43, %v509_v29  ;;  %v10407_v59 = vrot.slane %v531_v44, 5  ;;  %v541_v0 = vshll.u32 %v10388_v34, 16 }
  0x33   : > { %8351 = vmatpush3.bf16.msra.mxu0 %v9857_v61  ;;  %v528_v61 = vor.u32 %v527_v52, %v524_v49  ;;  %v537_v62 = vrot.slane %v535_v53, 4  ;;  %v546_v7 = vshrl.u32 %v10399_v45, 16  ;;  %v549_v13 = vshll.u32 %v10399_v45, 16 }
  0x34   : > { %8352 = vmatprep.subr.bf16.mxu0 %v9858_v24  ;;  %v510_v8 = vsel %vm10261_vm2, %v505_v57, %v509_v29  ;;  %v515_v11 = vrot.slane %v514_v58, 4  ;;  %v555_v14 = vshll.u32 %v10403_v54, 16  ;;  %v543_v21 = vrot.slane %v541_v0, 5  ;;  %v10454_v58 = vld [vmem:[%s10229_s12 + $0x78] sm:$0xf] }
  0x35   : > { %v529_v18 = vrot.slane %v528_v61, 4  ;;  %v538_v20 = vor.u32 %v537_v62, %v10407_v59  ;;  %v548_v23 = vrot.slane %v546_v7, 4  ;;  %v551_v29 = vrot.slane %v549_v13, 5 }
  0x36   : > { %8321 = vmatmul.mubr.bf16.gmra.mrb[4].mxu0 %v10361_v6  ;;  %v520_v28 = vsel %vm10261_vm2, %v515_v11, %v519_v47  ;;  %v557_v31 = vrot.slane %v555_v14, 5  ;;  %v559_v32 = vshrl.u32 %v10403_v54, 16  ;;  %v10436_v37 = vcombine.low %v486_v41, %v496_v55  ;;  %v10442_v47 = vld [vmem:[%s10229_s12 + $0x74] sm:$0x1]  ;;  %v10545_v6 = vld [vmem:[%s10229_s12 + $0xa4] sm:$0x1] }
  0x37   : > { %8324 = vmatprep.mubr.bf16.mxu0 %v10390_v36  ;;  %8353 = vmatpush3.bf16.msra.mxu0 %v9858_v24  ;;  %v9860_v24 = vld [vmem:[%s12723_s1 + $0x20] sm:$0xff]   ;;  %v10438_v39 = vcombine.low %v510_v8, %v520_v28  ;;  %v539_v40 = vrot.slane %v538_v20, 4  ;;  %v565_v42 = vshll.u32 %v10414_v1, 16  ;;  %v552_v43 = vor.u32 %v551_v29, %v548_v23  ;;  %12886 = vst [vmem:[#allocation10_spill] sm:$0xff] %v10442_v47  ;;  %v10457_v8 = vld [vmem:[%s10229_s12 + $0x7c] sm:$0xf] }
  0x38   : > { %8354 = vmatprep.subr.bf16.mxu0 %v9859_v60  ;;  %12884 = vst [vmem:[#allocation8_spill] sm:$0xff] %v10436_v37  ;;  %v561_v44 = vrot.slane %v559_v32, 4  ;;  %v570_v49 = vshrl.u32 %v10423_v17, 16  ;;  %v573_v52 = vshll.u32 %v10423_v17, 16  ;;  %v534_v53 = vsel %vm10261_vm2, %v529_v18, %v10407_v59  ;;  %v9861_v59 = vld [vmem:[%s12723_s1 + $0x28] sm:$0xff]   ;;  %12894 = vst [vmem:[#allocation18_spill] sm:$0xff] %v10545_v6 }
  0x39   : > { %12885 = vst [vmem:[#allocation9_spill] sm:$0xff] %v10438_v39  ;;  %v544_v41 = vsel %vm10261_vm2, %v539_v40, %v543_v21  ;;  %v579_v55 = vshll.u32 %v10428_v26, 16  ;;  %v583_v57 = vshrl.u32 %v10428_v26, 16  ;;  %v553_v61 = vrot.slane %v552_v43, 4  ;;  %v10466_v18 = vld [vmem:[%s10229_s12 + $0x80] sm:$0x1] }
  0x3a   : > { %v562_v62 = vor.u32 %v561_v44, %v557_v31  ;;  %v567_v0 = vrot.slane %v565_v42, 5  ;;  %v572_v7 = vrot.slane %v570_v49, 4  ;;  %v575_v11 = vrot.slane %v573_v52, 5  ;;  %12887 = vst [vmem:[#allocation11_spill] sm:$0xff] %v10466_v18  ;;  %v10477_v43 = vld [vmem:[%s10229_s12 + $0x84] sm:$0xf] }
  0x3b   : > { %8355 = vmatpush3.bf16.msra.mxu0 %v9859_v60  ;;  %v10462_v60 = vrot.slane %v579_v55, 5  ;;  %v585_v13 = vrot.slane %v583_v57, 4  ;;  %v589_v14 = vshll.u32 %v10442_v47, 16  ;;  %v558_v20 = vsel %vm10261_vm2, %v553_v61, %v557_v31  ;;  %v10483_v55 = vld [vmem:[%s10229_s12 + $0x88] sm:$0xf]  ;;  %v9862_v57 = vld [vmem:[%s12723_s1 + $0x30] sm:$0xff]  }
  0x3c   : > { %8356 = vmatprep.subr.bf16.mxu0 %v9860_v24  ;;  %v563_v21 = vrot.slane %v562_v62, 4  ;;  %v594_v23 = vshrl.u32 %v10454_v58, 16  ;;  %v597_v28 = vshll.u32 %v10454_v58, 16  ;;  %v576_v29 = vor.u32 %v575_v11, %v572_v7  ;;  %v10531_v36 = vld [vmem:[%s10229_s12 + $0xa0] sm:$0xf] }
  0x3d   : > { %v586_v32 = vor.u32 %v585_v13, %v10462_v60  ;;  %v591_v40 = vrot.slane %v589_v14, 5  ;;  %v603_v42 = vshll.u32 %v10457_v8, 16  ;;  %v607_v52 = vshrl.u32 %v10457_v8, 16  ;;  %v10492_v14 = vld [vmem:[%s10229_s12 + $0x8c] sm:$0x1] }
  0x3e   : > { %8325 = vmatmul.mubr.bf16.gmra.mrb[8].mxu0 %v10436_v37  ;;  %v568_v31 = vsel %vm10261_vm2, %v563_v21, %v567_v0  ;;  %v596_v44 = vrot.slane %v594_v23, 4  ;;  %v599_v49 = vrot.slane %v597_v28, 5  ;;  %v577_v61 = vrot.slane %v576_v29, 4  ;;  %12889 = vst [vmem:[#allocation13_spill] sm:$0xff] %v10492_v14  ;;  %v9863_v23 = vld [vmem:[%s12723_s1 + $0x38] sm:$0xff]  }
  0x3f   : > { %8328 = vmatprep.mubr.bf16.mxu0 %v10438_v39  ;;  %8357 = vmatpush3.bf16.msra.mxu0 %v9860_v24  ;;  %v10488_v24 = vcombine.low %v534_v53, %v544_v41  ;;  %v587_v62 = vrot.slane %v586_v32, 4  ;;  %v605_v7 = vrot.slane %v603_v42, 5  ;;  %v609_v0 = vrot.slane %v607_v52, 4  ;;  %v10506_v32 = vld [vmem:[%s10229_s12 + $0x90] sm:$0xf] }
  0x40   : > { %8358 = vmatprep.subr.bf16.mxu0 %v9861_v59  ;;  %v600_v11 = vor.u32 %v599_v49, %v596_v44  ;;  %v613_v13 = vshll.u32 %v10466_v18, 16  ;;  %v618_v21 = vshrl.u32 %v10477_v43, 16  ;;  %v10498_v28 = vcombine.low %v558_v20, %v568_v31  ;;  %v10509_v42 = vld [vmem:[%s10229_s12 + $0x94] sm:$0xf]  ;;  %v10517_v37 = vld [vmem:[%s10229_s12 + $0x98] sm:$0x1] }
  0x41   : > { %12888 = vst [vmem:[#allocation12_spill] sm:$0xff] %v10488_v24  ;;  %v582_v53 = vsel %vm10261_vm2, %v577_v61, %v10462_v60  ;;  %v621_v41 = vshll.u32 %v10477_v43, 16  ;;  %v627_v29 = vshll.u32 %v10483_v55, 16  ;;  %v592_v44 = vsel %vm10261_vm2, %v587_v62, %v591_v40  ;;  %12891 = vst [vmem:[#allocation15_spill] sm:$0xff] %v10517_v37  ;;  %v10579_v18 = vld [vmem:[%s10229_s12 + $0xb8] sm:$0xf] }
  0x42   : > { %12890 = vst [vmem:[#allocation14_spill] sm:$0xff] %v10498_v28  ;;  %v601_v20 = vrot.slane %v600_v11, 4  ;;  %v610_v31 = vor.u32 %v609_v0, %v605_v7  ;;  %v615_v49 = vrot.slane %v613_v13, 5  ;;  %v620_v52 = vrot.slane %v618_v21, 4 }
  0x43   : > { %8359 = vmatpush3.bf16.msra.mxu0 %v9861_v59  ;;  %v623_v60 = vrot.slane %v621_v41, 5  ;;  %v10513_v61 = vrot.slane %v627_v29, 5  ;;  %v631_v39 = vshrl.u32 %v10483_v55, 16  ;;  %v10520_v59 = vld [vmem:[%s10229_s12 + $0x9c] sm:$0xf]  ;;  %v637_v11 = vshll.u32 %v10492_v14, 16 }
  0x44   : > { %8360 = vmatprep.subr.bf16.mxu0 %v9862_v57  ;;  %v606_v40 = vsel %vm10261_vm2, %v601_v20, %v605_v7  ;;  %v611_v62 = vrot.slane %v610_v31, 4  ;;  %v642_v0 = vshrl.u32 %v10506_v32, 16  ;;  %v645_v41 = vshll.u32 %v10506_v32, 16 }
  0x45   : > { %v624_v13 = vor.u32 %v623_v60, %v620_v52  ;;  %v633_v21 = vrot.slane %v631_v39, 4  ;;  %v651_v29 = vshll.u32 %v10509_v42, 16  ;;  %v639_v20 = vrot.slane %v637_v11, 5  ;;  %v10539_v39 = vld [vmem:[%s12723_s1 + $0x80] sm:$0xff]  }
  0x46   : > { %8329 = vmatmul.mubr.bf16.gmra.mrb[12].mxu0 %v10488_v24  ;;  %v616_v7 = vsel %vm10261_vm2, %v611_v62, %v615_v49  ;;  %v644_v31 = vrot.slane %v642_v0, 4  ;;  %v655_v24 = vshrl.u32 %v10509_v42, 16  ;;  %12892 = vst [vmem:[#allocation16_spill] sm:$0xff] %v10539_v39  ;;  %v10541_v52 = vcombine.low %v582_v53, %v592_v44 }
  0x47   : > { %8332 = vmatprep.mubr.bf16.mxu0 %v10498_v28  ;;  %8361 = vmatpush3.bf16.msra.mxu0 %v9862_v57  ;;  %v625_v60 = vrot.slane %v624_v13, 4  ;;  %v634_v57 = vor.u32 %v633_v21, %v10513_v61  ;;  %v647_v28 = vrot.slane %v645_v41, 5  ;;  %v653_v49 = vrot.slane %v651_v29, 5  ;;  %v10556_v13 = vld [vmem:[%s10229_s12 + $0xac] sm:$0xf] }
  0x48   : > { %8362 = vmatprep.subr.bf16.mxu0 %v9863_v23  ;;  %12893 = vst [vmem:[#allocation17_spill] sm:$0xff] %v10541_v52  ;;  %v657_v62 = vrot.slane %v655_v24, 4  ;;  %v661_v11 = vshll.u32 %v10517_v37, 16  ;;  %v666_v0 = vshrl.u32 %v10520_v59, 16  ;;  %v10552_v3 = vcombine.low %v606_v40, %v616_v7  ;;  %v10572_v37 = vld [vmem:[%s10229_s12 + $0xb4] sm:$0xf] }
  0x49   : > { %v635_v14 = vrot.slane %v634_v57, 4  ;;  %v648_v53 = vor.u32 %v647_v28, %v644_v31  ;;  %v669_v44 = vshll.u32 %v10520_v59, 16  ;;  %v675_v29 = vshll.u32 %v10531_v36, 16  ;;  %v10565_v57 = vld [vmem:[%s10229_s12 + $0xb0] sm:$0x1] }
  0x4a   : > { %12895 = vst [vmem:[#allocation19_spill] sm:$0xff] %v10552_v3  ;;  %v658_v21 = vor.u32 %v657_v62, %v653_v49  ;;  %v663_v41 = vrot.slane %v661_v11, 5  ;;  %v668_v24 = vrot.slane %v666_v0, 4  ;;  %v630_v40 = vsel %vm10261_vm2, %v625_v60, %v10513_v61  ;;  %12896 = vst [vmem:[#allocation20_spill] sm:$0xff] %v10565_v57 }
  0x4b   : > { %8363 = vmatpush3.bf16.msra.mxu0 %v9863_v23  ;;  %v649_v7 = vrot.slane %v648_v53, 4  ;;  %v671_v28 = vrot.slane %v669_v44, 5  ;;  %v679_v31 = vshrl.u32 %v10531_v36, 16  ;;  %v640_v23 = vsel %vm10261_vm2, %v635_v14, %v639_v20 }
  0x4c   : > { %8396 = vmatprep.subr.bf16.mxu0 %v10539_v39  ;;  %v659_v62 = vrot.slane %v658_v21, 4  ;;  %v677_v11 = vrot.slane %v675_v29, 5  ;;  %v685_v0 = vshll.u32 %v10545_v6, 16  ;;  %v690_v44 = vshrl.u32 %v10550_v33, 16 }
  0x4d   : > { %v654_v61 = vsel %vm10261_vm2, %v649_v7, %v653_v49  ;;  %v672_v60 = vor.u32 %v671_v28, %v668_v24  ;;  %v681_v53 = vrot.slane %v679_v31, 4  ;;  %v693_v21 = vshll.u32 %v10550_v33, 16 }
  0x4e   : > { %8333 = vmatmul.mubr.bf16.gmra.mrb[16].mxu0 %v10541_v52  ;;  %v664_v14 = vsel %vm10261_vm2, %v659_v62, %v663_v41  ;;  %v687_v20 = vrot.slane %v685_v0, 5  ;;  %v699_v29 = vshll.u32 %v10556_v13, 16  ;;  %v10585_v52 = vcombine.low %v630_v40, %v640_v23 }
  0x4f   : > { %8336 = vmatprep.mubr.bf16.mxu0 %v10552_v3  ;;  %v673_v3 = vrot.slane %v672_v60, 4  ;;  %v682_v6 = vor.u32 %v681_v53, %v677_v11  ;;  %v692_v49 = vrot.slane %v690_v44, 4  ;;  %v695_v24 = vrot.slane %v693_v21, 5  ;;  %v10596_v53 = vld [vmem:[%s10229_s12 + $0xbc] sm:$0x1] }
  0x50   : > { %12897 = vst [vmem:[#allocation21_spill] sm:$0xff] %v10585_v52  ;;  %v701_v7 = vrot.slane %v699_v29, 5  ;;  %v703_v28 = vshrl.u32 %v10556_v13, 16  ;;  %v709_v31 = vshll.u32 %v10565_v57, 16  ;;  %v10589_v39 = vcombine.low %v654_v61, %v664_v14 }
  0x51   : > { %v683_v41 = vrot.slane %v682_v6, 4  ;;  %v714_v62 = vshrl.u32 %v10572_v37, 16  ;;  %v717_v0 = vshll.u32 %v10572_v37, 16  ;;  %v678_v40 = vsel %vm10261_vm2, %v673_v3, %v677_v11 }
  0x52   : > { %12898 = vst [vmem:[#allocation22_spill] sm:$0xff] %v10589_v39  ;;  %v696_v23 = vor.u32 %v695_v24, %v692_v49  ;;  %v705_v60 = vrot.slane %v703_v28, 4  ;;  %v723_v44 = vshll.u32 %v10579_v18, 16  ;;  %v711_v21 = vrot.slane %v709_v31, 5 }
  0x53   : > { %v716_v29 = vrot.slane %v714_v62, 4  ;;  %v719_v47 = vrot.slane %v717_v0, 5  ;;  %v727_v61 = vshrl.u32 %v10579_v18, 16  ;;  %v688_v6 = vsel %vm10261_vm2, %v683_v41, %v687_v20 }
  0x54   : > { %v697_v14 = vrot.slane %v696_v23, 4  ;;  %v706_v57 = vor.u32 %v705_v60, %v701_v7  ;;  %v725_v1 = vrot.slane %v723_v44, 5  ;;  %v733_v49 = vshll.u32 %v10596_v53, 16 }
  0x55   : > { %v720_v3 = vor.u32 %v719_v47, %v716_v29  ;;  %v729_v11 = vrot.slane %v727_v61, 4  ;;  %v10609_v31 = vcombine.low %v10281_v46, %v10287_v51  ;;  %v10611_v62 = vcombine.low %v678_v40, %v688_v6 }
  0x56   : > { %8337 = vmatmul.mubr.bf16.gmra.mrb[20].mxu0 %v10585_v52  ;;  %v702_v24 = vsel %vm10261_vm2, %v697_v14, %v701_v7  ;;  %v707_v28 = vrot.slane %v706_v57, 4  ;;  %v10615_v0 = vcombine.low %v10303_v2, %v10308_v9  ;;  %v10621_v23 = vcombine.low %v10322_v22, %v10332_v38 }
  0x57   : > { %8340 = vmatprep.mubr.bf16.mxu0 %v10589_v39  ;;  %12899 = vst [vmem:[#allocation23_spill] sm:$0xff] %v10611_v62  ;;  %v721_v20 = vrot.slane %v720_v3, 4  ;;  %v730_v41 = vor.u32 %v729_v11, %v725_v1  ;;  %v10625_v57 = vcombine.low %v10346_v50, %v10350_v56  ;;  %v10629_v7 = vcombine.low %v10375_v19, %v10383_v27  ;;  %v9941_v39 = vld [vmem:[%s12725_s3 + $0x58] sm:$0xff]  }
  0x58   : > { %v712_v47 = vsel %vm10261_vm2, %v707_v28, %v711_v21  ;;  %v735_v44 = vrot.slane %v733_v49, 5  ;;  %v10635_v29 = vcombine.low %v10399_v45, %v10403_v54  ;;  %v10639_v21 = vcombine.low %v10423_v17, %v10428_v26 }
  0x59   : > { %v10631_v40 = vcombine.low %v702_v24, %v712_v47  ;;  %v731_v60 = vrot.slane %v730_v41, 4  ;;  %v10643_v61 = vcombine.low %v10454_v58, %v10457_v8  ;;  %v10647_v6 = vcombine.low %v10477_v43, %v10483_v55 }
  0x5a   : > { %v10651_v14 = vcombine.low %v10506_v32, %v10509_v42  ;;  %v10655_v3 = vcombine.low %v10520_v59, %v10531_v36  ;;  %v10659_v11 = vcombine.low %v10550_v33, %v10556_v13  ;;  %v10663_v49 = vcombine.low %v10572_v37, %v10579_v18 }
  0x5b   : > { %12900 = vst [vmem:[#allocation24_spill] sm:$0xff] %v10631_v40  ;;  %v726_v24 = vsel %vm10261_vm2, %v721_v20, %v725_v1  ;;  %v736_v28 = vsel %vm10261_vm2, %v731_v60, %v735_v44  ;;  %v7361_v41 = vrot.slane %v10281_v46, 9  ;;  %v1374_v47 = vrot.slane %v10287_v51, 5 }
  0x5c   : > { %v10677_v52 = vcombine.low %v726_v24, %v736_v28  ;;  %v7334_v1 = vcombine.low %v10235_v4, %v10238_v5  ;;  %v1377_v20 = vrot.slane %v10298_v63, 5  ;;  %v7362_v60 = vrot.slane %v10303_v2, 9 }
  0x5d   : > { %v10687_v46 = vcombine.low %v10246_v12, %v10249_v15  ;;  %v1381_v51 = vrot.slane %v10308_v9, 5  ;;  %v10692_v44 = vcombine.low %v10266_v30, %v10269_v35  ;;  %v1384_v28 = vrot.slane %v10312_v16, 5 }
  0x5e   : > { %8341 = vmatmul.mubr.bf16.gmra.mrb[24].mxu0 %v10611_v62  ;;  %12903 = vst [vmem:[#allocation25_spill] sm:$0xff] %v10677_v52  ;;  %v1375_v62 = vsel %vm10673_vm5, %v7361_v41, %v1374_v47  ;;  %v7363_v4 = vrot.slane %v10322_v22, 9  ;;  %v1388_v63 = vrot.slane %v10332_v38, 5  ;;  %v1391_v30 = vrot.slane %v10342_v48, 5 }
  0x5f   : > { %8344 = vmatprep.mubr.bf16.mxu0 %v10631_v40  ;;  %v1376_v40 = vrot.slane %v1374_v47, 4  ;;  %v1382_v12 = vsel %vm10673_vm5, %v7362_v60, %v1381_v51  ;;  %v1383_v15 = vrot.slane %v1381_v51, 4  ;;  %v7364_v35 = vrot.slane %v10346_v50, 9 }
  0x60   : > { %v1395_v2 = vrot.slane %v10350_v56, 5  ;;  %v1398_v9 = vrot.slane %v10364_v10, 5  ;;  %v1389_v22 = vsel %vm10673_vm5, %v7363_v4, %v1388_v63  ;;  %v1402_v50 = vrot.slane %v10383_v27, 5 }
  0x61   : > { %v1378_v24 = vsel %vm10673_vm5, %v1376_v40, %v1377_v20  ;;  %v1385_v16 = vsel %vm10673_vm5, %v1383_v15, %v1384_v28  ;;  %v7365_v40 = vrot.slane %v10375_v19, 9  ;;  %v1405_v10 = vrot.slane %v10388_v34, 5  ;;  %v9869_v19 = vld [vmem:[%s12723_s1 + $0x88] sm:$0xff]  }
  0x62   : > { %v10699_v5 = vcombine.low %v1375_v62, %v1378_v24  ;;  %v1390_v62 = vrot.slane %v1388_v63, 4  ;;  %v10713_v41 = vcombine.low %v1382_v12, %v1385_v16  ;;  %v1396_v38 = vsel %vm10673_vm5, %v7364_v35, %v1395_v2  ;;  %v12905_v63 = vld [vmem:[#allocation10_spill] sm:$0xff] }
  0x63   : > { %v1397_v48 = vrot.slane %v1395_v2, 4  ;;  %v7366_v47 = vrot.slane %v10399_v45, 9  ;;  %v1403_v27 = vsel %vm10673_vm5, %v7365_v40, %v1402_v50  ;;  %v1404_v51 = vrot.slane %v1402_v50, 4  ;;  %v12907_v40 = vld [vmem:[#allocation11_spill] sm:$0xff] }
  0x64   : > { %v1392_v56 = vsel %vm10673_vm5, %v1390_v62, %v1391_v30  ;;  %v7367_v12 = vrot.slane %v10423_v17, 9  ;;  %v1416_v15 = vrot.slane %v10428_v26, 5  ;;  %v1419_v30 = vrot.slane %v12905_v63, 5  ;;  %v12910_v63 = vld [vmem:[#allocation18_spill] sm:$0xff] }
  0x65   : > { %v10726_v20 = vcombine.low %v1389_v22, %v1392_v56  ;;  %v1399_v60 = vsel %vm10673_vm5, %v1397_v48, %v1398_v9  ;;  %v1406_v4 = vsel %vm10673_vm5, %v1404_v51, %v1405_v10  ;;  %v7368_v9 = vrot.slane %v10454_v58, 9  ;;  %v12906_v22 = vld [vmem:[#allocation16_spill] sm:$0xff]  ;;  %v9872_v48 = vld [vmem:[%s12723_s1 + $0x90] sm:$0xff]  }
  0x66   : > { %8345 = vmatmul.mubr.bf16.gmra.mrb[28].mxu0 %v10677_v52  ;;  %v10732_v24 = vcombine.low %v1396_v38, %v1399_v60  ;;  %v10743_v35 = vcombine.low %v1403_v27, %v1406_v4  ;;  %v1423_v16 = vrot.slane %v10457_v8, 5  ;;  %v1417_v26 = vsel %vm10673_vm5, %v7367_v12, %v1416_v15  ;;  %v12909_v4 = vld [vmem:[#allocation15_spill] sm:$0xff] }
  0x67   : > { %8364 = vmatprep.mubr.bf16.mxu0 %v7334_v1  ;;  %v1409_v1 = vrot.slane %v10403_v54, 5  ;;  %v12904_v54 = vld [vmem:[#allocation7_spill] sm:$0xff]  ;;  %v1418_v62 = vrot.slane %v1416_v15, 4  ;;  %v1426_v38 = vrot.slane %v12907_v40, 5  ;;  %v7369_v50 = vrot.slane %v10477_v43, 9 }
  0x68   : > { %v1412_v28 = vrot.slane %v12904_v54, 5  ;;  %v1424_v58 = vsel %vm10673_vm5, %v7368_v9, %v1423_v16  ;;  %v1425_v8 = vrot.slane %v1423_v16, 4  ;;  %v1430_v56 = vrot.slane %v10483_v55, 5 }
  0x69   : > { %v1410_v34 = vsel %vm10673_vm5, %v7366_v47, %v1409_v1  ;;  %v1411_v45 = vrot.slane %v1409_v1, 4  ;;  %v1420_v10 = vsel %vm10673_vm5, %v1418_v62, %v1419_v30  ;;  %v12908_v47 = vld [vmem:[#allocation13_spill] sm:$0xff]  ;;  %v7370_v60 = vrot.slane %v10506_v32, 9 }
  0x6a   : > { %v1433_v1 = vrot.slane %v12908_v47, 5  ;;  %v1437_v27 = vrot.slane %v10509_v42, 5  ;;  %v10768_v51 = vcombine.low %v1417_v26, %v1420_v10  ;;  %v1432_v43 = vrot.slane %v1430_v56, 4  ;;  %v9875_v42 = vld [vmem:[%s12723_s1 + $0x98] sm:$0xff]  }
  0x6b   : > { %v1413_v2 = vsel %vm10673_vm5, %v1411_v45, %v1412_v28  ;;  %v1431_v45 = vsel %vm10673_vm5, %v7369_v50, %v1430_v56  ;;  %v1440_v32 = vrot.slane %v12909_v4, 5  ;;  %v7371_v15 = vrot.slane %v10520_v59, 9  ;;  %v9888_v4 = vld [vmem:[%s12723_s1 + $0xc0] sm:$0xff]  }
  0x6c   : > { %v10751_v17 = vcombine.low %v1410_v34, %v1413_v2  ;;  %v1427_v34 = vsel %vm10673_vm5, %v1425_v8, %v1426_v38  ;;  %v1438_v54 = vsel %vm10673_vm5, %v7370_v60, %v1437_v27  ;;  %v1439_v28 = vrot.slane %v1437_v27, 4  ;;  %v9878_v8 = vld [vmem:[%s12723_s1 + $0xa0] sm:$0xff]   ;;  %v10146_v27 = vld [vmem:[%s10229_s12 + $0x8] sm:$0x1] }
  0x6d   : > { %v10774_v55 = vcombine.low %v1424_v58, %v1427_v34  ;;  %v1434_v12 = vsel %vm10673_vm5, %v1432_v43, %v1433_v1  ;;  %v1447_v30 = vrot.slane %v12910_v63, 5  ;;  %v7372_v16 = vrot.slane %v10550_v33, 9  ;;  %v9887_v43 = vld [vmem:[%s12723_s1 + $0xb8] sm:$0xff]  }
  0x6e   : > { %8365 = vmatmul.mubr.bf16.vlgmr.msra.gmra.mrb[0].mxu0 %v10687_v46  ;;  %v10787_v2 = vcombine.low %v1431_v45, %v1434_v12  ;;  %v1441_v9 = vsel %vm10673_vm5, %v1439_v28, %v1440_v32  ;;  %v7373_v33 = vrot.slane %v10572_v37, 9  ;;  %v1461_v56 = vrot.slane %v10596_v53, 5  ;;  %v9884_v45 = vld [vmem:[%s12723_s1 + $0xb0] sm:$0xff]   ;;  %v10148_v32 = vld [vmem:[%s10229_s12 + $0x4] sm:$0xf] }
  0x6f   : > { %8397 = vmatpush3.bf16.msra.mxu0 %v12906_v22  ;;  %8368 = vmatprep.mubr.bf16.mxu0 %v10692_v44  ;;  %v1451_v22 = vrot.slane %v10556_v13, 5  ;;  %v10794_v26 = vcombine.low %v1438_v54, %v1441_v9  ;;  %v1458_v13 = vrot.slane %v10579_v18, 5  ;;  %v9881_v18 = vld [vmem:[%s12723_s1 + $0xa8] sm:$0xff]   ;;  %v1356_v34 = vrot.slane %v10146_v27, 5  ;;  %v10147_v54 = vld [vmem:[%s10229_s12] sm:$0xf] }
  0x70   : > { %8398 = vmatprep.subr.bf16.mxu0 %v9869_v19  ;;  %v7358_v28 = vrot.slane %v10147_v54, 9  ;;  %v10149_v12 = vld [vmem:[%s10229_s12 + $0x10] sm:$0xf]  ;;  %v10150_v63 = vld [vmem:[%s10229_s12 + $0x1c] sm:$0xf]  ;;  %v9893_v54 = vld [vmem:[%s12723_s1 + $0xe8] sm:$0xff]  }
  0x71   : > { %v1452_v38 = vsel %vm10673_vm5, %v7372_v16, %v1451_v22  ;;  %v1453_v58 = vrot.slane %v1451_v22, 4  ;;  %v1459_v37 = vsel %vm10673_vm5, %v7373_v33, %v1458_v13  ;;  %v1460_v47 = vrot.slane %v1458_v13, 4  ;;  %v10151_v9 = vld [vmem:[%s10229_s12 + $0x14] sm:$0x1]  ;;  %v10152_v22 = vld [vmem:[%s10229_s12 + $0xc] sm:$0xf] }
  0x72   : > { %v1363_v16 = vrot.slane %v10151_v9, 5  ;;  %v9905_v9 = vld [vmem:[%s12723_s1 + $0x140] sm:$0xff]  }
  0x73   : > { %8399 = vmatpush3.bf16.msra.mxu0 %v9869_v19  ;;  %v1444_v19 = vrot.slane %v10531_v36, 5  ;;  %v12911_v36 = vld [vmem:[#allocation20_spill] sm:$0xff]  ;;  %v1462_v53 = vsel %vm10673_vm5, %v1460_v47, %v1461_v56 }
  0x74   : > { %8400 = vmatprep.subr.bf16.mxu0 %v9872_v48  ;;  %v1454_v40 = vrot.slane %v12911_v36, 5  ;;  %v10823_v60 = vcombine.low %v1459_v37, %v1462_v53  ;;  %v10153_v36 = vld [vmem:[%s10229_s12 + $0x18] sm:$0xf]  ;;  %v9889_v53 = vld [vmem:[%s12723_s1 + $0xc8] sm:$0xff]  }
  0x75   : > { %v1445_v59 = vsel %vm10673_vm5, %v7371_v15, %v1444_v19  ;;  %v1446_v62 = vrot.slane %v1444_v19, 4  ;;  %v1360_v15 = vrot.slane %v10149_v12, 5  ;;  %v9898_v12 = vld [vmem:[%s12723_s1 + $0x110] sm:$0xff]  }
  0x76   : > { %8369 = vmatmul.mubr.bf16.gmra.mrb[4].mxu0 %v10609_v31  ;;  %v1455_v10 = vsel %vm10673_vm5, %v1453_v58, %v1454_v40  ;;  %v7360_v40 = vrot.slane %v10153_v36, 9  ;;  %v10154_v58 = vld [vmem:[%s10229_s12 + $0x20] sm:$0x1]  ;;  %v9906_v36 = vld [vmem:[%s12723_s1 + $0x148] sm:$0xff]  }
  0x77   : > { %8372 = vmatprep.mubr.bf16.mxu0 %v10615_v0  ;;  %8401 = vmatpush3.bf16.msra.mxu0 %v9872_v48  ;;  %v1448_v50 = vsel %vm10673_vm5, %v1446_v62, %v1447_v30  ;;  %v10819_v1 = vcombine.low %v1452_v38, %v1455_v10  ;;  %v1367_v30 = vrot.slane %v10150_v63, 5  ;;  %v1362_v62 = vrot.slane %v1360_v15, 4  ;;  %v9902_v63 = vld [vmem:[%s12723_s1 + $0x130] sm:$0xff]  }
  0x78   : > { %8402 = vmatprep.subr.bf16.mxu0 %v9875_v42  ;;  %v10810_v48 = vcombine.low %v1445_v59, %v1448_v50  ;;  %v7359_v59 = vrot.slane %v10152_v22, 9  ;;  %v1370_v33 = vrot.slane %v10154_v58, 5  ;;  %v10952_v22 = vld [vmem:[%s10229_s12 + $0xc4] sm:$0xf]  ;;  %v9907_v58 = vld [vmem:[%s12723_s1 + $0x150] sm:$0xff]  }
  0x79   : > { %v1369_v38 = vrot.slane %v1367_v30, 4  ;;  %v1364_v10 = vsel %vm10673_vm5, %v1362_v62, %v1363_v16  ;;  %v1368_v37 = vsel %vm10673_vm5, %v7360_v40, %v1367_v30  ;;  %v9904_v30 = vld [vmem:[%s12723_s1 + $0x138] sm:$0xff]   ;;  %v10949_v16 = vld [vmem:[%s10229_s12 + $0xc0] sm:$0xf]  ;;  %v12913_v40 = vld [vmem:[#allocation4_spill] sm:$0xff] }
  0x7a   : > { %v1361_v56 = vsel %vm10673_vm5, %v7359_v59, %v1360_v15  ;;  %v9900_v15 = vld [vmem:[%s12723_s1 + $0x120] sm:$0xff]   ;;  %v10956_v59 = vcombine.low %v10949_v16, %v10952_v22 }
  0x7b   : > { %8403 = vmatpush3.bf16.msra.mxu0 %v9875_v42  ;;  %v1353_v42 = vrot.slane %v10148_v32, 5  ;;  %v1371_v47 = vsel %vm10673_vm5, %v1369_v38, %v1370_v33  ;;  %v9896_v32 = vld [vmem:[%s12723_s1 + $0x100] sm:$0xff]   ;;  %v12914_v38 = vld [vmem:[#allocation5_spill] sm:$0xff]  ;;  %v9908_v33 = vld [vmem:[%s12723_s1 + $0x158] sm:$0xff]  }
  0x7c   : > { %8404 = vmatprep.subr.bf16.mxu0 %v9878_v8  ;;  %v10871_v27 = vcombine.low %v1368_v37, %v1371_v47  ;;  %v12912_v62 = vld [vmem:[#allocation3_spill] sm:$0xff]  ;;  %v12918_v37 = vld [vmem:[#allocation12_spill] sm:$0xff]  ;;  %v9911_v47 = vld [vmem:[%s12723_s1 + $0x170] sm:$0xff]  }
  0x7d   : > { %v1355_v19 = vrot.slane %v1353_v42, 4  ;;  %v1354_v13 = vsel %vm10673_vm5, %v7358_v28, %v1353_v42  ;;  %v9894_v28 = vld [vmem:[%s12723_s1 + $0xf0] sm:$0xff]   ;;  %v9897_v42 = vld [vmem:[%s12723_s1 + $0x108] sm:$0xff]  }
  0x7e   : > { %8373 = vmatmul.mubr.bf16.gmra.mrb[8].mxu0 %v10621_v23 }
  0x7f   : > { %8376 = vmatprep.mubr.bf16.mxu0 %v10625_v57  ;;  %8405 = vmatpush3.bf16.msra.mxu0 %v9878_v8  ;;  %v1357_v8 = vsel %vm10673_vm5, %v1355_v19, %v1356_v34  ;;  %v9890_v34 = vld [vmem:[%s12723_s1 + $0xd0] sm:$0xff]   ;;  %v9901_v19 = vld [vmem:[%s12723_s1 + $0x128] sm:$0xff]  }
  0x80   : > { %8406 = vmatprep.subr.bf16.mxu0 %v9881_v18  ;;  %v7390_v50 = vcombine.low %v1354_v13, %v1357_v8  ;;  %v12915_v13 = vld [vmem:[#allocation6_spill] sm:$0xff]  ;;  %v12916_v8 = vld [vmem:[#allocation8_spill] sm:$0xff] }
  0x83   : > { %8407 = vmatpush3.bf16.msra.mxu0 %v9881_v18  ;;  %v10866_v18 = vcombine.low %v1361_v56, %v1364_v10  ;;  %v9910_v56 = vld [vmem:[%s12723_s1 + $0x168] sm:$0xff]   ;;  %v12917_v10 = vld [vmem:[#allocation9_spill] sm:$0xff] }
  0x84   : > { %8408 = vmatprep.subr.bf16.mxu0 %v9884_v45 }
  0x86   : > { %8377 = vmatmul.mubr.bf16.gmra.mrb[12].mxu0 %v10629_v7 }
  0x87   : > { %8380 = vmatprep.mubr.bf16.mxu0 %v10635_v29  ;;  %8409 = vmatpush3.bf16.msra.mxu0 %v9884_v45  ;;  %v9891_v45 = vld [vmem:[%s12723_s1 + $0xd8] sm:$0xff]  }
  0x88   : > { %8410 = vmatprep.subr.bf16.mxu0 %v9887_v43 }
  0x8b   : > { %8411 = vmatpush3.bf16.msra.mxu0 %v9887_v43  ;;  %v9892_v43 = vld [vmem:[%s12723_s1 + $0xe0] sm:$0xff]  }
  0x8c   : > { %8444 = vmatprep.subr.bf16.mxu0 %v9888_v4 }
  0x8e   : > { %8381 = vmatmul.mubr.bf16.gmra.mrb[16].mxu0 %v10639_v21 }
  0x8f   : > { %8384 = vmatprep.mubr.bf16.mxu0 %v10643_v61 }
  0x96   : > { %8385 = vmatmul.mubr.bf16.gmra.mrb[20].mxu0 %v10647_v6 }
  0x97   : > { %8388 = vmatprep.mubr.bf16.mxu0 %v10651_v14 }
  0x9e   : > { %8389 = vmatmul.mubr.bf16.gmra.mrb[24].mxu0 %v10655_v3 }
  0x9f   : > { %8392 = vmatprep.mubr.bf16.mxu0 %v10659_v11 }
  0xa6   : > { %8393 = vmatmul.mubr.bf16.gmra.mrb[28].mxu0 %v10663_v49 }
  0xa7   : > { %8412 = vmatprep.mubr.bf16.mxu0 %v7390_v50  ;;  %v9909_v50 = vld [vmem:[%s12723_s1 + $0x160] sm:$0xff]  }
  0xae   : > { %8413 = vmatmul.mubr.bf16.vlgmr.msra.gmra.mrb[0].mxu0 %v10866_v18 }
  0xaf   : > { %8445 = vmatpush3.bf16.msra.mxu0 %v9888_v4  ;;  %8416 = vmatprep.mubr.bf16.mxu0 %v10871_v27  ;;  %v9895_v4 = vld [vmem:[%s12723_s1 + $0xf8] sm:$0xff]  }
  0xb0   : > { %8446 = vmatprep.subr.bf16.mxu0 %v9889_v53 }
  0xb3   : > { %8447 = vmatpush3.bf16.msra.mxu0 %v9889_v53  ;;  %v9912_v53 = vld [vmem:[%s12723_s1 + $0x178] sm:$0xff]  }
  0xb4   : > { %8448 = vmatprep.subr.bf16.mxu0 %v9890_v34 }
  0xb6   : > { %8417 = vmatmul.mubr.bf16.gmra.mrb[4].mxu0 %v10699_v5 }
  0xb7   : > { %8420 = vmatprep.mubr.bf16.mxu0 %v10713_v41  ;;  %8449 = vmatpush3.bf16.msra.mxu0 %v9890_v34  ;;  %v12919_v34 = vld [vmem:[#allocation14_spill] sm:$0xff] }
  0xb8   : > { %8450 = vmatprep.subr.bf16.mxu0 %v9891_v45 }
  0xbb   : > { %8451 = vmatpush3.bf16.msra.mxu0 %v9891_v45  ;;  %v12920_v45 = vld [vmem:[#allocation17_spill] sm:$0xff] }
  0xbc   : > { %8452 = vmatprep.subr.bf16.mxu0 %v9892_v43 }
  0xbe   : > { %8421 = vmatmul.mubr.bf16.gmra.mrb[8].mxu0 %v10726_v20 }
  0xbf   : > { %8424 = vmatprep.mubr.bf16.mxu0 %v10732_v24  ;;  %8453 = vmatpush3.bf16.msra.mxu0 %v9892_v43  ;;  %v9913_v43 = vld [vmem:[%s12723_s1 + $0x180] sm:$0xff]  }
  0xc0   : > { %8454 = vmatprep.subr.bf16.mxu0 %v9893_v54 }
  0xc3   : > { %8455 = vmatpush3.bf16.msra.mxu0 %v9893_v54  ;;  %v12921_v54 = vld [vmem:[#allocation19_spill] sm:$0xff] }
  0xc4   : > { %8456 = vmatprep.subr.bf16.mxu0 %v9894_v28 }
  0xc6   : > { %8425 = vmatmul.mubr.bf16.gmra.mrb[12].mxu0 %v10743_v35 }
  0xc7   : > { %8428 = vmatprep.mubr.bf16.mxu0 %v10751_v17  ;;  %8457 = vmatpush3.bf16.msra.mxu0 %v9894_v28  ;;  %v2050_v28 = vshrl.u32 %v10949_v16, 16 }
  0xc8   : > { %8458 = vmatprep.subr.bf16.mxu0 %v9895_v4 }
  0xcb   : > { %8459 = vmatpush3.bf16.msra.mxu0 %v9895_v4  ;;  %v2053_v4 = vshll.u32 %v10949_v16, 16 }
  0xcc   : > { %8492 = vmatprep.subr.bf16.mxu0 %v9896_v32 }
  0xce   : > { %8429 = vmatmul.mubr.bf16.gmra.mrb[16].mxu0 %v10768_v51 }
  0xcf   : > { %8432 = vmatprep.mubr.bf16.mxu0 %v10774_v55 }
  0xd6   : > { %8433 = vmatmul.mubr.bf16.gmra.mrb[20].mxu0 %v10787_v2 }
  0xd7   : > { %8436 = vmatprep.mubr.bf16.mxu0 %v10794_v26 }
  0xde   : > { %8437 = vmatmul.mubr.bf16.gmra.mrb[24].mxu0 %v10810_v48 }
  0xdf   : > { %8440 = vmatprep.mubr.bf16.mxu0 %v10819_v1 }
  0xe6   : > { %8441 = vmatmul.mubr.bf16.gmra.mrb[28].mxu0 %v10823_v60 }
  0xe7   : > { %8460 = vmatprep.mubr.bf16.mxu0 %v10687_v46  ;;  %v9899_v46 = vld [vmem:[%s12723_s1 + $0x118] sm:$0xff]  }
  0xee   : > { %8461 = vmatmul.mubr.bf16.vlgmr.msra.gmra.mrb[0].mxu0 %v10692_v44 }
  0xef   : > { %8493 = vmatpush3.bf16.msra.mxu0 %v9896_v32  ;;  %8464 = vmatprep.mubr.bf16.mxu0 %v10609_v31  ;;  %v2063_v32 = vshrl.u32 %v10952_v22, 16 }
  0xf0   : > { %8494 = vmatprep.subr.bf16.mxu0 %v9897_v42 }
  0xf3   : > { %8495 = vmatpush3.bf16.msra.mxu0 %v9897_v42  ;;  %v12922_v42 = vld [vmem:[#allocation21_spill] sm:$0xff] }
  0xf4   : > { %8496 = vmatprep.subr.bf16.mxu0 %v9898_v12 }
  0xf6   : > { %8465 = vmatmul.mubr.bf16.gmra.mrb[4].mxu0 %v10615_v0 }
  0xf7   : > { %8468 = vmatprep.mubr.bf16.mxu0 %v10621_v23  ;;  %8497 = vmatpush3.bf16.msra.mxu0 %v9898_v12  ;;  %v2059_v12 = vshll.u32 %v10952_v22, 16 }
  0xf8   : > { %8498 = vmatprep.subr.bf16.mxu0 %v9899_v46 }
  0xfb   : > { %8499 = vmatpush3.bf16.msra.mxu0 %v9899_v46  ;;  %v2052_v46 = vrot.slane %v2050_v28, 4 }
  0xfc   : > { %8500 = vmatprep.subr.bf16.mxu0 %v9900_v15 }
  0xfe   : > { %8469 = vmatmul.mubr.bf16.gmra.mrb[8].mxu0 %v10625_v57 }
  0xff   : > { %8472 = vmatprep.mubr.bf16.mxu0 %v10629_v7  ;;  %8501 = vmatpush3.bf16.msra.mxu0 %v9900_v15  ;;  %v2055_v15 = vrot.slane %v2053_v4, 5 }
 0x100   : > { %8502 = vmatprep.subr.bf16.mxu0 %v9901_v19 }
 0x103   : > { %8503 = vmatpush3.bf16.msra.mxu0 %v9901_v19  ;;  %v2061_v19 = vrot.slane %v2059_v12, 5  ;;  %v9914_v12 = vld [vmem:[%s12723_s1 + $0x188] sm:$0xff]  }
 0x104   : > { %8504 = vmatprep.subr.bf16.mxu0 %v9902_v63 }
 0x106   : > { %8473 = vmatmul.mubr.bf16.gmra.mrb[12].mxu0 %v10635_v29 }
 0x107   : > { %8476 = vmatprep.mubr.bf16.mxu0 %v10639_v21  ;;  %8505 = vmatpush3.bf16.msra.mxu0 %v9902_v63  ;;  %v2065_v63 = vrot.slane %v2063_v32, 4 }
 0x108   : > { %8506 = vmatprep.subr.bf16.mxu0 %v9904_v30 }
 0x10b   : > { %8507 = vmatpush3.bf16.msra.mxu0 %v9904_v30  ;;  %v330_v30 = vld [vmem:[%s10229_s12 + $0xc8] sm:$0x1] }
 0x10c   : > { %8540 = vmatprep.subr.bf16.mxu0 %v9905_v9 }
 0x10e   : > { %8477 = vmatmul.mubr.bf16.gmra.mrb[16].mxu0 %v10643_v61 }
 0x10f   : > { %8480 = vmatprep.mubr.bf16.mxu0 %v10647_v6 }
 0x116   : > { %8481 = vmatmul.mubr.bf16.gmra.mrb[20].mxu0 %v10651_v14 }
 0x117   : > { %8484 = vmatprep.mubr.bf16.mxu0 %v10655_v3 }
 0x11e   : > { %8485 = vmatmul.mubr.bf16.gmra.mrb[24].mxu0 %v10659_v11 }
 0x11f   : > { %8488 = vmatprep.mubr.bf16.mxu0 %v10663_v49 }
 0x126   : > { %8489 = vmatmul.mubr.bf16.gmra.mrb[28].mxu0 %v10956_v59 }
 0x127   : > { %8508 = vmatprep.mubr.bf16.mxu0 %v12912_v62  ;;  %v12925_v62 = vld [vmem:[#allocation24_spill] sm:$0xff] }
 0x12e   : > { %8509 = vmatmul.mubr.bf16.vlgmr.msra.gmra.mrb[0].mxu0 %v12913_v40 }
 0x12f   : > { %8541 = vmatpush3.bf16.msra.mxu0 %v9905_v9  ;;  %8512 = vmatprep.mubr.bf16.mxu0 %v12914_v38  ;;  %v12923_v9 = vld [vmem:[#allocation22_spill] sm:$0xff] }
 0x130   : > { %8542 = vmatprep.subr.bf16.mxu0 %v9906_v36 }
 0x133   : > { %8543 = vmatpush3.bf16.msra.mxu0 %v9906_v36  ;;  %v12924_v36 = vld [vmem:[#allocation23_spill] sm:$0xff] }
 0x134   : > { %8544 = vmatprep.subr.bf16.mxu0 %v9907_v58 }
 0x136   : > { %8513 = vmatmul.mubr.bf16.gmra.mrb[4].mxu0 %v12915_v13 }
 0x137   : > { %8516 = vmatprep.mubr.bf16.mxu0 %v12916_v8  ;;  %8545 = vmatpush3.bf16.msra.mxu0 %v9907_v58  ;;  %v2056_v58 = vor.u32 %v2055_v15, %v2052_v46  ;;  %v9915_v46 = vld [vmem:[%s12723_s1 + $0x190] sm:$0xff]   ;;  %v9918_v15 = vld [vmem:[%s12723_s1 + $0x1a8] sm:$0xff]  }
 0x138   : > { %8546 = vmatprep.subr.bf16.mxu0 %v9908_v33 }
 0x13b   : > { %8547 = vmatpush3.bf16.msra.mxu0 %v9908_v33  ;;  %v2066_v33 = vor.u32 %v2065_v63, %v2061_v19  ;;  %v9920_v63 = vld [vmem:[%s12723_s1 + $0x1b8] sm:$0xff]  }
 0x13c   : > { %8548 = vmatprep.subr.bf16.mxu0 %v9909_v50 }
 0x13e   : > { %8517 = vmatmul.mubr.bf16.gmra.mrb[8].mxu0 %v12917_v10 }
 0x13f   : > { %8520 = vmatprep.mubr.bf16.mxu0 %v12918_v37  ;;  %8549 = vmatpush3.bf16.msra.mxu0 %v9909_v50  ;;  %v2069_v50 = vshll.u32 %v330_v30, 16 }
 0x140   : > { %8550 = vmatprep.subr.bf16.mxu0 %v9910_v56 }
 0x143   : > { %8551 = vmatpush3.bf16.msra.mxu0 %v9910_v56  ;;  %v2057_v56 = vrot.slane %v2056_v58, 4  ;;  %v9921_v58 = vld [vmem:[%s12723_s1 + $0x1c0] sm:$0xff]  }
 0x144   : > { %8552 = vmatprep.subr.bf16.mxu0 %v9911_v47 }
 0x145   : > { %v2062_v28 = vsel %vm10261_vm2, %v2057_v56, %v2061_v19  ;;  %v9919_v19 = vld [vmem:[%s12723_s1 + $0x1b0] sm:$0xff]  }
 0x146   : > { %8521 = vmatmul.mubr.bf16.gmra.mrb[12].mxu0 %v12919_v34 }
 0x147   : > { %8524 = vmatprep.mubr.bf16.mxu0 %v12920_v45  ;;  %8553 = vmatpush3.bf16.msra.mxu0 %v9911_v47  ;;  %v2067_v47 = vrot.slane %v2066_v33, 4  ;;  %v2338_v33 = vrot.slane %v10952_v22, 5  ;;  %v9923_v22 = vld [vmem:[%s12723_s1 + $0x1d0] sm:$0xff]  }
 0x148   : > { %8554 = vmatprep.subr.bf16.mxu0 %v9912_v53 }
 0x149   : > { %v2340_v56 = vrot.slane %v2338_v33, 4 }
 0x14b   : > { %8555 = vmatpush3.bf16.msra.mxu0 %v9912_v53  ;;  %v2071_v53 = vrot.slane %v2069_v50, 5  ;;  %v7464_v50 = vrot.slane %v10949_v16, 9  ;;  %v9922_v16 = vld [vmem:[%s12723_s1 + $0x1c8] sm:$0xff]  }
 0x14c   : > { %8588 = vmatprep.subr.bf16.mxu0 %v9913_v43 }
 0x14d   : > { %v2072_v4 = vsel %vm10261_vm2, %v2067_v47, %v2071_v53  ;;  %v2341_v47 = vrot.slane %v330_v30, 5  ;;  %v2339_v53 = vsel %vm10673_vm5, %v7464_v50, %v2338_v33  ;;  %v9936_v30 = vld [vmem:[%s12723_s1 + $0x230] sm:$0xff]  }
 0x14e   : > { %8525 = vmatmul.mubr.bf16.gmra.mrb[16].mxu0 %v12921_v54  ;;  %v11007_v32 = vcombine.low %v2062_v28, %v2072_v4  ;;  %v333_v50 = vld [vmem:[%s10229_s12 + $0xd4] sm:$0x1] }
 0x14f   : > { %8528 = vmatprep.mubr.bf16.mxu0 %v12922_v42  ;;  %v2342_v28 = vsel %vm10673_vm5, %v2340_v56, %v2341_v47 }
 0x150   : > { %12926 = vst [vmem:[#allocation7_spill] sm:$0xff] %v11007_v32  ;;  %v11055_v4 = vcombine.low %v2339_v53, %v2342_v28  ;;  %v2889_v53 = vshll.u32 %v333_v50, 16 }
 0x156   : > { %8529 = vmatmul.mubr.bf16.gmra.mrb[20].mxu0 %v12923_v9 }
 0x157   : > { %8532 = vmatprep.mubr.bf16.mxu0 %v12924_v36 }
 0x15e   : > { %8533 = vmatmul.mubr.bf16.gmra.mrb[24].mxu0 %v12925_v62 }
 0x15f   : > { %8536 = vmatprep.mubr.bf16.mxu0 %v10677_v52 }
 0x166   : > { %8537 = vmatmul.mubr.bf16.gmra.mrb[28].mxu0 %v11007_v32 }
 0x167   : > { %8556 = vmatprep.mubr.bf16.mxu0 %v10866_v18  ;;  %v9916_v18 = vld [vmem:[%s12723_s1 + $0x198] sm:$0xff]  }
 0x16e   : > { %8557 = vmatmul.mubr.bf16.vlgmr.msra.gmra.mrb[0].mxu0 %v10871_v27 }
 0x16f   : > { %8589 = vmatpush3.bf16.msra.mxu0 %v9913_v43  ;;  %8560 = vmatprep.mubr.bf16.mxu0 %v10699_v5  ;;  %v9917_v43 = vld [vmem:[%s12723_s1 + $0x1a0] sm:$0xff]  }
 0x170   : > { %8590 = vmatprep.subr.bf16.mxu0 %v9914_v12 }
 0x173   : > { %8591 = vmatpush3.bf16.msra.mxu0 %v9914_v12  ;;  %v9937_v12 = vld [vmem:[%s12723_s1 + $0x238] sm:$0xff]  }
 0x174   : > { %8592 = vmatprep.subr.bf16.mxu0 %v9915_v46 }
 0x176   : > { %8561 = vmatmul.mubr.bf16.gmra.mrb[4].mxu0 %v10713_v41 }
 0x177   : > { %8564 = vmatprep.mubr.bf16.mxu0 %v10726_v20  ;;  %8593 = vmatpush3.bf16.msra.mxu0 %v9915_v46 }
 0x178   : > { %8594 = vmatprep.subr.bf16.mxu0 %v9916_v18 }
 0x17b   : > { %8595 = vmatpush3.bf16.msra.mxu0 %v9916_v18 }
 0x17c   : > { %8596 = vmatprep.subr.bf16.mxu0 %v9917_v43 }
 0x17e   : > { %8565 = vmatmul.mubr.bf16.gmra.mrb[8].mxu0 %v10732_v24 }
 0x17f   : > { %8568 = vmatprep.mubr.bf16.mxu0 %v10743_v35  ;;  %8597 = vmatpush3.bf16.msra.mxu0 %v9917_v43 }
 0x180   : > { %8598 = vmatprep.subr.bf16.mxu0 %v9918_v15 }
 0x183   : > { %8599 = vmatpush3.bf16.msra.mxu0 %v9918_v15 }
 0x184   : > { %8600 = vmatprep.subr.bf16.mxu0 %v9919_v19 }
 0x186   : > { %8569 = vmatmul.mubr.bf16.gmra.mrb[12].mxu0 %v10751_v17 }
 0x187   : > { %8572 = vmatprep.mubr.bf16.mxu0 %v10768_v51  ;;  %8601 = vmatpush3.bf16.msra.mxu0 %v9919_v19 }
 0x188   : > { %8602 = vmatprep.subr.bf16.mxu0 %v9920_v63 }
 0x18b   : > { %8603 = vmatpush3.bf16.msra.mxu0 %v9920_v63 }
 0x18c   : > { %8636 = vmatprep.subr.bf16.mxu0 %v9921_v58 }
 0x18e   : > { %8573 = vmatmul.mubr.bf16.gmra.mrb[16].mxu0 %v10774_v55 }
 0x18f   : > { %8576 = vmatprep.mubr.bf16.mxu0 %v10787_v2 }
 0x196   : > { %8577 = vmatmul.mubr.bf16.gmra.mrb[20].mxu0 %v10794_v26 }
 0x197   : > { %8580 = vmatprep.mubr.bf16.mxu0 %v10810_v48 }
 0x19e   : > { %8581 = vmatmul.mubr.bf16.gmra.mrb[24].mxu0 %v10819_v1 }
 0x19f   : > { %8584 = vmatprep.mubr.bf16.mxu0 %v10823_v60 }
 0x1a6   : > { %8585 = vmatmul.mubr.bf16.gmra.mrb[28].mxu0 %v11055_v4 }
 0x1a7   : > { %8604 = vmatprep.mubr.bf16.mxu0 %v10692_v44  ;;  %v9924_v44 = vld [vmem:[%s12723_s1 + $0x1d8] sm:$0xff]  }
 0x1ae   : > { %8605 = vmatmul.mubr.bf16.vlgmr.msra.gmra.mrb[0].mxu0 %v10609_v31  ;;  %v9925_v31 = vld [vmem:[%s12723_s1 + $0x1e0] sm:$0xff]  }
 0x1af   : > { %8637 = vmatpush3.bf16.msra.mxu0 %v9921_v58  ;;  %8608 = vmatprep.mubr.bf16.mxu0 %v10615_v0  ;;  %v9926_v0 = vld [vmem:[%s12723_s1 + $0x1e8] sm:$0xff]  }
 0x1b0   : > { %8638 = vmatprep.subr.bf16.mxu0 %v9922_v16 }
 0x1b3   : > { %8639 = vmatpush3.bf16.msra.mxu0 %v9922_v16 }
 0x1b4   : > { %8640 = vmatprep.subr.bf16.mxu0 %v9923_v22 }
 0x1b6   : > { %8609 = vmatmul.mubr.bf16.gmra.mrb[4].mxu0 %v10621_v23  ;;  %v9927_v23 = vld [vmem:[%s12723_s1 + $0x1f0] sm:$0xff]  }
 0x1b7   : > { %8612 = vmatprep.mubr.bf16.mxu0 %v10625_v57  ;;  %8641 = vmatpush3.bf16.msra.mxu0 %v9923_v22  ;;  %v9929_v57 = vld [vmem:[%s12723_s1 + $0x1f8] sm:$0xff]   ;;  %v2891_v22 = vrot.slane %v2889_v53, 5 }
 0x1b8   : > { %8642 = vmatprep.subr.bf16.mxu0 %v9924_v44 }
 0x1bb   : > { %8643 = vmatpush3.bf16.msra.mxu0 %v9924_v44 }
 0x1bc   : > { %8644 = vmatprep.subr.bf16.mxu0 %v9925_v31 }
 0x1be   : > { %8613 = vmatmul.mubr.bf16.gmra.mrb[8].mxu0 %v10629_v7  ;;  %v9930_v7 = vld [vmem:[%s12723_s1 + $0x200] sm:$0xff]  }
 0x1bf   : > { %8616 = vmatprep.mubr.bf16.mxu0 %v10635_v29  ;;  %8645 = vmatpush3.bf16.msra.mxu0 %v9925_v31  ;;  %v11098_v29 = vld [vmem:[%s10229_s12 + $0xcc] sm:$0xf] }
 0x1c0   : > { %8646 = vmatprep.subr.bf16.mxu0 %v9926_v0  ;;  %v2870_v46 = vshrl.u32 %v11098_v29, 16  ;;  %v2873_v18 = vshll.u32 %v11098_v29, 16 }
 0x1c2   : > { %v2872_v19 = vrot.slane %v2870_v46, 4  ;;  %v2875_v63 = vrot.slane %v2873_v18, 5 }
 0x1c3   : > { %8647 = vmatpush3.bf16.msra.mxu0 %v9926_v0 }
 0x1c4   : > { %8648 = vmatprep.subr.bf16.mxu0 %v9927_v23  ;;  %v2876_v56 = vor.u32 %v2875_v63, %v2872_v19 }
 0x1c6   : > { %8617 = vmatmul.mubr.bf16.gmra.mrb[12].mxu0 %v10639_v21  ;;  %v11101_v21 = vld [vmem:[%s10229_s12 + $0xd0] sm:$0xf]  ;;  %v2877_v28 = vrot.slane %v2876_v56, 4 }
 0x1c7   : > { %8620 = vmatprep.mubr.bf16.mxu0 %v10643_v61  ;;  %8649 = vmatpush3.bf16.msra.mxu0 %v9927_v23  ;;  %v7506_v61 = vcombine.low %v11098_v29, %v11101_v21  ;;  %v2883_v43 = vshrl.u32 %v11101_v21, 16  ;;  %v2879_v15 = vshll.u32 %v11101_v21, 16  ;;  %v3158_v25 = vrot.slane %v11101_v21, 5  ;;  %v11207_v23 = vld [vmem:[%s12724_s2] ss:$0 sm:$0xff] }
 0x1c8   : > { %8650 = vmatprep.subr.bf16.mxu0 %v9929_v57 }
 0x1c9   : > { %v2881_v58 = vrot.slane %v2879_v15, 5  ;;  %v2885_v33 = vrot.slane %v2883_v43, 4 }
 0x1cb   : > { %8651 = vmatpush3.bf16.msra.mxu0 %v9929_v57  ;;  %v2886_v47 = vor.u32 %v2885_v33, %v2881_v58  ;;  %v2882_v44 = vsel %vm10261_vm2, %v2877_v28, %v2881_v58 }
 0x1cc   : > { %8684 = vmatprep.subr.bf16.mxu0 %v9930_v7 }
 0x1cd   : > { %v2887_v16 = vrot.slane %v2886_v47, 4 }
 0x1ce   : > { %8621 = vmatmul.mubr.bf16.gmra.mrb[16].mxu0 %v10647_v6  ;;  %v9938_v6 = vld [vmem:[%s12725_s3 + $0x40] sm:$0xff]  }
 0x1cf   : > { %8624 = vmatprep.mubr.bf16.mxu0 %v10651_v14  ;;  %9212 = vmatprep.subr.bf16.mxu1 %v9938_v6  ;;  %v9931_v14 = vld [vmem:[%s12723_s1 + $0x208] sm:$0xff]   ;;  %v2892_v31 = vsel %vm10261_vm2, %v2887_v16, %v2891_v22 }
 0x1d0   : > { %9220 = vmatpush3.bf16.msra.mxu1 %v9938_v6  ;;  %v7531_v0 = vcombine.low %v2882_v44, %v2892_v31 }
 0x1d6   : > { %8625 = vmatmul.mubr.bf16.gmra.mrb[20].mxu0 %v10655_v3  ;;  %v9932_v3 = vld [vmem:[%s12723_s1 + $0x210] sm:$0xff]  }
 0x1d7   : > { %8628 = vmatprep.mubr.bf16.mxu0 %v10659_v11  ;;  %v9933_v11 = vld [vmem:[%s12723_s1 + $0x218] sm:$0xff]  }
 0x1de   : > { %8629 = vmatmul.mubr.bf16.gmra.mrb[24].mxu0 %v10663_v49  ;;  %v9934_v49 = vld [vmem:[%s12723_s1 + $0x220] sm:$0xff]  }
 0x1df   : > { %8632 = vmatprep.mubr.bf16.mxu0 %v10956_v59  ;;  %v9935_v59 = vld [vmem:[%s12723_s1 + $0x228] sm:$0xff]  }
 0x1e6   : > { %8633 = vmatmul.mubr.bf16.gmra.mrb[28].mxu0 %v7506_v61 }
 0x1e7   : > { %8652 = vmatprep.mubr.bf16.mxu0 %v12913_v40 }
 0x1ee   : > { %8653 = vmatmul.mubr.bf16.vlgmr.msra.gmra.mrb[0].mxu0 %v12914_v38 }
 0x1ef   : > { %8685 = vmatpush3.bf16.msra.mxu0 %v9930_v7  ;;  %8656 = vmatprep.mubr.bf16.mxu0 %v12915_v13 }
 0x1f0   : > { %8686 = vmatprep.subr.bf16.mxu0 %v9931_v14 }
 0x1f3   : > { %8687 = vmatpush3.bf16.msra.mxu0 %v9931_v14 }
 0x1f4   : > { %8688 = vmatprep.subr.bf16.mxu0 %v9932_v3 }
 0x1f6   : > { %8657 = vmatmul.mubr.bf16.gmra.mrb[4].mxu0 %v12916_v8 }
 0x1f7   : > { %8660 = vmatprep.mubr.bf16.mxu0 %v12917_v10  ;;  %8689 = vmatpush3.bf16.msra.mxu0 %v9932_v3 }
 0x1f8   : > { %8690 = vmatprep.subr.bf16.mxu0 %v9933_v11 }
 0x1fb   : > { %8691 = vmatpush3.bf16.msra.mxu0 %v9933_v11 }
 0x1fc   : > { %8692 = vmatprep.subr.bf16.mxu0 %v9934_v49 }
 0x1fe   : > { %8661 = vmatmul.mubr.bf16.gmra.mrb[8].mxu0 %v12918_v37 }
 0x1ff   : > { %8664 = vmatprep.mubr.bf16.mxu0 %v12919_v34  ;;  %8693 = vmatpush3.bf16.msra.mxu0 %v9934_v49 }
 0x200   : > { %8694 = vmatprep.subr.bf16.mxu0 %v9935_v59 }
 0x203   : > { %8695 = vmatpush3.bf16.msra.mxu0 %v9935_v59 }
 0x204   : > { %8696 = vmatprep.subr.bf16.mxu0 %v9936_v30 }
 0x206   : > { %8665 = vmatmul.mubr.bf16.gmra.mrb[12].mxu0 %v12920_v45 }
 0x207   : > { %8668 = vmatprep.mubr.bf16.mxu0 %v12921_v54  ;;  %8697 = vmatpush3.bf16.msra.mxu0 %v9936_v30 }
 0x208   : > { %8698 = vmatprep.subr.bf16.mxu0 %v9937_v12 }
 0x20b   : > { %8699 = vmatpush3.bf16.msra.mxu0 %v9937_v12 }
 0x20c   : > { %8732 = vmatprep.subr.bf16.mxu0 %v9938_v6 }
 0x20e   : > { %8669 = vmatmul.mubr.bf16.gmra.mrb[16].mxu0 %v12922_v42 }
 0x20f   : > { %8672 = vmatprep.mubr.bf16.mxu0 %v12923_v9 }
 0x216   : > { %8673 = vmatmul.mubr.bf16.gmra.mrb[20].mxu0 %v12924_v36 }
 0x217   : > { %8676 = vmatprep.mubr.bf16.mxu0 %v12925_v62 }
 0x21e   : > { %8677 = vmatmul.mubr.bf16.gmra.mrb[24].mxu0 %v10677_v52 }
 0x21f   : > { %8680 = vmatprep.mubr.bf16.mxu0 %v11007_v32 }
 0x226   : > { %8681 = vmatmul.mubr.bf16.gmra.mrb[28].mxu0 %v7531_v0 }
 0x227   : > { %8700 = vmatprep.mubr.bf16.mxu0 %v10871_v27 }
 0x22e   : > { %8701 = vmatmul.mubr.bf16.vlgmr.msra.gmra.mrb[0].mxu0 %v10699_v5  ;;  %v7540_v5 = vrot.slane %v11098_v29, 9 }
 0x22f   : > { %8704 = vmatprep.mubr.bf16.mxu0 %v10713_v41  ;;  %8733 = vmatpush3.bf16.msra.mxu0 %v9938_v6  ;;  %v3160_v41 = vrot.slane %v3158_v25, 4 }
 0x236   : > { %8705 = vmatmul.mubr.bf16.gmra.mrb[4].mxu0 %v10726_v20  ;;  %v3161_v20 = vrot.slane %v333_v50, 5 }
 0x237   : > { %8708 = vmatprep.mubr.bf16.mxu0 %v10732_v24  ;;  %v3159_v24 = vsel %vm10673_vm5, %v7540_v5, %v3158_v25 }
 0x23e   : > { %8709 = vmatmul.mubr.bf16.gmra.mrb[8].mxu0 %v10743_v35  ;;  %v3162_v35 = vsel %vm10673_vm5, %v3160_v41, %v3161_v20 }
 0x23f   : > { %8712 = vmatprep.mubr.bf16.mxu0 %v10751_v17  ;;  %v7557_v17 = vcombine.low %v3159_v24, %v3162_v35 }
 0x246   : > { %8713 = vmatmul.mubr.bf16.gmra.mrb[12].mxu0 %v10768_v51  ;;  %v9939_v51 = vld [vmem:[%s12725_s3 + $0x48] sm:$0xff]  }
 0x247   : > { %8716 = vmatprep.mubr.bf16.mxu0 %v10774_v55  ;;  %8734 = vmatprep.subr.bf16.mxu0 %v9939_v51  ;;  %v9940_v55 = vld [vmem:[%s12725_s3 + $0x50] sm:$0xff]  }
 0x248   : > { %9213 = vmatprep.subr.bf16.mxu1 %v9939_v51  ;;  %8735 = vmatpush3.bf16.msra.mxu0 %v9939_v51 }
 0x249   : > { %9221 = vmatpush3.bf16.msra.mxu1 %v9939_v51  ;;  %8736 = vmatprep.subr.bf16.mxu0 %v9940_v55 }
 0x24a   : > { %9214 = vmatprep.subr.bf16.mxu1 %v9940_v55 }
 0x24c   : > { %8737 = vmatpush3.bf16.msra.mxu0 %v9940_v55 }
 0x24d   : > { %9222 = vmatpush3.bf16.msra.mxu1 %v9940_v55  ;;  %8738 = vmatprep.subr.bf16.mxu0 %v9941_v39  ;;  %v12766_v55 = vmov 0  }
 0x24e   : > { %8717 = vmatmul.mubr.bf16.gmra.mrb[16].mxu0 %v10787_v2  ;;  %9215 = vmatprep.subr.bf16.mxu1 %v9941_v39  ;;  %v9942_v2 = vld [vmem:[%s12725_s3 + $0x60] sm:$0xff]  }
 0x24f   : > { %8720 = vmatprep.mubr.bf16.mxu0 %v10794_v26  ;;  %v9943_v26 = vld [vmem:[%s12725_s3 + $0x68] sm:$0xff]  }
 0x250   : > { %8739 = vmatpush3.bf16.msra.mxu0 %v9941_v39 }
 0x251   : > { %9223 = vmatpush3.bf16.msra.mxu1 %v9941_v39  ;;  %8740 = vmatprep.subr.bf16.mxu0 %v9942_v2  ;;  %v3873_v39 = vrot.slane %v12766_v55, 3 }
 0x252   : > { %9216 = vmatprep.subr.bf16.mxu1 %v9942_v2 }
 0x254   : > { %8741 = vmatpush3.bf16.msra.mxu0 %v9942_v2 }
 0x255   : > { %9224 = vmatpush3.bf16.msra.mxu1 %v9942_v2  ;;  %8742 = vmatprep.subr.bf16.mxu0 %v9943_v26 }
 0x256   : > { %8721 = vmatmul.mubr.bf16.gmra.mrb[20].mxu0 %v10810_v48  ;;  %9217 = vmatprep.subr.bf16.mxu1 %v9943_v26  ;;  %v9944_v48 = vld [vmem:[%s12725_s3 + $0x70] sm:$0xff]  }
 0x257   : > { %8724 = vmatprep.mubr.bf16.mxu0 %v10819_v1  ;;  %v9945_v1 = vld [vmem:[%s12725_s3 + $0x78] sm:$0xff]  }
 0x258   : > { %8743 = vmatpush3.bf16.msra.mxu0 %v9943_v26 }
 0x259   : > { %9225 = vmatpush3.bf16.msra.mxu1 %v9943_v26  ;;  %8744 = vmatprep.subr.bf16.mxu0 %v9944_v48 }
 0x25a   : > { %9218 = vmatprep.subr.bf16.mxu1 %v9944_v48 }
 0x25c   : > { %8745 = vmatpush3.bf16.msra.mxu0 %v9944_v48 }
 0x25d   : > { %9226 = vmatpush3.bf16.msra.mxu1 %v9944_v48  ;;  %8746 = vmatprep.subr.bf16.mxu0 %v9945_v1 }
 0x25e   : > { %8725 = vmatmul.mubr.bf16.gmra.mrb[24].mxu0 %v10823_v60  ;;  %9219 = vmatprep.subr.bf16.mxu1 %v9945_v1  ;;  %v10163_v60 = vmov 0.0|0.0  }
 0x25f   : > { %8728 = vmatprep.mubr.bf16.mxu0 %v11055_v4  ;;  %v11195_v27 = vrot.slane %v10163_v60, 4  ;;  %v11201_v4 = vld [vmem:[%s12725_s3] sm:$0xff]  }
 0x260   : > { %8747 = vmatpush3.bf16.msra.mxu0 %v9945_v1 }
 0x261   : > { %12927 = vst [vmem:[#allocation10_spill] sm:$0xff] %v11195_v27  ;;  %9227 = vmatpush3.bf16.msra.mxu1 %v9945_v1 }
 0x262   : > { %8780 = vmatprep.subr.bf16.mxu1 %v11201_v4 }
 0x266   : > { %8729 = vmatmul.mubr.bf16.gmra.mrb[28].mxu0 %v7557_v17 }
 0x267   : > { %8748 = vmatprep.mubr.bf16.mxu0 %v11195_v27 }
 0x301   : > { %v8702_v57 = vpop.f32.mrb[0].mxu0 }
 0x302   : > { %v11210_v7 = vadd.f32 %v8702_v57, %v11207_v23  ;;  %v3266_v29 = vpop.f32.mrb[1].mxu0  ;;  %v11250_v57 = vrot.slane %v12766_v55, 4 }
 0x303   : > { %v3432_v21 = vadd.f32 %v11207_v23, %v3266_v29  ;;  %v8703_v61 = vpop.f32.mrb[2].mxu0 }
 0x304   : > { %v3498_v6 = vmin.f32 %v11210_v7, 0.0  ;;  %v11215_v14 = vadd.f32 %v8703_v61, %v11207_v23  ;;  %v3269_v3 = vpop.f32.mrb[3].mxu0  ;;  %vm3466_vm7 = vcmp.gt.f32.partialorder %v11210_v7, 0.0 }
 0x305   : > { %v3496_v11 = vmin.f32 %v3432_v21, 0.0  ;;  %v11218_v49 = vadd.f32 %v11207_v23, %v3269_v3  ;;  %vm3464_vm6 = vcmp.gt.f32.partialorder %v3432_v21, 0.0 }
 0x306   : > { %v3532_v59 = vmul.f32 1.442695, %v3498_v6  ;;  %v3499_v30 = vmin.f32 %v11215_v14, 0.0  ;;  %vm3467_vm8 = vcmp.gt.f32.partialorder %v11215_v14, 0.0 }
 0x307   : > { %v3528_v12 = vmul.f32 1.442695, %v3496_v11  ;;  %v3497_v46 = vmin.f32 %v11218_v49, 0.0  ;;  %vm3465_vm9 = vcmp.gt.f32.partialorder %v11218_v49, 0.0 }
 0x308   : > { %10018 = vpow2.f32 %v3532_v59  ;;  %v3534_v18 = vmul.f32 1.442695, %v3499_v30 }
 0x309   : > { %10020 = vpow2.f32 %v3528_v12  ;;  %v3530_v43 = vmul.f32 1.442695, %v3497_v46  ;;  %v8706_v15 = vpop.f32.mrb[4].mxu0 }
 0x30a   : > { %10022 = vpow2.f32 %v3534_v18  ;;  %v11223_v19 = vadd.f32 %v8706_v15, %v11207_v23  ;;  %v3282_v63 = vpop.f32.mrb[5].mxu0  ;;  %v11255_v18 = vor.u32 %v11250_v57, %v3873_v39 }
 0x30b   : > { %10024 = vpow2.f32 %v3530_v43  ;;  %v11226_v58 = vadd.f32 %v11207_v23, %v3282_v63  ;;  %v8707_v33 = vpop.f32.mrb[6].mxu0  ;;  %v12769_v63 = vmov 0.0  }
 0x30c   : > { %v3502_v50 = vmin.f32 %v11223_v19, 0.0  ;;  %v11230_v56 = vadd.f32 %v8707_v33, %v11207_v23  ;;  %v3285_v47 = vpop.f32.mrb[7].mxu0  ;;  %12928 = vst [vmem:[#allocation16_spill] sm:$0xff] %v11255_v18  ;;  %vm3470_vm11 = vcmp.gt.f32.partialorder %v11223_v19, 0.0 }
 0x30d   : > { %v3500_v53 = vmin.f32 %v11226_v58, 0.0  ;;  %v11234_v28 = vadd.f32 %v11207_v23, %v3285_v47  ;;  %vm3468_vm12 = vcmp.gt.f32.partialorder %v11226_v58, 0.0 }
 0x30e   : > { %v3540_v16 = vmul.f32 1.442695, %v3502_v50  ;;  %v3503_v22 = vmin.f32 %v11230_v56, 0.0  ;;  %vm3471_vm13 = vcmp.gt.f32.partialorder %v11230_v56, 0.0 }
 0x30f   : > { %v3536_v44 = vmul.f32 1.442695, %v3500_v53  ;;  %v3501_v31 = vmin.f32 %v11234_v28, 0.0  ;;  %vm3469_vm14 = vcmp.gt.f32.partialorder %v11234_v28, 0.0 }
 0x310   : > { %10026 = vpow2.f32 %v3540_v16  ;;  %v3542_v0 = vmul.f32 1.442695, %v3503_v22 }
 0x311   : > { %10028 = vpow2.f32 %v3536_v44  ;;  %v3538_v25 = vmul.f32 1.442695, %v3501_v31  ;;  %v8710_v5 = vpop.f32.mrb[8].mxu0 }
 0x312   : > { %v10019_v41 = vpop.eup %10018  ;;  %10030 = vpow2.f32 %v3542_v0  ;;  %v11239_v20 = vadd.f32 %v8710_v5, %v11207_v23  ;;  %v3298_v24 = vpop.f32.mrb[9].mxu0 }
 0x313   : > { %v10021_v35 = vpop.eup %10020  ;;  %10032 = vpow2.f32 %v3538_v25  ;;  %v11242_v17 = vadd.f32 %v11207_v23, %v3298_v24  ;;  %v8711_v51 = vpop.f32.mrb[10].mxu0  ;;  %v7569_v6 = vadd.f32 -1.0, %v10019_v41 }
 0x314   : > { %v10023_v2 = vpop.eup %10022  ;;  %v7567_v26 = vadd.f32 -1.0, %v10021_v35  ;;  %v3506_v48 = vmin.f32 %v11239_v20, 0.0  ;;  %v11247_v1 = vadd.f32 %v8711_v51, %v11207_v23  ;;  %v3301_v60 = vpop.f32.mrb[11].mxu0  ;;  %vm3474_vm15 = vcmp.gt.f32.partialorder %v11239_v20, 0.0 }
 0x315   : > { %v10025_v29 = vpop.eup %10024  ;;  %v3504_v61 = vmin.f32 %v11242_v17, 0.0  ;;  %v7570_v59 = vadd.f32 -1.0, %v10023_v2  ;;  %v11266_v50 = vadd.f32 %v11207_v23, %v3301_v60  ;;  %vm3472_vm1 = vcmp.gt.f32.partialorder %v11242_v17, 0.0 }
 0x316   : > { %v3548_v3 = vmul.f32 1.442695, %v3506_v48  ;;  %v3624_v11 = vsel %vm3464_vm6, %v3432_v21, %v7567_v26  ;;  %v7568_v30 = vadd.f32 -1.0, %v10025_v29  ;;  %v3507_v46 = vmin.f32 %v11247_v1, 0.0 }
 0x317   : > { %v3544_v12 = vmul.f32 1.442695, %v3504_v61  ;;  %v3626_v21 = vsel %vm3466_vm7, %v11210_v7, %v7569_v6  ;;  %v11262_v33 = vpack.c.bf16 %v3624_v11, %v12769_v63  ;;  %v3627_v22 = vsel %vm3467_vm8, %v11215_v14, %v7570_v59 }
 0x318   : > { %10034 = vpow2.f32 %v3548_v3  ;;  %v3625_v44 = vsel %vm3465_vm9, %v11218_v49, %v7568_v30  ;;  %v3550_v7 = vmul.f32 1.442695, %v3507_v46  ;;  %v3505_v25 = vmin.f32 %v11266_v50, 0.0 }
 0x319   : > { %v8714_v43 = vpop.f32.mrb[12].mxu0  ;;  %10036 = vpow2.f32 %v3544_v12  ;;  %v11280_v35 = vpack.c.bf16 %v3626_v21, %v12769_v63  ;;  %v11286_v39 = vpack.c.bf16 %v12769_v63, %v3627_v22  ;;  %v11289_v2 = vpack.c.bf16 %v12769_v63, %v3625_v44 }
 0x31a   : > { %v10027_v15 = vpop.eup %10026  ;;  %v11269_v47 = vadd.f32 %v8714_v43, %v11207_v23  ;;  %v3314_v53 = vpop.f32.mrb[13].mxu0  ;;  %v3546_v26 = vmul.f32 1.442695, %v3505_v25  ;;  %10038 = vpow2.f32 %v3550_v7  ;;  %v4210_v43 = vrot.slane %v11262_v33, 4 }
 0x31b   : > { %v10029_v16 = vpop.eup %10028  ;;  %v8715_v31 = vpop.f32.mrb[14].mxu0  ;;  %v11277_v5 = vadd.f32 %v11207_v23, %v3314_v53  ;;  %v7573_v48 = vadd.f32 -1.0, %v10027_v15  ;;  %v4211_v15 = vrot.slane %v11289_v2, 4  ;;  %v4214_v21 = vrot.slane %v11286_v39, 4 }
 0x31c   : > { %v10031_v0 = vpop.eup %10030  ;;  %v3317_v41 = vpop.f32.mrb[15].mxu0  ;;  %v7571_v14 = vadd.f32 -1.0, %v10029_v16  ;;  %v3510_v49 = vmin.f32 %v11269_v47, 0.0  ;;  %10040 = vpow2.f32 %v3546_v26  ;;  %v11298_v59 = vadd.f32 %v8715_v31, %v11207_v23 }
 0x31d   : > { %v10033_v24 = vpop.eup %10032  ;;  %v7574_v6 = vadd.f32 -1.0, %v10031_v0  ;;  %v3508_v3 = vmin.f32 %v11277_v5, 0.0  ;;  %v11301_v30 = vadd.f32 %v11207_v23, %v3317_v41  ;;  %v4213_v7 = vrot.slane %v11280_v35, 4 }
 0x31e   : > { %v7572_v60 = vadd.f32 -1.0, %v10033_v24  ;;  %v3556_v29 = vmul.f32 1.442695, %v3510_v49  ;;  %v3628_v11 = vsel %vm3468_vm12, %v11226_v58, %v7571_v14  ;;  %v3630_v58 = vsel %vm3470_vm11, %v11223_v19, %v7573_v48 }
 0x31f   : > { %v3552_v46 = vmul.f32 1.442695, %v3508_v3  ;;  %v3511_v44 = vmin.f32 %v11298_v59, 0.0  ;;  %v11316_v0 = vpack.c.bf16 %v3628_v11, %v12769_v63  ;;  %v3509_v25 = vmin.f32 %v11301_v30, 0.0 }
 0x320   : > { %10042 = vpow2.f32 %v3556_v29  ;;  %v3629_v22 = vsel %vm3469_vm14, %v11234_v28, %v7572_v60  ;;  %v11320_v41 = vsel %vm4206_vm10, %v4210_v43, %v4211_v15  ;;  %v3631_v28 = vsel %vm3471_vm13, %v11230_v56, %v7574_v6 }
 0x321   : > { %v8718_v12 = vpop.f32.mrb[16].mxu0  ;;  %10044 = vpow2.f32 %v3552_v46  ;;  %12929 = vst [vmem:[#allocation11_spill] sm:$0xff] %v11320_v41  ;;  %v3558_v14 = vmul.f32 1.442695, %v3511_v44  ;;  %8749 = vmatmul.mubr.bf16.vlgmr.msra.gmra.mrb[32].mxu0 %v11320_v41  ;;  %v11327_v49 = vsel %vm4206_vm10, %v4213_v7, %v4214_v21  ;;  %v11333_v48 = vpack.c.bf16 %v12769_v63, %v3629_v22 }
 0x322   : > { %v3330_v53 = vpop.f32.mrb[17].mxu0  ;;  %v10035_v16 = vpop.eup %10034  ;;  %12930 = vst [vmem:[#allocation13_spill] sm:$0xff] %v11327_v49  ;;  %v11330_v26 = vadd.f32 %v8718_v12, %v11207_v23  ;;  %v3554_v29 = vmul.f32 1.442695, %v3509_v25  ;;  %8752 = vmatprep.mubr.bf16.mxu0 %v11327_v49  ;;  %v11342_v11 = vpack.c.bf16 %v3630_v58, %v12769_v63  ;;  %vm3475_vm2 = vcmp.gt.f32.partialorder %v11247_v1, 0.0 }
 0x323   : > { %v8719_v31 = vpop.f32.mrb[18].mxu0  ;;  %v10037_v24 = vpop.eup %10036  ;;  %v7577_v60 = vadd.f32 -1.0, %v10035_v16  ;;  %v11337_v3 = vadd.f32 %v11207_v23, %v3330_v53  ;;  %10046 = vpow2.f32 %v3558_v14  ;;  %v11348_v21 = vpack.c.bf16 %v12769_v63, %v3631_v28 }
 0x324   : > { %v3333_v19 = vpop.f32.mrb[19].mxu0  ;;  %v7575_v12 = vadd.f32 -1.0, %v10037_v24  ;;  %10048 = vpow2.f32 %v3554_v29  ;;  %v3514_v46 = vmin.f32 %v11330_v26, 0.0  ;;  %v10039_v15 = vpop.eup %10038  ;;  %v11351_v53 = vadd.f32 %v8719_v31, %v11207_v23 }
 0x325   : > { %v3512_v43 = vmin.f32 %v11337_v3, 0.0  ;;  %v11354_v16 = vadd.f32 %v11207_v23, %v3333_v19  ;;  %v4216_v58 = vrot.slane %v11316_v0, 4  ;;  %v3634_v7 = vsel %vm3474_vm15, %v11239_v20, %v7577_v60 }
 0x326   : > { %v10041_v44 = vpop.eup %10040  ;;  %v3564_v25 = vmul.f32 1.442695, %v3514_v46  ;;  %v4217_v14 = vrot.slane %v11333_v48, 4  ;;  %vm3473_vm3 = vcmp.gt.f32.partialorder %v11266_v50, 0.0  ;;  %vm3478_vm4 = vcmp.gt.f32.partialorder %v11269_v47, 0.0 }
 0x327   : > { %v3560_v24 = vmul.f32 1.442695, %v3512_v43  ;;  %v7576_v31 = vadd.f32 -1.0, %v10041_v44  ;;  %v3515_v19 = vmin.f32 %v11351_v53, 0.0  ;;  %v3632_v6 = vsel %vm3472_vm1, %v11242_v17, %v7575_v12 }
 0x328   : > { %vm3476_vm5 = vcmp.gt.f32.partialorder %v11277_v5, 0.0  ;;  %10050 = vpow2.f32 %v3564_v25  ;;  %v3513_v20 = vmin.f32 %v11354_v16, 0.0  ;;  %v11370_v60 = vsel %vm4206_vm10, %v4216_v58, %v4217_v14 }
 0x329   : > { %v8722_v22 = vpop.f32.mrb[20].mxu0  ;;  %12931 = vst [vmem:[#allocation15_spill] sm:$0xff] %v11370_v60  ;;  %v11373_v43 = vpack.c.bf16 %v3634_v7, %v12769_v63  ;;  %v7578_v44 = vadd.f32 -1.0, %v10039_v15  ;;  %vm3479_vm6 = vcmp.gt.f32.partialorder %v11298_v59, 0.0  ;;  %vm3477_vm7 = vcmp.gt.f32.partialorder %v11301_v30, 0.0  ;;  %8753 = vmatmul.mubr.bf16.gmra.mrb[36].mxu0 %v11370_v60 }
 0x32a   : > { %v3346_v28 = vpop.f32.mrb[21].mxu0  ;;  %v10043_v29 = vpop.eup %10042  ;;  %10052 = vpow2.f32 %v3560_v24  ;;  %v3566_v56 = vmul.f32 1.442695, %v3515_v19  ;;  %v3562_v25 = vmul.f32 1.442695, %v3513_v20  ;;  %v4219_v61 = vrot.slane %v11342_v11, 4 }
 0x32b   : > { %v8723_v55 = vpop.f32.mrb[22].mxu0  ;;  %v10045_v17 = vpop.eup %10044  ;;  %v7581_v12 = vadd.f32 -1.0, %v10043_v29  ;;  %v4220_v58 = vrot.slane %v11348_v21, 4  ;;  %v11381_v14 = vpack.c.bf16 %v3632_v6, %v12769_v63  ;;  %v3633_v15 = vsel %vm3473_vm3, %v11266_v50, %v7576_v31 }
 0x32c   : > { %v3349_v46 = vpop.f32.mrb[23].mxu0  ;;  %10054 = vpow2.f32 %v3566_v56  ;;  %v11387_v7 = vadd.f32 %v8722_v22, %v11207_v23  ;;  %v11393_v29 = vadd.f32 %v11207_v23, %v3346_v28  ;;  %v11396_v19 = vadd.f32 %v8723_v55, %v11207_v23 }
 0x32d   : > { %10056 = vpow2.f32 %v3562_v25  ;;  %v11390_v24 = vsel %vm4206_vm10, %v4219_v61, %v4220_v58  ;;  %v10047_v6 = vpop.eup %10046  ;;  %v3635_v20 = vsel %vm3475_vm2, %v11247_v1, %v7578_v44  ;;  %v7579_v50 = vadd.f32 -1.0, %v10045_v17 }
 0x32e   : > { %12932 = vst [vmem:[#allocation18_spill] sm:$0xff] %v11390_v24  ;;  %8756 = vmatprep.mubr.bf16.mxu0 %v11390_v24  ;;  %v3518_v56 = vmin.f32 %v11387_v7, 0.0  ;;  %v11404_v22 = vadd.f32 %v11207_v23, %v3349_v46  ;;  %v10049_v31 = vpop.eup %10048  ;;  %v3638_v55 = vsel %vm3478_vm4, %v11269_v47, %v7581_v12  ;;  %v7582_v28 = vadd.f32 -1.0, %v10047_v6 }
 0x32f   : > { %vm3482_vm8 = vcmp.gt.f32.partialorder %v11330_v26, 0.0  ;;  %v3516_v25 = vmin.f32 %v11393_v29, 0.0  ;;  %v11412_v44 = vpack.c.bf16 %v12769_v63, %v3633_v15  ;;  %v7580_v17 = vadd.f32 -1.0, %v10049_v31 }
 0x330   : > { %v3572_v58 = vmul.f32 1.442695, %v3518_v56  ;;  %v3519_v46 = vmin.f32 %v11396_v19, 0.0  ;;  %v11416_v32 = vpack.c.bf16 %v12769_v63, %v3635_v20  ;;  %vm3480_vm9 = vcmp.gt.f32.partialorder %v11337_v3, 0.0 }
 0x331   : > { %v8726_v61 = vpop.f32.mrb[24].mxu0  ;;  %v3568_v47 = vmul.f32 1.442695, %v3516_v25  ;;  %v3517_v12 = vmin.f32 %v11404_v22, 0.0  ;;  %v11421_v52 = vpack.c.bf16 %v3638_v55, %v12769_v63  ;;  %v3636_v15 = vsel %vm3476_vm5, %v11277_v5, %v7579_v50 }
 0x332   : > { %v3362_v1 = vpop.f32.mrb[25].mxu0  ;;  %vm3483_vm11 = vcmp.gt.f32.partialorder %v11351_v53, 0.0  ;;  %vm3481_vm12 = vcmp.gt.f32.partialorder %v11354_v16, 0.0  ;;  %10058 = vpow2.f32 %v3572_v58  ;;  %v3574_v20 = vmul.f32 1.442695, %v3519_v46  ;;  %v10051_v56 = vpop.eup %10050 }
 0x333   : > { %v8727_v51 = vpop.f32.mrb[26].mxu0  ;;  %v3639_v31 = vsel %vm3479_vm6, %v11298_v59, %v7582_v28  ;;  %v3637_v55 = vsel %vm3477_vm7, %v11301_v30, %v7580_v17  ;;  %10060 = vpow2.f32 %v3568_v47  ;;  %v3570_v25 = vmul.f32 1.442695, %v3517_v12 }
 0x334   : > { %v3365_v6 = vpop.f32.mrb[27].mxu0  ;;  %v10053_v63 = vpop.eup %10052  ;;  %v7585_v62 = vadd.f32 -1.0, %v10051_v56  ;;  %10062 = vpow2.f32 %v3574_v20  ;;  %v4222_v5 = vrot.slane %v11381_v14, 4  ;;  %v4223_v50 = vrot.slane %v11412_v44, 4 }
 0x335   : > { %10064 = vpow2.f32 %v3570_v25  ;;  %v4225_v58 = vrot.slane %v11373_v43, 4  ;;  %v4226_v46 = vrot.slane %v11416_v32, 4  ;;  %v11439_v59 = vadd.f32 %v8726_v61, %v11207_v23 }
 0x336   : > { %v10055_v28 = vpop.eup %10054  ;;  %v7583_v36 = vadd.f32 -1.0, %v10053_v63  ;;  %v11442_v30 = vsel %vm4206_vm10, %v4222_v5, %v4223_v50  ;;  %v11445_v17 = vadd.f32 %v11207_v23, %v3362_v1  ;;  %v11448_v47 = vadd.f32 %v8727_v51, %v11207_v23 }
 0x337   : > { %12933 = vst [vmem:[#allocation20_spill] sm:$0xff] %v11442_v30  ;;  %v10057_v20 = vpop.eup %10056  ;;  %v12934_v56 = vmov 0.0   ;;  %v3642_v61 = vsel %vm3482_vm8, %v11330_v26, %v7585_v62  ;;  %v7586_v9 = vadd.f32 -1.0, %v10055_v28  ;;  %8757 = vmatmul.mubr.bf16.gmra.mrb[40].mxu0 %v11442_v30  ;;  %v11458_v63 = vsel %vm4206_vm10, %v4225_v58, %v4226_v46 }
 0x338   : > { %v11451_v25 = vpack.c.bf16 %v3636_v15, %v12934_v56  ;;  %12935 = vst [vmem:[#allocation26_spill] sm:$0xff] %v11458_v63  ;;  %v11461_v5 = vpack.c.bf16 %v12934_v56, %v3639_v31  ;;  %v7584_v51 = vadd.f32 -1.0, %v10057_v20  ;;  %vm3486_vm13 = vcmp.gt.f32.partialorder %v11387_v7, 0.0  ;;  %8760 = vmatprep.mubr.bf16.mxu0 %v11458_v63 }
 0x339   : > { %v8730_v12 = vpop.f32.mrb[28].mxu0  ;;  %vm3484_vm14 = vcmp.gt.f32.partialorder %v11393_v29, 0.0  ;;  %v3522_v15 = vmin.f32 %v11439_v59, 0.0  ;;  %v11468_v26 = vpack.c.bf16 %v12934_v56, %v3637_v55  ;;  %vm3487_vm15 = vcmp.gt.f32.partialorder %v11396_v19, 0.0 }
 0x33a   : > { %v3378_v1 = vpop.f32.mrb[29].mxu0  ;;  %vm3485_vm1 = vcmp.gt.f32.partialorder %v11404_v22, 0.0  ;;  %v3520_v31 = vmin.f32 %v11445_v17, 0.0  ;;  %v11474_v58 = vpack.c.bf16 %v3642_v61, %v12934_v56  ;;  %v3640_v46 = vsel %vm3480_vm9, %v11337_v3, %v7583_v36 }
 0x33b   : > { %v8731_v62 = vpop.f32.mrb[30].mxu0  ;;  %v3580_v28 = vmul.f32 1.442695, %v3522_v15  ;;  %v3523_v20 = vmin.f32 %v11448_v47, 0.0  ;;  %v3643_v55 = vsel %vm3483_vm11, %v11351_v53, %v7586_v9  ;;  %v3641_v42 = vsel %vm3481_vm12, %v11354_v16, %v7584_v51 }
 0x33c   : > { %v3381_v50 = vpop.f32.mrb[31].mxu0  ;;  %v3576_v54 = vmul.f32 1.442695, %v3520_v31  ;;  %v11487_v45 = vadd.f32 %v11207_v23, %v3365_v6  ;;  %v10059_v61 = vpop.eup %10058  ;;  %v4231_v36 = vrot.slane %v11421_v52, 4  ;;  %v4232_v3 = vrot.slane %v11461_v5, 4 }
 0x33d   : > { %10066 = vpow2.f32 %v3580_v28  ;;  %v3582_v34 = vmul.f32 1.442695, %v3523_v20  ;;  %v10061_v15 = vpop.eup %10060  ;;  %v7589_v37 = vadd.f32 -1.0, %v10059_v61  ;;  %v4228_v53 = vrot.slane %v11451_v25, 4 }
 0x33e   : > { %10068 = vpow2.f32 %v3576_v54  ;;  %v3521_v9 = vmin.f32 %v11487_v45, 0.0  ;;  %v10063_v10 = vpop.eup %10062  ;;  %v7587_v16 = vadd.f32 -1.0, %v10061_v15  ;;  %v11494_v6 = vsel %vm4206_vm10, %v4231_v36, %v4232_v3 }
 0x33f   : > { %10070 = vpow2.f32 %v3582_v34  ;;  %12936 = vst [vmem:[#allocation27_spill] sm:$0xff] %v11494_v6  ;;  %v4229_v51 = vrot.slane %v11468_v26, 4  ;;  %v10065_v31 = vpop.eup %10064  ;;  %v11498_v28 = vpack.c.bf16 %v3640_v46, %v12934_v56  ;;  %v7590_v20 = vadd.f32 -1.0, %v10063_v10  ;;  %8764 = vmatprep.mubr.bf16.mxu1 %v11494_v6 }
 0x340   : > { %v3578_v8 = vmul.f32 1.442695, %v3521_v9  ;;  %v11502_v54 = vadd.f32 %v8730_v12, %v11207_v23  ;;  %v11505_v61 = vpack.c.bf16 %v12934_v56, %v3641_v42  ;;  %v3644_v34 = vsel %vm3484_vm14, %v11393_v29, %v7587_v16 }
 0x341   : > { %v7588_v36 = vadd.f32 -1.0, %v10065_v31  ;;  %vm3490_vm2 = vcmp.gt.f32.partialorder %v11439_v59, 0.0  ;;  %v11512_v46 = vsel %vm4206_vm10, %v4228_v53, %v4229_v51  ;;  %v11515_v10 = vpack.c.bf16 %v12934_v56, %v3643_v55 }
 0x342   : > { %12937 = vst [vmem:[#allocation28_spill] sm:$0xff] %v11512_v46  ;;  %v3646_v12 = vsel %vm3486_vm13, %v11387_v7, %v7589_v37  ;;  %vm3488_vm3 = vcmp.gt.f32.partialorder %v11445_v17, 0.0  ;;  %10072 = vpow2.f32 %v3578_v8  ;;  %8761 = vmatmul.mubr.bf16.gmra.mrb[44].mxu0 %v11512_v46  ;;  %v3647_v42 = vsel %vm3487_vm15, %v11396_v19, %v7590_v20 }
 0x343   : > { %v3645_v29 = vsel %vm3485_vm1, %v11404_v22, %v7588_v36  ;;  %vm3491_vm4 = vcmp.gt.f32.partialorder %v11448_v47, 0.0  ;;  %v3526_v55 = vmin.f32 %v11502_v54, 0.0  ;;  %v11531_v3 = vadd.f32 %v11207_v23, %v3378_v1 }
 0x344   : > { %v11534_v37 = vpack.c.bf16 %v3644_v34, %v12934_v56  ;;  %v11537_v8 = vpack.c.bf16 %v12934_v56, %v3645_v29  ;;  %v11540_v7 = vadd.f32 %v8731_v62, %v11207_v23  ;;  %v11543_v19 = vadd.f32 %v11207_v23, %v3381_v50  ;;  %v9947_v50 = vld [vmem:[%s12725_s3 + $0x8] sm:$0xff]  }
 0x345   : > { %v3588_v22 = vmul.f32 1.442695, %v3526_v55  ;;  %v3524_v15 = vmin.f32 %v11531_v3, 0.0  ;;  %v4234_v9 = vrot.slane %v11498_v28, 4  ;;  %v4235_v1 = vrot.slane %v11505_v61, 4 }
 0x346   : > { %v11549_v53 = vpack.c.bf16 %v3646_v12, %v12934_v56  ;;  %v11552_v16 = vpack.c.bf16 %v12934_v56, %v3647_v42  ;;  %vm3489_vm5 = vcmp.gt.f32.partialorder %v11487_v45, 0.0  ;;  %v3527_v62 = vmin.f32 %v11540_v7, 0.0 }
 0x347   : > { %v3525_v23 = vmin.f32 %v11543_v19, 0.0  ;;  %v10067_v51 = vpop.eup %10066  ;;  %10074 = vpow2.f32 %v3588_v22  ;;  %v3584_v31 = vmul.f32 1.442695, %v3524_v15  ;;  %v11561_v20 = vsel %vm4206_vm10, %v4234_v9, %v4235_v1 }
 0x348   : > { %12938 = vst [vmem:[#allocation29_spill] sm:$0xff] %v11561_v20  ;;  %v4237_v34 = vrot.slane %v11474_v58, 4  ;;  %v10069_v36 = vpop.eup %10068  ;;  %v7593_v12 = vadd.f32 -1.0, %v10067_v51  ;;  %v3590_v42 = vmul.f32 1.442695, %v3527_v62  ;;  %8765 = vmatmul.mubr.bf16.vlgmr.msra.gmra.mrb[0].mxu1 %v11561_v20  ;;  %v4238_v55 = vrot.slane %v11515_v10, 4 }
 0x349   : > { %v3586_v29 = vmul.f32 1.442695, %v3525_v23  ;;  %vm3869_vm6 = vsmask.f32 4352  ;;  %v10071_v13 = vpop.eup %10070  ;;  %v7591_v38 = vadd.f32 -1.0, %v10069_v36  ;;  %10076 = vpow2.f32 %v3584_v31  ;;  %8781 = vmatpush3.bf16.msra.mxu1 %v11201_v4  ;;  %v9948_v23 = vld [vmem:[%s12725_s3 + $0x10] sm:$0xff]  }
 0x34a   : > { %v4240_v22 = vrot.slane %v11534_v37, 4  ;;  %v4241_v15 = vrot.slane %v11537_v8, 4  ;;  %v3650_v9 = vsel %vm3490_vm2, %v11439_v59, %v7593_v12  ;;  %v7594_v1 = vadd.f32 -1.0, %v10071_v13  ;;  %8782 = vmatprep.subr.bf16.mxu1 %v9947_v50 }
 0x34b   : > { %10078 = vpow2.f32 %v3590_v42  ;;  %v11573_v62 = vsel %vm4206_vm10, %v4237_v34, %v4238_v55  ;;  %v11579_v4 = vpack.c.bf16 %v3650_v9, %v12934_v56  ;;  %v3648_v51 = vsel %vm3488_vm3, %v11445_v17, %v7591_v38 }
 0x34c   : > { %12939 = vst [vmem:[#allocation30_spill] sm:$0xff] %v11573_v62  ;;  %vm3494_vm7 = vcmp.gt.f32.partialorder %v11502_v54, 0.0  ;;  %10080 = vpow2.f32 %v3586_v29  ;;  %8768 = vmatprep.mubr.bf16.mxu1 %v11573_v62  ;;  %v11587_v13 = vsel %vm4206_vm10, %v4240_v22, %v4241_v15  ;;  %v10073_v59 = vpop.eup %10072  ;;  %v11590_v31 = vpack.c.bf16 %v3648_v51, %v12934_v56  ;;  %v9949_v22 = vld [vmem:[%s12725_s3 + $0x18] sm:$0xff]  }
 0x34d   : > { %12940 = vst [vmem:[#allocation31_spill] sm:$0xff] %v11587_v13  ;;  %v3651_v34 = vsel %vm3491_vm4, %v11448_v47, %v7594_v1  ;;  %v4243_v36 = vrot.slane %v11549_v53, 4  ;;  %v4244_v38 = vrot.slane %v11552_v16, 4  ;;  %v7592_v12 = vadd.f32 -1.0, %v10073_v59  ;;  %8783 = vmatpush3.bf16.msra.mxu1 %v9947_v50 }
 0x34e   : > { %v11598_v17 = vpack.c.bf16 %v12934_v56, %v3651_v34  ;;  %vm3492_vm8 = vcmp.gt.f32.partialorder %v11531_v3, 0.0  ;;  %v4249_v42 = vrot.slane %v11579_v4, 4  ;;  %v12941_v29 = vshrl.u32 %v11262_v33, 16  ;;  %8784 = vmatprep.subr.bf16.mxu1 %v9948_v23 }
 0x34f   : > { %vm3495_vm9 = vcmp.gt.f32.partialorder %v11540_v7, 0.0  ;;  %v11606_v47 = vsel %vm4206_vm10, %v4243_v36, %v4244_v38  ;;  %v4246_v15 = vrot.slane %v11590_v31, 4  ;;  %v12943_v9 = vshll.u32 %v11262_v33, 16 }
 0x350   : > { %v3890_v55 = vrot.slane %v12941_v29, 3  ;;  %12942 = vst [vmem:[#allocation32_spill] sm:$0xff] %v11606_v47  ;;  %v12944_v1 = vshrl.u32 %v11289_v2, 16  ;;  %v3649_v59 = vsel %vm3489_vm5, %v11487_v45, %v7592_v12  ;;  %vm3493_vm11 = vcmp.gt.f32.partialorder %v11543_v19, 0.0  ;;  %8769 = vmatmul.mubr.bf16.gmra.mrb[4].mxu1 %v11587_v13 }
 0x351   : > { %v3893_v50 = vrot.slane %v12943_v9, 4  ;;  %v4250_v34 = vrot.slane %v11598_v17, 4  ;;  %v12945_v36 = vshll.u32 %v11289_v2, 16  ;;  %v12789_v29 = vshrl.u32 %v11280_v35, 16  ;;  %v10075_v45 = vpop.eup %10074  ;;  %8772 = vmatprep.mubr.bf16.mxu1 %v11606_v47  ;;  %8785 = vmatpush3.bf16.msra.mxu1 %v9948_v23 }
 0x352   : > { %v3898_v51 = vrot.slane %v12944_v1, 3  ;;  %v11625_v40 = vpack.c.bf16 %v12934_v56, %v3649_v59  ;;  %v12794_v1 = vshll.u32 %v11280_v35, 16  ;;  %v12797_v27 = vshrl.u32 %v11286_v39, 16  ;;  %8786 = vmatprep.subr.bf16.mxu1 %v9949_v22 }
 0x353   : > { %v3901_v38 = vrot.slane %v12945_v36, 4  ;;  %v3894_v9 = vor.u32 %v3893_v50, %v3890_v55  ;;  %v11632_v12 = vsel %vm4206_vm10, %v4249_v42, %v4250_v34  ;;  %v3907_v62 = vrot.slane %v12789_v29, 3  ;;  %v9950_v50 = vld [vmem:[%s12725_s3 + $0x20] sm:$0xff]  }
 0x354   : > { %12946 = vst [vmem:[#allocation33_spill] sm:$0xff] %v11632_v12  ;;  %v12800_v59 = vshll.u32 %v11286_v39, 16  ;;  %v7597_v20 = vadd.f32 -1.0, %v10075_v45  ;;  %v4247_v55 = vrot.slane %v11625_v40, 4  ;;  %v3910_v23 = vrot.slane %v12794_v1, 4 }
 0x355   : > { %v3902_v36 = vor.u32 %v3901_v38, %v3898_v51  ;;  %v3915_v42 = vrot.slane %v12797_v27, 3  ;;  %v10077_v51 = vpop.eup %10076  ;;  %v12816_v45 = vshrl.u32 %v11316_v0, 16  ;;  %8787 = vmatpush3.bf16.msra.mxu1 %v9949_v22 }
 0x356   : > { %v3918_v38 = vrot.slane %v12800_v59, 4  ;;  %v10079_v47 = vpop.eup %10078  ;;  %v3654_v13 = vsel %vm3494_vm7, %v11502_v54, %v7597_v20  ;;  %v7595_v1 = vadd.f32 -1.0, %v10077_v51  ;;  %v11656_v6 = vsel %vm4206_vm10, %v4246_v15, %v4247_v55  ;;  %8788 = vmatprep.subr.bf16.mxu1 %v9950_v50  ;;  %v9951_v20 = vld [vmem:[%s12725_s3 + $0x28] sm:$0xff]  }
 0x357   : > { %v11646_v34 = vsel %vm3869_vm6, %v3894_v9, %v3902_v36  ;;  %12947 = vst [vmem:[#allocation34_spill] sm:$0xff] %v11656_v6  ;;  %v3911_v27 = vor.u32 %v3910_v23, %v3907_v62  ;;  %v10081_v46 = vpop.eup %10080  ;;  %v11659_v9 = vpack.c.bf16 %v3654_v13, %v12934_v56  ;;  %v7598_v36 = vadd.f32 -1.0, %v10079_v47 }
 0x358   : > { %v3919_v59 = vor.u32 %v3918_v38, %v3915_v42  ;;  %v3924_v29 = vrot.slane %v12816_v45, 3  ;;  %v3652_v63 = vsel %vm3492_vm8, %v11531_v3, %v7595_v1  ;;  %v7596_v54 = vadd.f32 -1.0, %v10081_v46  ;;  %8773 = vmatmul.mubr.bf16.gmra.mrb[8].mxu1 %v11656_v6 }
 0x359   : > { %v12948_v62 = vshll.u32 %v11316_v0, 16  ;;  %v12808_v47 = vshrl.u32 %v11333_v48, 16  ;;  %v11673_v22 = vpack.c.bf16 %v3652_v63, %v12934_v56  ;;  %v3655_v15 = vsel %vm3495_vm9, %v11540_v7, %v7598_v36  ;;  %8776 = vmatprep.mubr.bf16.mxu1 %v11632_v12  ;;  %8789 = vmatpush3.bf16.msra.mxu1 %v9950_v50 }
 0x35a   : > { %v11679_v3 = vsel %vm3869_vm6, %v3911_v27, %v3919_v59  ;;  %v12803_v46 = vshll.u32 %v11333_v48, 16  ;;  %v11683_v1 = vpack.c.bf16 %v12934_v56, %v3655_v15  ;;  %v3653_v55 = vsel %vm3493_vm11, %v11543_v19, %v7596_v54  ;;  %8790 = vmatprep.subr.bf16.mxu1 %v9951_v20  ;;  %v9952_v19 = vld [vmem:[%s12725_s3 + $0x30] sm:$0xff]  }
 0x35b   : > { %v3927_v13 = vrot.slane %v12948_v62, 4  ;;  %12949 = vst [vmem:[#allocation35_spill] sm:$0xff] %v11679_v3  ;;  %v3932_v23 = vrot.slane %v12808_v47, 3  ;;  %v11692_v7 = vpack.c.bf16 %v12934_v56, %v3653_v55  ;;  %v4252_v27 = vrot.slane %v11673_v22, 4 }
 0x35c   : > { %v3935_v59 = vrot.slane %v12803_v46, 4  ;;  %v12804_v42 = vshrl.u32 %v11342_v11, 16  ;;  %v12807_v56 = vshrl.u32 %v11348_v21, 16  ;;  %v12806_v51 = vshll.u32 %v11348_v21, 16 }
 0x35d   : > { %v3928_v63 = vor.u32 %v3927_v13, %v3924_v29  ;;  %v12805_v29 = vshll.u32 %v11342_v11, 16  ;;  %v12810_v50 = vshrl.u32 %v11381_v14, 16  ;;  %v4253_v38 = vrot.slane %v11692_v7, 4  ;;  %8791 = vmatpush3.bf16.msra.mxu1 %v9951_v20 }
 0x35e   : > { %v3936_v36 = vor.u32 %v3935_v59, %v3932_v23  ;;  %v3941_v54 = vrot.slane %v12804_v42, 3  ;;  %v12809_v62 = vshll.u32 %v11381_v14, 16  ;;  %v3949_v15 = vrot.slane %v12807_v56, 3  ;;  %8792 = vmatprep.subr.bf16.mxu1 %v9952_v19 }
 0x35f   : > { %v3944_v13 = vrot.slane %v12805_v29, 4  ;;  %v3952_v55 = vrot.slane %v12806_v51, 4  ;;  %v3958_v46 = vrot.slane %v12810_v50, 3  ;;  %v11719_v23 = vsel %vm4206_vm10, %v4252_v27, %v4253_v38  ;;  %v9953_v51 = vld [vmem:[%s12725_s3 + $0x38] sm:$0xff]  }
 0x360   : > { %12950 = vst [vmem:[#allocation36_spill] sm:$0xff] %v11719_v23  ;;  %v11722_v59 = vsel %vm3869_vm6, %v3928_v63, %v3936_v36  ;;  %v3961_v42 = vrot.slane %v12809_v62, 4  ;;  %v12814_v29 = vshrl.u32 %v11412_v44, 16  ;;  %v12812_v20 = vshll.u32 %v11412_v44, 16  ;;  %8777 = vmatmul.mubr.bf16.gmra.mrb[12].mxu1 %v11719_v23 }
 0x361   : > { %12951 = vst [vmem:[#allocation37_spill] sm:$0xff] %v11722_v59  ;;  %v3945_v56 = vor.u32 %v3944_v13, %v3941_v54  ;;  %v3953_v47 = vor.u32 %v3952_v55, %v3949_v15  ;;  %v12811_v27 = vshrl.u32 %v11373_v43, 16  ;;  %v12813_v36 = vshll.u32 %v11373_v43, 16  ;;  %8793 = vmatpush3.bf16.msra.mxu1 %v9952_v19  ;;  %8796 = vmatprep.mubr.bf16.mxu1 %v11255_v18  ;;  %v9954_v55 = vld [vmem:[%s12725_s3 + $0x80] sm:$0xff]  }
 0x362   : > { %v3962_v38 = vor.u32 %v3961_v42, %v3958_v46  ;;  %v3966_v63 = vrot.slane %v12814_v29, 3  ;;  %v12815_v62 = vshrl.u32 %v11416_v32, 16  ;;  %v3969_v54 = vrot.slane %v12812_v20, 4  ;;  %8794 = vmatprep.subr.bf16.mxu1 %v9953_v51 }
 0x363   : > { %v11738_v50 = vsel %vm3869_vm6, %v3945_v56, %v3953_v47  ;;  %v3975_v13 = vrot.slane %v12811_v27, 3  ;;  %v12820_v46 = vshll.u32 %v11416_v32, 16  ;;  %v3978_v42 = vrot.slane %v12813_v36, 4 }
 0x364   : > { %12952 = vst [vmem:[#allocation38_spill] sm:$0xff] %v11738_v50  ;;  %v3983_v15 = vrot.slane %v12815_v62, 3  ;;  %v12821_v47 = vshrl.u32 %v11451_v25, 16  ;;  %v12822_v56 = vshll.u32 %v11451_v25, 16  ;;  %v3970_v27 = vor.u32 %v3969_v54, %v3966_v63 }
 0x365   : > { %v3986_v19 = vrot.slane %v12820_v46, 4  ;;  %v12827_v20 = vshrl.u32 %v11468_v26, 16  ;;  %v12824_v36 = vshll.u32 %v11468_v26, 16  ;;  %v3979_v29 = vor.u32 %v3978_v42, %v3975_v13  ;;  %8795 = vmatpush3.bf16.msra.mxu1 %v9953_v51 }
 0x366   : > { %v3992_v62 = vrot.slane %v12821_v47, 3  ;;  %v3995_v45 = vrot.slane %v12822_v56, 4  ;;  %v12823_v18 = vshrl.u32 %v11421_v52, 16  ;;  %v11765_v23 = vsel %vm3869_vm6, %v3962_v38, %v3970_v27  ;;  %8828 = vmatprep.subr.bf16.mxu1 %v9954_v55  ;;  %v9955_v27 = vld [vmem:[%s12725_s3 + $0x88] sm:$0xff]  }
 0x367   : > { %12953 = vst [vmem:[#allocation39_spill] sm:$0xff] %v11765_v23  ;;  %v3987_v63 = vor.u32 %v3986_v19, %v3983_v15  ;;  %v4000_v54 = vrot.slane %v12827_v20, 3  ;;  %v4003_v46 = vrot.slane %v12824_v36, 4  ;;  %v12826_v47 = vshll.u32 %v11421_v52, 16 }
 0x368   : > { %v3996_v13 = vor.u32 %v3995_v45, %v3992_v62  ;;  %v4009_v42 = vrot.slane %v12823_v18, 3  ;;  %v12825_v56 = vshrl.u32 %v11461_v5, 16  ;;  %v12829_v19 = vshll.u32 %v11461_v5, 16  ;;  %8797 = vmatmul.mubr.bf16.vlgmr.msra.gmra.mrb[16].mxu1 %v11646_v34 }
 0x369   : > { %v11779_v38 = vsel %vm3869_vm6, %v3979_v29, %v3987_v63  ;;  %v4004_v15 = vor.u32 %v4003_v46, %v4000_v54  ;;  %v12828_v45 = vshrl.u32 %v11498_v28, 16  ;;  %v4012_v51 = vrot.slane %v12826_v47, 4  ;;  %8800 = vmatprep.mubr.bf16.mxu1 %v11679_v3  ;;  %8829 = vmatpush3.bf16.msra.mxu1 %v9954_v55 }
 0x36a   : > { %12954 = vst [vmem:[#allocation40_spill] sm:$0xff] %v11779_v38  ;;  %v4017_v62 = vrot.slane %v12825_v56, 3  ;;  %v12830_v18 = vshll.u32 %v11498_v28, 16  ;;  %v12831_v36 = vshrl.u32 %v11505_v61, 16  ;;  %v4020_v46 = vrot.slane %v12829_v19, 4  ;;  %8830 = vmatprep.subr.bf16.mxu1 %v9955_v27 }
 0x36b   : > { %v11791_v29 = vsel %vm3869_vm6, %v3996_v13, %v4004_v15  ;;  %v4026_v63 = vrot.slane %v12828_v45, 3  ;;  %v12839_v54 = vshll.u32 %v11505_v61, 16  ;;  %v4013_v56 = vor.u32 %v4012_v51, %v4009_v42  ;;  %v9956_v15 = vld [vmem:[%s12725_s3 + $0x90] sm:$0xff]  }
 0x36c   : > { %v4029_v47 = vrot.slane %v12830_v18, 4  ;;  %v4034_v20 = vrot.slane %v12831_v36, 3  ;;  %v12838_v13 = vshrl.u32 %v11474_v58, 16  ;;  %v4021_v45 = vor.u32 %v4020_v46, %v4017_v62 }
 0x36d   : > { %v4037_v19 = vrot.slane %v12839_v54, 4  ;;  %v12843_v55 = vshll.u32 %v11474_v58, 16  ;;  %v12842_v42 = vshrl.u32 %v11515_v10, 16  ;;  %v12840_v36 = vshll.u32 %v11515_v10, 16  ;;  %8831 = vmatpush3.bf16.msra.mxu1 %v9955_v27 }
 0x36e   : > { %v4030_v51 = vor.u32 %v4029_v47, %v4026_v63  ;;  %v4043_v18 = vrot.slane %v12838_v13, 3  ;;  %v12841_v12 = vshrl.u32 %v11534_v37, 16  ;;  %v11816_v6 = vsel %vm3869_vm6, %v4013_v56, %v4021_v45  ;;  %8832 = vmatprep.subr.bf16.mxu1 %v9956_v15 }
 0x36f   : > { %v4038_v30 = vor.u32 %v4037_v19, %v4034_v20  ;;  %v4046_v62 = vrot.slane %v12843_v55, 4  ;;  %v4051_v46 = vrot.slane %v12842_v42, 3  ;;  %v4054_v47 = vrot.slane %v12840_v36, 4  ;;  %v9957_v20 = vld [vmem:[%s12725_s3 + $0x98] sm:$0xff]  }
 0x370   : > { %v4060_v63 = vrot.slane %v12841_v12, 3  ;;  %v12845_v13 = vshll.u32 %v11534_v37, 16  ;;  %v12844_v54 = vshrl.u32 %v11537_v8, 16  ;;  %v12847_v27 = vshll.u32 %v11537_v8, 16  ;;  %8801 = vmatmul.mubr.bf16.gmra.mrb[20].mxu1 %v11722_v59 }
 0x371   : > { %v11832_v56 = vsel %vm3869_vm6, %v4030_v51, %v4038_v30  ;;  %v4047_v19 = vor.u32 %v4046_v62, %v4043_v18  ;;  %v12846_v45 = vshrl.u32 %v11549_v53, 16  ;;  %v4055_v36 = vor.u32 %v4054_v47, %v4051_v46  ;;  %8804 = vmatprep.mubr.bf16.mxu1 %v11738_v50  ;;  %8833 = vmatpush3.bf16.msra.mxu1 %v9956_v15 }
 0x372   : > { %v4063_v12 = vrot.slane %v12845_v13, 4  ;;  %v4068_v42 = vrot.slane %v12844_v54, 3  ;;  %v12850_v55 = vshll.u32 %v11549_v53, 16  ;;  %v4071_v30 = vrot.slane %v12847_v27, 4  ;;  %8834 = vmatprep.subr.bf16.mxu1 %v9957_v20 }
 0x373   : > { %v4077_v18 = vrot.slane %v12846_v45, 3  ;;  %v12853_v51 = vshrl.u32 %v11552_v16, 16  ;;  %v11850_v46 = vsel %vm3869_vm6, %v4047_v19, %v4055_v36  ;;  %v12854_v13 = vshrl.u32 %v11590_v31, 16  ;;  %v9958_v45 = vld [vmem:[%s12725_s3 + $0xa0] sm:$0xff]  }
 0x374   : > { %v4064_v47 = vor.u32 %v4063_v12, %v4060_v63  ;;  %v4080_v54 = vrot.slane %v12850_v55, 4  ;;  %v4072_v27 = vor.u32 %v4071_v30, %v4068_v42  ;;  %v12955_v15 = vshll.u32 %v11552_v16, 16 }
 0x375   : > { %v4085_v62 = vrot.slane %v12853_v51, 3  ;;  %v12857_v36 = vshll.u32 %v11590_v31, 16  ;;  %v4094_v63 = vrot.slane %v12854_v13, 3  ;;  %v12855_v19 = vshrl.u32 %v11625_v40, 16  ;;  %8835 = vmatpush3.bf16.msra.mxu1 %v9957_v20 }
 0x376   : > { %v4088_v24 = vrot.slane %v12955_v15, 4  ;;  %v4081_v12 = vor.u32 %v4080_v54, %v4077_v18  ;;  %v12856_v55 = vshll.u32 %v11625_v40, 16  ;;  %v11868_v60 = vsel %vm3869_vm6, %v4064_v47, %v4072_v27  ;;  %8836 = vmatprep.subr.bf16.mxu1 %v9958_v45 }
 0x377   : > { %v4097_v30 = vrot.slane %v12857_v36, 4  ;;  %v12862_v51 = vshrl.u32 %v11579_v4, 16  ;;  %v4102_v54 = vrot.slane %v12855_v19, 3  ;;  %v12861_v15 = vshll.u32 %v11579_v4, 16 }
 0x378   : > { %v4089_v42 = vor.u32 %v4088_v24, %v4085_v62  ;;  %v4105_v18 = vrot.slane %v12856_v55, 4  ;;  %v12860_v13 = vshrl.u32 %v11598_v17, 16  ;;  %v9959_v24 = vld [vmem:[%s12725_s3 + $0xa8] sm:$0xff]   ;;  %v12863_v47 = vshll.u32 %v11598_v17, 16  ;;  %8805 = vmatmul.mubr.bf16.gmra.mrb[24].mxu1 %v11765_v23 }
 0x379   : > { %v4098_v62 = vor.u32 %v4097_v30, %v4094_v63  ;;  %v4111_v20 = vrot.slane %v12862_v51, 3  ;;  %v4114_v55 = vrot.slane %v12861_v15, 4  ;;  %v12865_v49 = vshrl.u32 %v11673_v22, 16  ;;  %8808 = vmatprep.mubr.bf16.mxu1 %v11779_v38  ;;  %8837 = vmatpush3.bf16.msra.mxu1 %v9958_v45 }
 0x37a   : > { %v11883_v27 = vsel %vm3869_vm6, %v4081_v12, %v4089_v42  ;;  %v4106_v19 = vor.u32 %v4105_v18, %v4102_v54  ;;  %v4119_v36 = vrot.slane %v12860_v13, 3  ;;  %v4122_v12 = vrot.slane %v12863_v47, 4  ;;  %8838 = vmatprep.subr.bf16.mxu1 %v9959_v24  ;;  %v9960_v47 = vld [vmem:[%s12725_s3 + $0xb0] sm:$0xff]  }
 0x37b   : > { %v12868_v63 = vshll.u32 %v11673_v22, 16  ;;  %v4115_v18 = vor.u32 %v4114_v55, %v4111_v20  ;;  %v4128_v13 = vrot.slane %v12865_v49, 3  ;;  %v12956_v15 = vmov 0  }
 0x37c   : > { %v11901_v54 = vsel %vm3869_vm6, %v4098_v62, %v4106_v19  ;;  %v4707_v51 = vrot.slane %v12956_v15, 5  ;;  %v4123_v42 = vor.u32 %v4122_v12, %v4119_v36  ;;  %v12957_v45 = vshrl.u32 %v11692_v7, 16 }
 0x37d   : > { %v4131_v30 = vrot.slane %v12868_v63, 4  ;;  %v12958_v19 = vshll.u32 %v11692_v7, 16  ;;  %v12959_v15 = vshrl.u32 %v11262_v33, 16  ;;  %v12960_v49 = vshll.u32 %v11262_v33, 16  ;;  %8839 = vmatpush3.bf16.msra.mxu1 %v9959_v24 }
 0x37e   : > { %v4136_v41 = vrot.slane %v12957_v45, 3  ;;  %v11916_v62 = vor.u32 %v4707_v51, %v11250_v57  ;;  %v12961_v36 = vshrl.u32 %v11289_v2, 16  ;;  %v11925_v63 = vsel %vm3869_vm6, %v4115_v18, %v4123_v42  ;;  %8840 = vmatprep.subr.bf16.mxu1 %v9960_v47 }
 0x37f   : > { %v4139_v55 = vrot.slane %v12958_v19, 4  ;;  %v4713_v20 = vrot.slane %v12959_v15, 4  ;;  %v4714_v38 = vrot.slane %v12960_v49, 5  ;;  %v4132_v23 = vor.u32 %v4131_v30, %v4128_v13 }
 0x380   : > { %v4716_v12 = vrot.slane %v12961_v36, 4  ;;  %v12962_v50 = vshll.u32 %v11289_v2, 16  ;;  %v12963_v51 = vshrl.u32 %v11280_v35, 16  ;;  %v12964_v15 = vshll.u32 %v11280_v35, 16  ;;  %v9961_v2 = vld [vmem:[%s12725_s3 + $0xb8] sm:$0xff]   ;;  %8809 = vmatmul.mubr.bf16.gmra.mrb[28].mxu1 %v11791_v29 }
 0x381   : > { %v4140_v45 = vor.u32 %v4139_v55, %v4136_v41  ;;  %v4715_v57 = vor.u32 %v4714_v38, %v4713_v20  ;;  %v12965_v49 = vshrl.u32 %v11286_v39, 16  ;;  %v12967_v13 = vshrl.u32 %v11316_v0, 16  ;;  %8812 = vmatprep.mubr.bf16.mxu1 %v11816_v6  ;;  %8841 = vmatpush3.bf16.msra.mxu1 %v9960_v47 }
 0x382   : > { %v4717_v19 = vrot.slane %v12962_v50, 5  ;;  %v4720_v59 = vrot.slane %v12963_v51, 4  ;;  %v4721_v33 = vrot.slane %v12964_v15, 5  ;;  %v12966_v50 = vshll.u32 %v11286_v39, 16  ;;  %8842 = vmatprep.subr.bf16.mxu1 %v9961_v2 }
 0x383   : > { %v4723_v3 = vrot.slane %v12965_v49, 4  ;;  %v11936_v42 = vsel %vm3869_vm6, %v4132_v23, %v4140_v45  ;;  %v4727_v24 = vrot.slane %v12967_v13, 4  ;;  %v12968_v30 = vshll.u32 %v11316_v0, 16 }
 0x384   : > { %v4718_v41 = vor.u32 %v4717_v19, %v4716_v12  ;;  %v4724_v38 = vrot.slane %v12966_v50, 5  ;;  %v4722_v35 = vor.u32 %v4721_v33, %v4720_v59  ;;  %v12969_v55 = vshrl.u32 %v11333_v48, 16 }
 0x385   : > { %v4728_v18 = vrot.slane %v12968_v30, 5  ;;  %v12970_v23 = vshll.u32 %v11333_v48, 16  ;;  %v12971_v45 = vshrl.u32 %v11342_v11, 16  ;;  %v12972_v59 = vshll.u32 %v11342_v11, 16  ;;  %8843 = vmatpush3.bf16.msra.mxu1 %v9961_v2 }
 0x386   : > { %v4730_v20 = vrot.slane %v12969_v55, 4  ;;  %v11953_v12 = vsel %vm350_vm0, %v4715_v57, %v4718_v41  ;;  %v4725_v39 = vor.u32 %v4724_v38, %v4723_v3  ;;  %v12973_v48 = vshrl.u32 %v11348_v21, 16  ;;  %v11967_v3 = vld [vmem:[%s12725_s3 + $0xc0] sm:$0xff]  }
 0x387   : > { %v4731_v36 = vrot.slane %v12970_v23, 5  ;;  %v4734_v19 = vrot.slane %v12971_v45, 4  ;;  %v4735_v51 = vrot.slane %v12972_v59, 5  ;;  %v4729_v0 = vor.u32 %v4728_v18, %v4727_v24  ;;  %8876 = vmatprep.subr.bf16.mxu1 %v11967_v3 }
 0x388   : > { %v4737_v33 = vrot.slane %v12973_v48, 4  ;;  %v12974_v49 = vshll.u32 %v11348_v21, 16  ;;  %v11970_v11 = vsel %vm350_vm0, %v4722_v35, %v4725_v39  ;;  %v12975_v47 = vshrl.u32 %v11381_v14, 16  ;;  %8813 = vmatmul.mubr.bf16.gmra.mrb[0].mxu1 %v11832_v56 }
 0x389   : > { %v4732_v15 = vor.u32 %v4731_v36, %v4730_v20  ;;  %v4736_v57 = vor.u32 %v4735_v51, %v4734_v19  ;;  %v12976_v38 = vshll.u32 %v11381_v14, 16  ;;  %v12977_v30 = vshrl.u32 %v11412_v44, 16  ;;  %8816 = vmatprep.mubr.bf16.mxu1 %v11850_v46 }
 0x38a   : > { %v4738_v50 = vrot.slane %v12974_v49, 5  ;;  %v4741_v41 = vrot.slane %v12975_v47, 4  ;;  %v12978_v55 = vshll.u32 %v11412_v44, 16  ;;  %v12979_v35 = vshrl.u32 %v11373_v43, 16 }
 0x38b   : > { %v4742_v13 = vrot.slane %v12976_v38, 5  ;;  %v11977_v24 = vsel %vm350_vm0, %v4729_v0, %v4732_v15  ;;  %v4744_v18 = vrot.slane %v12977_v30, 4  ;;  %v12980_v39 = vshll.u32 %v11373_v43, 16 }
 0x38c   : > { %v4739_v21 = vor.u32 %v4738_v50, %v4737_v33  ;;  %v4745_v20 = vrot.slane %v12978_v55, 5  ;;  %v4748_v36 = vrot.slane %v12979_v35, 4  ;;  %v12981_v14 = vshrl.u32 %v11416_v32, 16 }
 0x38d   : > { %v4743_v23 = vor.u32 %v4742_v13, %v4741_v41  ;;  %v4749_v45 = vrot.slane %v12980_v39, 5  ;;  %v12982_v0 = vshll.u32 %v11416_v32, 16  ;;  %v12983_v44 = vshrl.u32 %v11451_v25, 16 }
 0x38e   : > { %v4751_v19 = vrot.slane %v12981_v14, 4  ;;  %v11990_v59 = vsel %vm350_vm0, %v4736_v57, %v4739_v21  ;;  %v4746_v51 = vor.u32 %v4745_v20, %v4744_v18  ;;  %v12984_v43 = vshll.u32 %v11451_v25, 16 }
 0x38f   : > { %v4752_v15 = vrot.slane %v12982_v0, 5  ;;  %v4755_v48 = vrot.slane %v12983_v44, 4  ;;  %v4750_v33 = vor.u32 %v4749_v45, %v4748_v36  ;;  %v12985_v50 = vshrl.u32 %v11468_v26, 16 }
 0x390   : > { %v4756_v49 = vrot.slane %v12984_v43, 5  ;;  %v12986_v2 = vshll.u32 %v11468_v26, 16  ;;  %v12004_v41 = vsel %vm350_vm0, %v4743_v23, %v4746_v51  ;;  %v12987_v38 = vshrl.u32 %v11421_v52, 16  ;;  %8817 = vmatmul.mubr.bf16.gmra.mrb[4].mxu1 %v11868_v60 }
 0x391   : > { %v4758_v47 = vrot.slane %v12985_v50, 4  ;;  %v4753_v32 = vor.u32 %v4752_v15, %v4751_v19  ;;  %v12988_v21 = vshll.u32 %v11421_v52, 16  ;;  %v12989_v55 = vshrl.u32 %v11461_v5, 16  ;;  %8820 = vmatprep.mubr.bf16.mxu1 %v11883_v27 }
 0x392   : > { %v4759_v57 = vrot.slane %v12986_v2, 5  ;;  %v4762_v13 = vrot.slane %v12987_v38, 4  ;;  %v4757_v25 = vor.u32 %v4756_v49, %v4755_v48  ;;  %v12990_v26 = vshll.u32 %v11461_v5, 16 }
 0x393   : > { %v4763_v30 = vrot.slane %v12988_v21, 5  ;;  %v4765_v20 = vrot.slane %v12989_v55, 4  ;;  %v12017_v23 = vsel %vm350_vm0, %v4750_v33, %v4753_v32  ;;  %v12991_v39 = vshrl.u32 %v11498_v28, 16 }
 0x394   : > { %v4760_v18 = vor.u32 %v4759_v57, %v4758_v47  ;;  %v4766_v35 = vrot.slane %v12990_v26, 5  ;;  %v12992_v45 = vshll.u32 %v11498_v28, 16  ;;  %v12993_v0 = vshrl.u32 %v11505_v61, 16 }
 0x395   : > { %v4764_v36 = vor.u32 %v4763_v30, %v4762_v13  ;;  %v4769_v52 = vrot.slane %v12991_v39, 4  ;;  %v12994_v15 = vshll.u32 %v11505_v61, 16  ;;  %v12995_v33 = vshrl.u32 %v11474_v58, 16 }
 0x396   : > { %v4770_v14 = vrot.slane %v12992_v45, 5  ;;  %v12024_v19 = vsel %vm350_vm0, %v4757_v25, %v4760_v18  ;;  %v4767_v51 = vor.u32 %v4766_v35, %v4765_v20  ;;  %v4772_v5 = vrot.slane %v12993_v0, 4 }
 0x397   : > { %v4773_v44 = vrot.slane %v12994_v15, 5  ;;  %v4776_v43 = vrot.slane %v12995_v33, 4  ;;  %v12996_v49 = vshll.u32 %v11474_v58, 16  ;;  %v12997_v28 = vshrl.u32 %v11515_v10, 16 }
 0x398   : > { %v4771_v48 = vor.u32 %v4770_v14, %v4769_v52  ;;  %v12037_v2 = vsel %vm350_vm0, %v4764_v36, %v4767_v51  ;;  %v12998_v32 = vshll.u32 %v11515_v10, 16  ;;  %v12999_v61 = vshrl.u32 %v11534_v37, 16  ;;  %8821 = vmatmul.mubr.bf16.gmra.mrb[8].mxu1 %v11901_v54 }
 0x399   : > { %v4777_v50 = vrot.slane %v12996_v49, 5  ;;  %v4779_v47 = vrot.slane %v12997_v28, 4  ;;  %v4774_v57 = vor.u32 %v4773_v44, %v4772_v5  ;;  %v13000_v30 = vshll.u32 %v11534_v37, 16  ;;  %8824 = vmatprep.mubr.bf16.mxu1 %v11925_v63 }
 0x39a   : > { %v4780_v38 = vrot.slane %v12998_v32, 5  ;;  %v4783_v13 = vrot.slane %v12999_v61, 4  ;;  %v13001_v58 = vshrl.u32 %v11537_v8, 16  ;;  %v13002_v55 = vshll.u32 %v11537_v8, 16 }
 0x39b   : > { %v4778_v21 = vor.u32 %v4777_v50, %v4776_v43  ;;  %v4784_v25 = vrot.slane %v13000_v30, 5  ;;  %v12050_v26 = vsel %vm350_vm0, %v4771_v48, %v4774_v57  ;;  %v13003_v10 = vshrl.u32 %v11549_v53, 16 }
 0x39c   : > { %v4786_v18 = vrot.slane %v13001_v58, 4  ;;  %v4787_v20 = vrot.slane %v13002_v55, 5  ;;  %v4781_v35 = vor.u32 %v4780_v38, %v4779_v47  ;;  %v13004_v39 = vshll.u32 %v11549_v53, 16 }
 0x39d   : > { %v4790_v36 = vrot.slane %v13003_v10, 4  ;;  %v4785_v45 = vor.u32 %v4784_v25, %v4783_v13  ;;  %v13005_v37 = vshrl.u32 %v11552_v16, 16  ;;  %v13006_v0 = vshll.u32 %v11552_v16, 16 }
 0x39e   : > { %v4791_v52 = vrot.slane %v13004_v39, 5  ;;  %v4788_v14 = vor.u32 %v4787_v20, %v4786_v18  ;;  %v12062_v8 = vsel %vm350_vm0, %v4778_v21, %v4781_v35  ;;  %v13007_v44 = vshrl.u32 %v11590_v31, 16 }
 0x39f   : > { %v4793_v51 = vrot.slane %v13005_v37, 4  ;;  %v4794_v5 = vrot.slane %v13006_v0, 5  ;;  %v13008_v53 = vshll.u32 %v11590_v31, 16  ;;  %v13009_v16 = vshrl.u32 %v11625_v40, 16 }
 0x3a0   : > { %v4792_v15 = vor.u32 %v4791_v52, %v4790_v36  ;;  %v4797_v48 = vrot.slane %v13007_v44, 4  ;;  %v12070_v43 = vsel %vm350_vm0, %v4785_v45, %v4788_v14  ;;  %v13010_v28 = vshll.u32 %v11625_v40, 16  ;;  %8825 = vmatmul.mubr.bf16.gmra.mrb[12].mxu1 %v11936_v42 }
 0x3a1   : > { %v4798_v33 = vrot.slane %v13008_v53, 5  ;;  %v4795_v49 = vor.u32 %v4794_v5, %v4793_v51  ;;  %v4800_v50 = vrot.slane %v13009_v16, 4  ;;  %v13011_v32 = vshrl.u32 %v11579_v4, 16  ;;  %8844 = vmatprep.mubr.bf16.mxu1 %v11916_v62 }
 0x3a2   : > { %v4801_v47 = vrot.slane %v13010_v28, 5  ;;  %v13012_v61 = vshll.u32 %v11579_v4, 16  ;;  %v13013_v13 = vshrl.u32 %v11598_v17, 16  ;;  %v13014_v58 = vshll.u32 %v11598_v17, 16 }
 0x3a3   : > { %v4799_v57 = vor.u32 %v4798_v33, %v4797_v48  ;;  %v4804_v38 = vrot.slane %v13011_v32, 4  ;;  %v12083_v30 = vsel %vm350_vm0, %v4792_v15, %v4795_v49  ;;  %v13015_v40 = vshrl.u32 %v11673_v22, 16 }
 0x3a4   : > { %v4805_v31 = vrot.slane %v13012_v61, 5  ;;  %v4807_v21 = vrot.slane %v13013_v13, 4  ;;  %v4802_v25 = vor.u32 %v4801_v47, %v4800_v50  ;;  %v4808_v18 = vrot.slane %v13014_v58, 5  ;;  %v9965_v58 = vld [vmem:[%s12725_s3 + $0xd8] sm:$0xff]  }
 0x3a5   : > { %v4811_v55 = vrot.slane %v13015_v40, 4  ;;  %v13016_v35 = vshll.u32 %v11673_v22, 16  ;;  %v13017_v4 = vshrl.u32 %v11692_v7, 16  ;;  %v13018_v39 = vshll.u32 %v11692_v7, 16  ;;  %v9968_v40 = vld [vmem:[%s12725_s3 + $0xf0] sm:$0xff]  }
 0x3a6   : > { %v4806_v20 = vor.u32 %v4805_v31, %v4804_v38  ;;  %v12096_v45 = vsel %vm350_vm0, %v4799_v57, %v4802_v25  ;;  %v4809_v14 = vor.u32 %v4808_v18, %v4807_v21  ;;  %v5093_v17 = vshrl.u32 %v11659_v9, 16  ;;  %v9964_v25 = vld [vmem:[%s12725_s3 + $0xd0] sm:$0xff]   ;;  %v9967_v18 = vld [vmem:[%s12725_s3 + $0xe8] sm:$0xff]  }
 0x3a7   : > { %v4812_v10 = vrot.slane %v13016_v35, 5  ;;  %v4814_v36 = vrot.slane %v13017_v4, 4  ;;  %v4815_v52 = vrot.slane %v13018_v39, 5  ;;  %v5096_v37 = vshll.u32 %v11659_v9, 16  ;;  %v9971_v35 = vld [vmem:[%s12725_s3 + $0x108] sm:$0xff]   ;;  %v13020_v4 = vld [vmem:[#allocation37_spill] sm:$0xff] }
 0x3a8   : > { %v5101_v5 = vshrl.u32 %v11683_v1, 16  ;;  %v5104_v22 = vshll.u32 %v11683_v1, 16  ;;  %v12103_v15 = vsel %vm350_vm0, %v4806_v20, %v4809_v14  ;;  %v5095_v44 = vrot.slane %v5093_v17, 3  ;;  %8845 = vmatmul.mubr.bf16.vlgmr.msra.gmra.mrb[16].mxu1 %v11953_v12  ;;  %v9970_v20 = vld [vmem:[%s12725_s3 + $0x100] sm:$0xff]   ;;  %v13021_v39 = vld [vmem:[#allocation38_spill] sm:$0xff] }
 0x3a9   : > { %v4813_v51 = vor.u32 %v4812_v10, %v4811_v55  ;;  %v4816_v0 = vor.u32 %v4815_v52, %v4814_v36  ;;  %v5098_v7 = vrot.slane %v5096_v37, 4  ;;  %v5370_v48 = vrot.slane %v11659_v9, 4  ;;  %8848 = vmatprep.mubr.bf16.mxu1 %v11970_v11  ;;  %8877 = vmatpush3.bf16.msra.mxu1 %v11967_v3  ;;  %v9966_v3 = vld [vmem:[%s12725_s3 + $0xe0] sm:$0xff]   ;;  %v9969_v55 = vld [vmem:[%s12725_s3 + $0xf8] sm:$0xff]   ;;  %v9972_v36 = vld [vmem:[%s12725_s3 + $0x110] sm:$0xff]  }
 0x3aa   : > { %v5103_v33 = vrot.slane %v5101_v5, 3  ;;  %v5106_v49 = vrot.slane %v5104_v22, 4  ;;  %v5371_v16 = vrot.slane %v11683_v1, 4  ;;  %v5632_v50 = vrot.slane %v5093_v17, 4  ;;  %v9963_v1 = vld [vmem:[%s12725_s3 + $0xc8] sm:$0xff]   ;;  %v13019_v10 = vld [vmem:[#allocation35_spill] sm:$0xff] }
 0x3ab   : > { %v12108_v53 = vsel %vm350_vm0, %v4813_v51, %v4816_v0  ;;  %v5633_v28 = vrot.slane %v5096_v37, 5  ;;  %v5635_v47 = vrot.slane %v5101_v5, 4  ;;  %v5099_v57 = vor.u32 %v5098_v7, %v5095_v44  ;;  %8878 = vmatprep.subr.bf16.mxu1 %v9963_v1  ;;  %v13022_v52 = vld [vmem:[#allocation39_spill] sm:$0xff]  ;;  %v9975_v37 = vld [vmem:[%s12725_s3 + $0x128] sm:$0xff]   ;;  %v9976_v44 = vld [vmem:[%s12725_s3 + $0x130] sm:$0xff]  }
 0x3ac   : > { %v5107_v32 = vor.u32 %v5106_v49, %v5103_v33  ;;  %v12113_v38 = vsel %vm4206_vm10, %v5370_v48, %v5371_v16  ;;  %v5636_v9 = vrot.slane %v5104_v22, 5  ;;  %v9974_v14 = vld [vmem:[%s12725_s3 + $0x120] sm:$0xff]   ;;  %v13023_v0 = vld [vmem:[#allocation40_spill] sm:$0xff]  ;;  %v9977_v48 = vld [vmem:[%s12725_s3 + $0x138] sm:$0xff]  }
 0x3ad   : > { %v5634_v61 = vor.u32 %v5633_v28, %v5632_v50  ;;  %8879 = vmatpush3.bf16.msra.mxu1 %v9963_v1  ;;  %v9978_v50 = vld [vmem:[%s12725_s3 + $0x140] sm:$0xff]  }
 0x3ae   : > { %v12116_v31 = vsel %vm3869_vm6, %v5099_v57, %v5107_v32  ;;  %v5637_v13 = vor.u32 %v5636_v9, %v5635_v47  ;;  %8880 = vmatprep.subr.bf16.mxu1 %v9964_v25 }
 0x3b0   : > { %v12119_v21 = vsel %vm350_vm0, %v5634_v61, %v5637_v13  ;;  %8849 = vmatmul.mubr.bf16.gmra.mrb[20].mxu1 %v11977_v24 }
 0x3b1   : > { %8852 = vmatprep.mubr.bf16.mxu1 %v11990_v59  ;;  %8881 = vmatpush3.bf16.msra.mxu1 %v9964_v25  ;;  %v13026_v25 = vld [vmem:[#allocation11_spill] sm:$0xff] }
 0x3b2   : > { %8882 = vmatprep.subr.bf16.mxu1 %v9965_v58 }
 0x3b5   : > { %8883 = vmatpush3.bf16.msra.mxu1 %v9965_v58  ;;  %v9979_v58 = vld [vmem:[%s12725_s3 + $0x148] sm:$0xff]  }
 0x3b6   : > { %8884 = vmatprep.subr.bf16.mxu1 %v9966_v3 }
 0x3b8   : > { %8853 = vmatmul.mubr.bf16.gmra.mrb[24].mxu1 %v12004_v41 }
 0x3b9   : > { %8856 = vmatprep.mubr.bf16.mxu1 %v12017_v23  ;;  %8885 = vmatpush3.bf16.msra.mxu1 %v9966_v3  ;;  %v13027_v3 = vld [vmem:[#allocation13_spill] sm:$0xff] }
 0x3ba   : > { %8886 = vmatprep.subr.bf16.mxu1 %v9967_v18 }
 0x3bd   : > { %8887 = vmatpush3.bf16.msra.mxu1 %v9967_v18  ;;  %v13028_v18 = vld [vmem:[#allocation15_spill] sm:$0xff] }
 0x3be   : > { %8888 = vmatprep.subr.bf16.mxu1 %v9968_v40 }
 0x3c0   : > { %8857 = vmatmul.mubr.bf16.gmra.mrb[28].mxu1 %v12024_v19 }
 0x3c1   : > { %8860 = vmatprep.mubr.bf16.mxu1 %v12037_v2  ;;  %8889 = vmatpush3.bf16.msra.mxu1 %v9968_v40  ;;  %v9980_v40 = vld [vmem:[%s12725_s3 + $0x150] sm:$0xff]  }
 0x3c2   : > { %8890 = vmatprep.subr.bf16.mxu1 %v9969_v55 }
 0x3c5   : > { %8891 = vmatpush3.bf16.msra.mxu1 %v9969_v55  ;;  %v9981_v55 = vld [vmem:[%s12725_s3 + $0x158] sm:$0xff]  }
 0x3c6   : > { %8924 = vmatprep.subr.bf16.mxu1 %v9970_v20 }
 0x3c8   : > { %8861 = vmatmul.mubr.bf16.gmra.mrb[0].mxu1 %v12050_v26 }
 0x3c9   : > { %8864 = vmatprep.mubr.bf16.mxu1 %v12062_v8 }
 0x3d0   : > { %8865 = vmatmul.mubr.bf16.gmra.mrb[4].mxu1 %v12070_v43 }
 0x3d1   : > { %8868 = vmatprep.mubr.bf16.mxu1 %v12083_v30 }
 0x3d8   : > { %8869 = vmatmul.mubr.bf16.gmra.mrb[8].mxu1 %v12096_v45 }
 0x3d9   : > { %8872 = vmatprep.mubr.bf16.mxu1 %v12103_v15 }
 0x3e0   : > { %8873 = vmatmul.mubr.bf16.gmra.mrb[12].mxu1 %v12108_v53 }
 0x3e1   : > { %8892 = vmatprep.mubr.bf16.mxu1 %v11646_v34  ;;  %v9973_v34 = vld [vmem:[%s12725_s3 + $0x118] sm:$0xff]  }
 0x3e8   : > { %8893 = vmatmul.mubr.bf16.vlgmr.msra.gmra.mrb[16].mxu1 %v13019_v10 }
 0x3e9   : > { %8896 = vmatprep.mubr.bf16.mxu1 %v13020_v4  ;;  %8925 = vmatpush3.bf16.msra.mxu1 %v9970_v20  ;;  %v13029_v20 = vld [vmem:[#allocation18_spill] sm:$0xff] }
 0x3ea   : > { %8926 = vmatprep.subr.bf16.mxu1 %v9971_v35 }
 0x3ed   : > { %8927 = vmatpush3.bf16.msra.mxu1 %v9971_v35  ;;  %v13030_v35 = vld [vmem:[#allocation20_spill] sm:$0xff] }
 0x3ee   : > { %8928 = vmatprep.subr.bf16.mxu1 %v9972_v36 }
 0x3f0   : > { %8897 = vmatmul.mubr.bf16.gmra.mrb[20].mxu1 %v13021_v39 }
 0x3f1   : > { %8900 = vmatprep.mubr.bf16.mxu1 %v13022_v52  ;;  %8929 = vmatpush3.bf16.msra.mxu1 %v9972_v36  ;;  %v9982_v36 = vld [vmem:[%s12725_s3 + $0x160] sm:$0xff]  }
 0x3f2   : > { %8930 = vmatprep.subr.bf16.mxu1 %v9973_v34 }
 0x3f4   : > { %v12180_v17 = vpop.f32.mrb[32].mxu0 }
 0x3f5   : > { %8931 = vmatpush3.bf16.msra.mxu1 %v9973_v34  ;;  %v12185_v51 = vpop.f32.mrb[33].mxu0  ;;  %v9983_v34 = vld [vmem:[%s12725_s3 + $0x168] sm:$0xff]  }
 0x3f6   : > { %8932 = vmatprep.subr.bf16.mxu1 %v9974_v14  ;;  %v12188_v5 = vpop.f32.mrb[34].mxu0 }
 0x3f7   : > { %v12191_v22 = vpop.f32.mrb[35].mxu0 }
 0x3f8   : > { %8901 = vmatmul.mubr.bf16.gmra.mrb[24].mxu1 %v13023_v0 }
 0x3f9   : > { %8904 = vmatprep.mubr.bf16.mxu1 %v11791_v29  ;;  %8933 = vmatpush3.bf16.msra.mxu1 %v9974_v14  ;;  %v13031_v14 = vld [vmem:[#allocation26_spill] sm:$0xff] }
 0x3fa   : > { %8934 = vmatprep.subr.bf16.mxu1 %v9975_v37 }
 0x3fc   : > { %v12196_v7 = vpop.f32.mrb[36].mxu0 }
 0x3fd   : > { %8935 = vmatpush3.bf16.msra.mxu1 %v9975_v37  ;;  %v12201_v33 = vpop.f32.mrb[37].mxu0  ;;  %v13032_v37 = vld [vmem:[#allocation28_spill] sm:$0xff] }
 0x3fe   : > { %8936 = vmatprep.subr.bf16.mxu1 %v9976_v44  ;;  %v12204_v49 = vpop.f32.mrb[38].mxu0 }
 0x3ff   : > { %v12207_v16 = vpop.f32.mrb[39].mxu0 }
 0x400   : > { %8905 = vmatmul.mubr.bf16.gmra.mrb[28].mxu1 %v11816_v6 }
 0x401   : > { %8908 = vmatprep.mubr.bf16.mxu1 %v11832_v56  ;;  %8937 = vmatpush3.bf16.msra.mxu1 %v9976_v44  ;;  %v9984_v44 = vld [vmem:[%s12725_s3 + $0x170] sm:$0xff]  }
 0x402   : > { %8938 = vmatprep.subr.bf16.mxu1 %v9977_v48 }
 0x405   : > { %8939 = vmatpush3.bf16.msra.mxu1 %v9977_v48  ;;  %v9985_v48 = vld [vmem:[%s12725_s3 + $0x178] sm:$0xff]  }
 0x406   : > { %8972 = vmatprep.subr.bf16.mxu1 %v9978_v50 }
 0x408   : > { %8909 = vmatmul.mubr.bf16.gmra.mrb[0].mxu1 %v11850_v46 }
 0x409   : > { %8912 = vmatprep.mubr.bf16.mxu1 %v11868_v60 }
 0x40a   : > { %v12214_v28 = vpop.f32.mrb[40].mxu0 }
 0x40b   : > { %v12216_v47 = vpop.f32.mrb[41].mxu0 }
 0x40c   : > { %v12218_v57 = vpop.f32.mrb[42].mxu0 }
 0x40d   : > { %v12220_v32 = vpop.f32.mrb[43].mxu0 }
 0x410   : > { %8913 = vmatmul.mubr.bf16.gmra.mrb[4].mxu1 %v11883_v27 }
 0x411   : > { %8916 = vmatprep.mubr.bf16.mxu1 %v11901_v54 }
 0x415   : > { %v12224_v9 = vpop.f32.mrb[44].mxu0 }
 0x416   : > { %v12226_v61 = vpop.f32.mrb[45].mxu0 }
 0x417   : > { %v12228_v13 = vpop.f32.mrb[46].mxu0 }
 0x418   : > { %13024 = vst [vmem:[#allocation35_spill] sm:$0xff] %v12228_v13  ;;  %v12230_v1 = vpop.f32.mrb[47].mxu0  ;;  %8917 = vmatmul.mubr.bf16.gmra.mrb[8].mxu1 %v11925_v63  ;;  %v13040_v13 = vld [vmem:[#allocation36_spill] sm:$0xff] }
 0x419   : > { %13025 = vst [vmem:[#allocation37_spill] sm:$0xff] %v12230_v1  ;;  %8920 = vmatprep.mubr.bf16.mxu1 %v11936_v42  ;;  %v13039_v1 = vld [vmem:[#allocation33_spill] sm:$0xff] }
 0x420   : > { %8921 = vmatmul.mubr.bf16.gmra.mrb[12].mxu1 %v12116_v31 }
 0x421   : > { %8940 = vmatprep.mubr.bf16.mxu1 %v13026_v25  ;;  %v13034_v25 = vld [vmem:[#allocation29_spill] sm:$0xff] }
 0x428   : > { %8941 = vmatmul.mubr.bf16.vlgmr.msra.gmra.mrb[16].mxu1 %v13027_v3 }
 0x429   : > { %8944 = vmatprep.mubr.bf16.mxu1 %v13028_v18  ;;  %8973 = vmatpush3.bf16.msra.mxu1 %v9978_v50  ;;  %v13033_v50 = vld [vmem:[#allocation27_spill] sm:$0xff] }
 0x42a   : > { %8974 = vmatprep.subr.bf16.mxu1 %v9979_v58 }
 0x42d   : > { %8975 = vmatpush3.bf16.msra.mxu1 %v9979_v58  ;;  %v9986_v58 = vld [vmem:[%s12725_s3 + $0x180] sm:$0xff]  }
 0x42e   : > { %8976 = vmatprep.subr.bf16.mxu1 %v9980_v40 }
 0x430   : > { %8945 = vmatmul.mubr.bf16.gmra.mrb[20].mxu1 %v13029_v20 }
 0x431   : > { %8948 = vmatprep.mubr.bf16.mxu1 %v13030_v35  ;;  %8977 = vmatpush3.bf16.msra.mxu1 %v9980_v40  ;;  %v13035_v40 = vld [vmem:[#allocation30_spill] sm:$0xff] }
 0x432   : > { %8978 = vmatprep.subr.bf16.mxu1 %v9981_v55 }
 0x435   : > { %8979 = vmatpush3.bf16.msra.mxu1 %v9981_v55  ;;  %v13036_v55 = vld [vmem:[#allocation31_spill] sm:$0xff] }
 0x436   : > { %8980 = vmatprep.subr.bf16.mxu1 %v9982_v36 }
 0x438   : > { %8949 = vmatmul.mubr.bf16.gmra.mrb[24].mxu1 %v13031_v14 }
 0x439   : > { %8952 = vmatprep.mubr.bf16.mxu1 %v13032_v37  ;;  %8981 = vmatpush3.bf16.msra.mxu1 %v9982_v36  ;;  %v13037_v36 = vld [vmem:[#allocation32_spill] sm:$0xff] }
 0x43a   : > { %8982 = vmatprep.subr.bf16.mxu1 %v9983_v34 }
 0x43d   : > { %8983 = vmatpush3.bf16.msra.mxu1 %v9983_v34  ;;  %v13038_v34 = vld [vmem:[#allocation34_spill] sm:$0xff] }
 0x43e   : > { %8984 = vmatprep.subr.bf16.mxu1 %v9984_v44 }
 0x440   : > { %8953 = vmatmul.mubr.bf16.gmra.mrb[28].mxu1 %v13033_v50 }
 0x441   : > { %8956 = vmatprep.mubr.bf16.mxu1 %v13034_v25  ;;  %8985 = vmatpush3.bf16.msra.mxu1 %v9984_v44  ;;  %v9987_v44 = vld [vmem:[%s12725_s3 + $0x188] sm:$0xff]  }
 0x442   : > { %8986 = vmatprep.subr.bf16.mxu1 %v9985_v48 }
 0x445   : > { %8987 = vmatpush3.bf16.msra.mxu1 %v9985_v48  ;;  %v9988_v48 = vld [vmem:[%s12725_s3 + $0x190] sm:$0xff]  }
 0x446   : > { %9020 = vmatprep.subr.bf16.mxu1 %v9986_v58 }
 0x448   : > { %8957 = vmatmul.mubr.bf16.gmra.mrb[0].mxu1 %v13035_v40 }
 0x449   : > { %8960 = vmatprep.mubr.bf16.mxu1 %v13036_v55 }
 0x450   : > { %8961 = vmatmul.mubr.bf16.gmra.mrb[4].mxu1 %v13037_v36 }
 0x451   : > { %8964 = vmatprep.mubr.bf16.mxu1 %v13038_v34 }
 0x458   : > { %8965 = vmatmul.mubr.bf16.gmra.mrb[8].mxu1 %v13039_v1 }
 0x459   : > { %8968 = vmatprep.mubr.bf16.mxu1 %v13040_v13 }
 0x460   : > { %8969 = vmatmul.mubr.bf16.gmra.mrb[12].mxu1 %v12113_v38 }
 0x461   : > { %8988 = vmatprep.mubr.bf16.mxu1 %v11953_v12  ;;  %v9989_v12 = vld [vmem:[%s12725_s3 + $0x198] sm:$0xff]  }
 0x468   : > { %8989 = vmatmul.mubr.bf16.vlgmr.msra.gmra.mrb[16].mxu1 %v11970_v11 }
 0x469   : > { %8992 = vmatprep.mubr.bf16.mxu1 %v11977_v24  ;;  %9021 = vmatpush3.bf16.msra.mxu1 %v9986_v58  ;;  %v9990_v58 = vld [vmem:[%s12725_s3 + $0x1a0] sm:$0xff]  }
 0x46a   : > { %9022 = vmatprep.subr.bf16.mxu1 %v9987_v44 }
 0x46d   : > { %9023 = vmatpush3.bf16.msra.mxu1 %v9987_v44  ;;  %v9991_v44 = vld [vmem:[%s12725_s3 + $0x1a8] sm:$0xff]  }
 0x46e   : > { %9024 = vmatprep.subr.bf16.mxu1 %v9988_v48 }
 0x470   : > { %8993 = vmatmul.mubr.bf16.gmra.mrb[20].mxu1 %v11990_v59 }
 0x471   : > { %8996 = vmatprep.mubr.bf16.mxu1 %v12004_v41  ;;  %9025 = vmatpush3.bf16.msra.mxu1 %v9988_v48  ;;  %v9992_v48 = vld [vmem:[%s12725_s3 + $0x1b0] sm:$0xff]  }
 0x472   : > { %9026 = vmatprep.subr.bf16.mxu1 %v9989_v12 }
 0x475   : > { %9027 = vmatpush3.bf16.msra.mxu1 %v9989_v12  ;;  %v9993_v12 = vld [vmem:[%s12725_s3 + $0x1b8] sm:$0xff]  }
 0x476   : > { %9028 = vmatprep.subr.bf16.mxu1 %v9990_v58 }
 0x478   : > { %8997 = vmatmul.mubr.bf16.gmra.mrb[24].mxu1 %v12017_v23 }
 0x479   : > { %9000 = vmatprep.mubr.bf16.mxu1 %v12024_v19  ;;  %9029 = vmatpush3.bf16.msra.mxu1 %v9990_v58  ;;  %v9994_v58 = vld [vmem:[%s12725_s3 + $0x1c0] sm:$0xff]  }
 0x47a   : > { %9030 = vmatprep.subr.bf16.mxu1 %v9991_v44 }
 0x47d   : > { %9031 = vmatpush3.bf16.msra.mxu1 %v9991_v44  ;;  %v9995_v44 = vld [vmem:[%s12725_s3 + $0x1c8] sm:$0xff]  }
 0x47e   : > { %9032 = vmatprep.subr.bf16.mxu1 %v9992_v48 }
 0x480   : > { %9001 = vmatmul.mubr.bf16.gmra.mrb[28].mxu1 %v12037_v2 }
 0x481   : > { %9004 = vmatprep.mubr.bf16.mxu1 %v12050_v26  ;;  %9033 = vmatpush3.bf16.msra.mxu1 %v9992_v48  ;;  %v9996_v48 = vld [vmem:[%s12725_s3 + $0x1d0] sm:$0xff]  }
 0x482   : > { %9034 = vmatprep.subr.bf16.mxu1 %v9993_v12 }
 0x485   : > { %9035 = vmatpush3.bf16.msra.mxu1 %v9993_v12 }
 0x486   : > { %9068 = vmatprep.subr.bf16.mxu1 %v9994_v58 }
 0x488   : > { %9005 = vmatmul.mubr.bf16.gmra.mrb[0].mxu1 %v12062_v8 }
 0x489   : > { %9008 = vmatprep.mubr.bf16.mxu1 %v12070_v43 }
 0x490   : > { %9009 = vmatmul.mubr.bf16.gmra.mrb[4].mxu1 %v12083_v30 }
 0x491   : > { %9012 = vmatprep.mubr.bf16.mxu1 %v12096_v45 }
 0x498   : > { %9013 = vmatmul.mubr.bf16.gmra.mrb[8].mxu1 %v12103_v15 }
 0x499   : > { %9016 = vmatprep.mubr.bf16.mxu1 %v12108_v53 }
 0x4a0   : > { %9017 = vmatmul.mubr.bf16.gmra.mrb[12].mxu1 %v12119_v21 }
 0x4a1   : > { %9036 = vmatprep.mubr.bf16.mxu1 %v13019_v10  ;;  %v9997_v10 = vld [vmem:[%s12725_s3 + $0x1d8] sm:$0xff]  }
 0x4a8   : > { %9037 = vmatmul.mubr.bf16.vlgmr.msra.gmra.mrb[16].mxu1 %v13020_v4  ;;  %v9998_v4 = vld [vmem:[%s12725_s3 + $0x1e0] sm:$0xff]  }
 0x4a9   : > { %9040 = vmatprep.mubr.bf16.mxu1 %v13021_v39  ;;  %9069 = vmatpush3.bf16.msra.mxu1 %v9994_v58  ;;  %v9999_v39 = vld [vmem:[%s12725_s3 + $0x1e8] sm:$0xff]  }
 0x4aa   : > { %9070 = vmatprep.subr.bf16.mxu1 %v9995_v44 }
 0x4ad   : > { %9071 = vmatpush3.bf16.msra.mxu1 %v9995_v44 }
 0x4ae   : > { %9072 = vmatprep.subr.bf16.mxu1 %v9996_v48 }
 0x4b0   : > { %9041 = vmatmul.mubr.bf16.gmra.mrb[20].mxu1 %v13022_v52  ;;  %v10000_v52 = vld [vmem:[%s12725_s3 + $0x1f0] sm:$0xff]  }
 0x4b1   : > { %9044 = vmatprep.mubr.bf16.mxu1 %v13023_v0  ;;  %9073 = vmatpush3.bf16.msra.mxu1 %v9996_v48  ;;  %v10001_v0 = vld [vmem:[%s12725_s3 + $0x1f8] sm:$0xff]  }
 0x4b2   : > { %9074 = vmatprep.subr.bf16.mxu1 %v9997_v10 }
 0x4b5   : > { %9075 = vmatpush3.bf16.msra.mxu1 %v9997_v10 }
 0x4b6   : > { %9076 = vmatprep.subr.bf16.mxu1 %v9998_v4 }
 0x4b8   : > { %9045 = vmatmul.mubr.bf16.gmra.mrb[24].mxu1 %v11791_v29  ;;  %v13041_v29 = vld [vmem:[#allocation16_spill] sm:$0xff] }
 0x4b9   : > { %9048 = vmatprep.mubr.bf16.mxu1 %v11816_v6  ;;  %9077 = vmatpush3.bf16.msra.mxu1 %v9998_v4  ;;  %v10002_v6 = vld [vmem:[%s12725_s3 + $0x200] sm:$0xff]  }
 0x4ba   : > { %9078 = vmatprep.subr.bf16.mxu1 %v9999_v39 }
 0x4bd   : > { %9079 = vmatpush3.bf16.msra.mxu1 %v9999_v39 }
 0x4be   : > { %9080 = vmatprep.subr.bf16.mxu1 %v10000_v52 }
 0x4c0   : > { %9049 = vmatmul.mubr.bf16.gmra.mrb[28].mxu1 %v11832_v56  ;;  %v10003_v56 = vld [vmem:[%s12725_s3 + $0x208] sm:$0xff]  }
 0x4c1   : > { %9052 = vmatprep.mubr.bf16.mxu1 %v11850_v46  ;;  %9081 = vmatpush3.bf16.msra.mxu1 %v10000_v52  ;;  %v10005_v46 = vld [vmem:[%s12725_s3 + $0x218] sm:$0xff]  }
 0x4c2   : > { %9082 = vmatprep.subr.bf16.mxu1 %v10001_v0 }
 0x4c5   : > { %9083 = vmatpush3.bf16.msra.mxu1 %v10001_v0 }
 0x4c6   : > { %9116 = vmatprep.subr.bf16.mxu1 %v10002_v6 }
 0x4c8   : > { %9053 = vmatmul.mubr.bf16.gmra.mrb[0].mxu1 %v11868_v60  ;;  %v10004_v60 = vld [vmem:[%s12725_s3 + $0x210] sm:$0xff]  }
 0x4c9   : > { %9056 = vmatprep.mubr.bf16.mxu1 %v11883_v27  ;;  %v10006_v27 = vld [vmem:[%s12725_s3 + $0x220] sm:$0xff]  }
 0x4d0   : > { %9057 = vmatmul.mubr.bf16.gmra.mrb[4].mxu1 %v11901_v54  ;;  %v10008_v54 = vld [vmem:[%s12725_s3 + $0x230] sm:$0xff]  }
 0x4d1   : > { %9060 = vmatprep.mubr.bf16.mxu1 %v11925_v63  ;;  %v10007_v63 = vld [vmem:[%s12725_s3 + $0x228] sm:$0xff]  }
 0x4d8   : > { %9061 = vmatmul.mubr.bf16.gmra.mrb[8].mxu1 %v11936_v42  ;;  %v10009_v42 = vld [vmem:[%s12725_s3 + $0x238] sm:$0xff]  }
 0x4d9   : > { %9064 = vmatprep.mubr.bf16.mxu1 %v12116_v31  ;;  %v10010_v31 = vld [vmem:[%s12727_s5] sm:$0xff]  }
 0x4e0   : > { %9065 = vmatmul.mubr.bf16.gmra.mrb[12].mxu1 %v13041_v29 }
 0x4e1   : > { %9084 = vmatprep.mubr.bf16.mxu1 %v13027_v3  ;;  %v13042_v3 = vld [vmem:[#allocation10_spill] sm:$0xff] }
 0x4e8   : > { %9085 = vmatmul.mubr.bf16.vlgmr.msra.gmra.mrb[16].mxu1 %v13028_v18  ;;  %v10011_v18 = vld [vmem:[%s12727_s5 + $0x8] sm:$0xff]  }
 0x4e9   : > { %9088 = vmatprep.mubr.bf16.mxu1 %v13029_v20  ;;  %9117 = vmatpush3.bf16.msra.mxu1 %v10002_v6  ;;  %v13056_v20 = vld [vmem:[#allocation24_spill] sm:$0xff] }
 0x4ea   : > { %9118 = vmatprep.subr.bf16.mxu1 %v10003_v56 }
 0x4ed   : > { %9119 = vmatpush3.bf16.msra.mxu1 %v10003_v56 }
 0x4ee   : > { %9120 = vmatprep.subr.bf16.mxu1 %v10004_v60 }
 0x4f0   : > { %9089 = vmatmul.mubr.bf16.gmra.mrb[20].mxu1 %v13030_v35  ;;  %v13057_v35 = vld [vmem:[#allocation25_spill] sm:$0xff] }
 0x4f1   : > { %9092 = vmatprep.mubr.bf16.mxu1 %v13031_v14  ;;  %9121 = vmatpush3.bf16.msra.mxu1 %v10004_v60  ;;  %v13058_v14 = vld [vmem:[#allocation7_spill] sm:$0xff] }
 0x4f2   : > { %9122 = vmatprep.subr.bf16.mxu1 %v10005_v46 }
 0x4f5   : > { %9123 = vmatpush3.bf16.msra.mxu1 %v10005_v46 }
 0x4f6   : > { %9124 = vmatprep.subr.bf16.mxu1 %v10006_v27 }
 0x4f8   : > { %9093 = vmatmul.mubr.bf16.gmra.mrb[24].mxu1 %v13032_v37  ;;  %v12451_v37 = vld [vmem:[%s12726_s4] ss:$0 sm:$0xff] }
 0x4f9   : > { %9096 = vmatprep.mubr.bf16.mxu1 %v13033_v50  ;;  %9125 = vmatpush3.bf16.msra.mxu1 %v10006_v27  ;;  %v9234_v50 = vadd.f32 %v12188_v5, %v12451_v37  ;;  %v9240_v10 = vadd.f32 %v12196_v7, %v12451_v37  ;;  %v9246_v6 = vadd.f32 %v12204_v49, %v12451_v37 }
 0x4fa   : > { %9126 = vmatprep.subr.bf16.mxu1 %v10007_v63  ;;  %v9249_v56 = vadd.f32 %v12451_v37, %v12207_v16 }
 0x4fd   : > { %9127 = vmatpush3.bf16.msra.mxu1 %v10007_v63 }
 0x4fe   : > { %9128 = vmatprep.subr.bf16.mxu1 %v10008_v54 }
 0x500   : > { %9097 = vmatmul.mubr.bf16.gmra.mrb[28].mxu1 %v13034_v25  ;;  %v9237_v25 = vadd.f32 %v12451_v37, %v12191_v22 }
 0x501   : > { %9100 = vmatprep.mubr.bf16.mxu1 %v13035_v40  ;;  %9129 = vmatpush3.bf16.msra.mxu1 %v10008_v54  ;;  %v12460_v40 = vld [vmem:[%s12728_s6] ss:$0 sm:$0xff] }
 0x502   : > { %9130 = vmatprep.subr.bf16.mxu1 %v10009_v42  ;;  %v9235_v44 = vadd.f32 %v9234_v50, %v12460_v40  ;;  %v9238_v22 = vadd.f32 %v9237_v25, %v12460_v40  ;;  %v9241_v63 = vadd.f32 %v9240_v10, %v12460_v40 }
 0x505   : > { %9131 = vmatpush3.bf16.msra.mxu1 %v10009_v42 }
 0x506   : > { %9164 = vmatprep.subr.bf16.mxu1 %v10010_v31 }
 0x508   : > { %9101 = vmatmul.mubr.bf16.gmra.mrb[0].mxu1 %v13036_v55  ;;  %v9228_v55 = vadd.f32 %v12180_v17, %v12451_v37 }
 0x509   : > { %9104 = vmatprep.mubr.bf16.mxu1 %v13037_v36  ;;  %v9231_v36 = vadd.f32 %v12451_v37, %v12185_v51  ;;  %v9243_v51 = vadd.f32 %v12451_v37, %v12201_v33 }
 0x50b   : > { %v9244_v49 = vadd.f32 %v9243_v51, %v12460_v40 }
 0x510   : > { %9105 = vmatmul.mubr.bf16.gmra.mrb[4].mxu1 %v13038_v34 }
 0x511   : > { %9108 = vmatprep.mubr.bf16.mxu1 %v13039_v1  ;;  %v13055_v1 = vld [vmem:[#allocation23_spill] sm:$0xff] }
 0x518   : > { %9109 = vmatmul.mubr.bf16.gmra.mrb[8].mxu1 %v13040_v13  ;;  %v10012_v13 = vld [vmem:[%s12727_s5 + $0x10] sm:$0xff]  }
 0x519   : > { %9112 = vmatprep.mubr.bf16.mxu1 %v12113_v38  ;;  %v13052_v38 = vld [vmem:[#allocation19_spill] sm:$0xff] }
 0x520   : > { %9113 = vmatmul.mubr.bf16.gmra.mrb[12].mxu1 %v13042_v3  ;;  %v9252_v3 = vadd.f32 %v12214_v28, %v12451_v37 }
 0x521   : > { %9132 = vmatprep.mubr.bf16.mxu1 %v11970_v11  ;;  %v10013_v11 = vld [vmem:[%s12727_s5 + $0x18] sm:$0xff]  }
 0x528   : > { %9133 = vmatmul.mubr.bf16.vlgmr.msra.gmra.mrb[16].mxu1 %v11977_v24  ;;  %v10014_v24 = vld [vmem:[%s12727_s5 + $0x20] sm:$0xff]  }
 0x529   : > { %9136 = vmatprep.mubr.bf16.mxu1 %v11990_v59  ;;  %9165 = vmatpush3.bf16.msra.mxu1 %v10010_v31  ;;  %v10015_v59 = vld [vmem:[%s12727_s5 + $0x28] sm:$0xff]  }
 0x52a   : > { %9166 = vmatprep.subr.bf16.mxu1 %v10011_v18 }
 0x52d   : > { %9167 = vmatpush3.bf16.msra.mxu1 %v10011_v18 }
 0x52e   : > { %9168 = vmatprep.subr.bf16.mxu1 %v10012_v13 }
 0x530   : > { %9137 = vmatmul.mubr.bf16.gmra.mrb[20].mxu1 %v12004_v41  ;;  %v10016_v41 = vld [vmem:[%s12727_s5 + $0x30] sm:$0xff]  }
 0x531   : > { %9140 = vmatprep.mubr.bf16.mxu1 %v12017_v23  ;;  %9169 = vmatpush3.bf16.msra.mxu1 %v10012_v13  ;;  %v10017_v23 = vld [vmem:[%s12727_s5 + $0x38] sm:$0xff]   ;;  %v9247_v13 = vadd.f32 %v9246_v6, %v12460_v40 }
 0x532   : > { %9170 = vmatprep.subr.bf16.mxu1 %v10013_v11 }
 0x535   : > { %9171 = vmatpush3.bf16.msra.mxu1 %v10013_v11 }
 0x536   : > { %9172 = vmatprep.subr.bf16.mxu1 %v10014_v24 }
 0x538   : > { %9141 = vmatmul.mubr.bf16.gmra.mrb[24].mxu1 %v12024_v19  ;;  %v13043_v19 = vld [vmem:[#allocation3_spill] sm:$0xff] }
 0x539   : > { %9144 = vmatprep.mubr.bf16.mxu1 %v12037_v2  ;;  %9173 = vmatpush3.bf16.msra.mxu1 %v10014_v24  ;;  %v13044_v2 = vld [vmem:[#allocation4_spill] sm:$0xff] }
 0x53a   : > { %9174 = vmatprep.subr.bf16.mxu1 %v10015_v59 }
 0x53d   : > { %9175 = vmatpush3.bf16.msra.mxu1 %v10015_v59  ;;  %v9250_v59 = vadd.f32 %v9249_v56, %v12460_v40 }
 0x53e   : > { %9176 = vmatprep.subr.bf16.mxu1 %v10016_v41 }
 0x540   : > { %9145 = vmatmul.mubr.bf16.gmra.mrb[28].mxu1 %v12050_v26  ;;  %v13045_v26 = vld [vmem:[#allocation5_spill] sm:$0xff] }
 0x541   : > { %9148 = vmatprep.mubr.bf16.mxu1 %v12062_v8  ;;  %9177 = vmatpush3.bf16.msra.mxu1 %v10016_v41  ;;  %v13046_v8 = vld [vmem:[#allocation6_spill] sm:$0xff]  ;;  %v9255_v41 = vadd.f32 %v12451_v37, %v12216_v47 }
 0x542   : > { %9178 = vmatprep.subr.bf16.mxu1 %v10017_v23 }
 0x543   : > { %v9256_v50 = vadd.f32 %v9255_v41, %v12460_v40 }
 0x545   : > { %9179 = vmatpush3.bf16.msra.mxu1 %v10017_v23 }
 0x548   : > { %9149 = vmatmul.mubr.bf16.gmra.mrb[0].mxu1 %v12070_v43  ;;  %v13047_v43 = vld [vmem:[#allocation8_spill] sm:$0xff] }
 0x549   : > { %9152 = vmatprep.mubr.bf16.mxu1 %v12083_v30  ;;  %v13048_v30 = vld [vmem:[#allocation9_spill] sm:$0xff] }
 0x550   : > { %9153 = vmatmul.mubr.bf16.gmra.mrb[4].mxu1 %v12096_v45  ;;  %v13049_v45 = vld [vmem:[#allocation12_spill] sm:$0xff] }
 0x551   : > { %9156 = vmatprep.mubr.bf16.mxu1 %v12103_v15  ;;  %v13050_v15 = vld [vmem:[#allocation14_spill] sm:$0xff] }
 0x558   : > { %9157 = vmatmul.mubr.bf16.gmra.mrb[8].mxu1 %v12108_v53  ;;  %v13051_v53 = vld [vmem:[#allocation17_spill] sm:$0xff] }
 0x559   : > { %9160 = vmatprep.mubr.bf16.mxu1 %v12119_v21  ;;  %v13054_v21 = vld [vmem:[#allocation22_spill] sm:$0xff] }
 0x560   : > { %9161 = vmatmul.mubr.bf16.gmra.mrb[12].mxu1 %v11916_v62  ;;  %v13053_v62 = vld [vmem:[#allocation21_spill] sm:$0xff] }
 0x561   : > { %9180 = vmatprep.mubr.bf16.mxu1 %v13043_v19 }
 0x568   : > { %9181 = vmatmul.mubr.bf16.vlgmr.msra.gmra.mrb[16].mxu1 %v13044_v2  ;;  %v9258_v2 = vadd.f32 %v12218_v57, %v12451_v37  ;;  %v9267_v57 = vadd.f32 %v12451_v37, %v12226_v61 }
 0x569   : > { %9184 = vmatprep.mubr.bf16.mxu1 %v13045_v26 }
 0x56a   : > { %v9259_v25 = vadd.f32 %v9258_v2, %v12460_v40 }
 0x570   : > { %9185 = vmatmul.mubr.bf16.gmra.mrb[20].mxu1 %v13046_v8 }
 0x571   : > { %9188 = vmatprep.mubr.bf16.mxu1 %v13047_v43  ;;  %v9261_v43 = vadd.f32 %v12451_v37, %v12220_v32 }
 0x578   : > { %9189 = vmatmul.mubr.bf16.gmra.mrb[24].mxu1 %v13048_v30 }
 0x579   : > { %9192 = vmatprep.mubr.bf16.mxu1 %v13049_v45  ;;  %v9253_v45 = vadd.f32 %v9252_v3, %v12460_v40 }
 0x580   : > { %9193 = vmatmul.mubr.bf16.gmra.mrb[28].mxu1 %v13050_v15  ;;  %v9264_v15 = vadd.f32 %v12224_v9, %v12451_v37 }
 0x581   : > { %9196 = vmatprep.mubr.bf16.mxu1 %v13051_v53 }
 0x588   : > { %9197 = vmatmul.mubr.bf16.gmra.mrb[0].mxu1 %v13052_v38 }
 0x589   : > { %9200 = vmatprep.mubr.bf16.mxu1 %v13053_v62  ;;  %v13059_v62 = vld [vmem:[#allocation35_spill] sm:$0xff] }
 0x590   : > { %9201 = vmatmul.mubr.bf16.gmra.mrb[4].mxu1 %v13054_v21  ;;  %v9270_v21 = vadd.f32 %v13059_v62, %v12451_v37 }
 0x591   : > { %9204 = vmatprep.mubr.bf16.mxu1 %v13055_v1  ;;  %v13060_v1 = vld [vmem:[#allocation37_spill] sm:$0xff] }
 0x592   : > { %v9273_v32 = vadd.f32 %v12451_v37, %v13060_v1  ;;  %v9271_v10 = vadd.f32 %v9270_v21, %v12460_v40 }
 0x598   : > { %9205 = vmatmul.mubr.bf16.gmra.mrb[8].mxu1 %v13056_v20 }
 0x599   : > { %9208 = vmatprep.mubr.bf16.mxu1 %v13057_v35 }
 0x5a0   : > { %9209 = vmatmul.mubr.bf16.gmra.mrb[12].mxu1 %v13058_v14 }
 0x63b   : > { %v9182_v34 = vpop.f32.mrb[16].mxu1 }
 0x63c   : > { %v9229_v12 = vadd.f32 %v9228_v55, %v9182_v34  ;;  %v6848_v58 = vpop.f32.mrb[17].mxu1  ;;  %v9262_v55 = vadd.f32 %v9261_v43, %v12460_v40 }
 0x63d   : > { %v9232_v5 = vadd.f32 %v9231_v36, %v6848_v58  ;;  %v9183_v48 = vpop.f32.mrb[18].mxu1  ;;  %v9268_v58 = vadd.f32 %v9267_v57, %v12460_v40 }
 0x63e   : > { %v12471_v4 = vadd.f32 %v9229_v12, %v12460_v40  ;;  %v12473_v39 = vadd.f32 %v9235_v44, %v9183_v48  ;;  %v6851_v17 = vpop.f32.mrb[19].mxu1  ;;  %v9265_v12 = vadd.f32 %v9264_v15, %v12460_v40 }
 0x63f   : > { %v12478_v52 = vadd.f32 %v9232_v5, %v12460_v40  ;;  %v12480_v0 = vadd.f32 %v9238_v22, %v6851_v17  ;;  %v9274_v17 = vadd.f32 %v9273_v32, %v12460_v40 }
 0x640   : > { %v7041_v29 = vmin.f32 %v12471_v4, 0.0  ;;  %v7042_v7 = vmin.f32 %v12473_v39, 0.0  ;;  %vm7009_vm0 = vcmp.gt.f32.partialorder %v12471_v4, 0.0  ;;  %vm7010_vm10 = vcmp.gt.f32.partialorder %v12473_v39, 0.0 }
 0x641   : > { %v7039_v60 = vmin.f32 %v12478_v52, 0.0  ;;  %v7040_v46 = vmin.f32 %v12480_v0, 0.0  ;;  %vm7007_vm12 = vcmp.gt.f32.partialorder %v12478_v52, 0.0  ;;  %vm7008_vm13 = vcmp.gt.f32.partialorder %v12480_v0, 0.0 }
 0x642   : > { %v7075_v33 = vmul.f32 1.442695, %v7041_v29  ;;  %v7077_v27 = vmul.f32 1.442695, %v7042_v7 }
 0x643   : > { %v7071_v54 = vmul.f32 1.442695, %v7039_v60  ;;  %v7073_v42 = vmul.f32 1.442695, %v7040_v46  ;;  %v9186_v31 = vpop.f32.mrb[20].mxu1 }
 0x644   : > { %10082 = vpow2.f32 %v7075_v33  ;;  %v12494_v18 = vadd.f32 %v9241_v63, %v9186_v31  ;;  %v6864_v16 = vpop.f32.mrb[21].mxu1 }
 0x645   : > { %10084 = vpow2.f32 %v7071_v54  ;;  %v12497_v11 = vadd.f32 %v9244_v49, %v6864_v16  ;;  %v9187_v24 = vpop.f32.mrb[22].mxu1 }
 0x646   : > { %10086 = vpow2.f32 %v7077_v27  ;;  %v7045_v23 = vmin.f32 %v12494_v18, 0.0  ;;  %v12503_v19 = vadd.f32 %v9247_v13, %v9187_v24  ;;  %v6867_v28 = vpop.f32.mrb[23].mxu1  ;;  %vm7013_vm14 = vcmp.gt.f32.partialorder %v12494_v18, 0.0 }
 0x647   : > { %10088 = vpow2.f32 %v7073_v42  ;;  %v7043_v26 = vmin.f32 %v12497_v11, 0.0  ;;  %v12508_v8 = vadd.f32 %v9250_v59, %v6867_v28  ;;  %vm7011_vm15 = vcmp.gt.f32.partialorder %v12497_v11, 0.0 }
 0x648   : > { %v7083_v30 = vmul.f32 1.442695, %v7045_v23  ;;  %v7046_v47 = vmin.f32 %v12503_v19, 0.0  ;;  %v12563_v23 = vadd.f32 %v12460_v40, %v12451_v37  ;;  %vm7014_vm1 = vcmp.gt.f32.partialorder %v12503_v19, 0.0 }
 0x649   : > { %v7079_v53 = vmul.f32 1.442695, %v7043_v26  ;;  %v7044_v38 = vmin.f32 %v12508_v8, 0.0  ;;  %vm7012_vm2 = vcmp.gt.f32.partialorder %v12508_v8, 0.0 }
 0x64a   : > { %10090 = vpow2.f32 %v7083_v30  ;;  %v7085_v20 = vmul.f32 1.442695, %v7046_v47 }
 0x64b   : > { %10092 = vpow2.f32 %v7079_v53  ;;  %v7081_v35 = vmul.f32 1.442695, %v7044_v38  ;;  %v9190_v14 = vpop.f32.mrb[24].mxu1 }
 0x64c   : > { %10094 = vpow2.f32 %v7085_v20  ;;  %v12525_v9 = vadd.f32 %v9253_v45, %v9190_v14  ;;  %v6880_v61 = vpop.f32.mrb[25].mxu1 }
 0x64d   : > { %10096 = vpow2.f32 %v7081_v35  ;;  %v12529_v36 = vadd.f32 %v9256_v50, %v6880_v61  ;;  %v9191_v34 = vpop.f32.mrb[26].mxu1 }
 0x64e   : > { %v10083_v44 = vpop.eup %10082  ;;  %v7049_v5 = vmin.f32 %v12525_v9, 0.0  ;;  %v12534_v48 = vadd.f32 %v9259_v25, %v9191_v34  ;;  %v6883_v22 = vpop.f32.mrb[27].mxu1  ;;  %vm7017_vm3 = vcmp.gt.f32.partialorder %v12525_v9, 0.0 }
 0x64f   : > { %v10085_v51 = vpop.eup %10084  ;;  %v7811_v6 = vadd.f32 -1.0, %v10083_v44  ;;  %v7047_v29 = vmin.f32 %v12529_v36, 0.0  ;;  %v12545_v7 = vadd.f32 %v9262_v55, %v6883_v22  ;;  %vm7015_vm4 = vcmp.gt.f32.partialorder %v12529_v36, 0.0 }
 0x650   : > { %v10087_v56 = vpop.eup %10086  ;;  %v7809_v60 = vadd.f32 -1.0, %v10085_v51  ;;  %v7091_v46 = vmul.f32 1.442695, %v7049_v5  ;;  %v7050_v33 = vmin.f32 %v12534_v48, 0.0  ;;  %vm7018_vm5 = vcmp.gt.f32.partialorder %v12534_v48, 0.0 }
 0x651   : > { %v10089_v27 = vpop.eup %10088  ;;  %v7169_v63 = vsel %vm7009_vm0, %v12471_v4, %v7811_v6  ;;  %v7812_v54 = vadd.f32 -1.0, %v10087_v56  ;;  %v7087_v42 = vmul.f32 1.442695, %v7047_v29  ;;  %v7048_v4 = vmin.f32 %v12545_v7, 0.0 }
 0x652   : > { %7201 = vst [vmem:[%s12541_s10 + $0x10] sm:$0xff] %v7169_v63  ;;  %v7167_v31 = vsel %vm7007_vm12, %v12478_v52, %v7809_v60  ;;  %v7810_v49 = vadd.f32 -1.0, %v10089_v27  ;;  %10098 = vpow2.f32 %v7091_v46  ;;  %v7093_v3 = vmul.f32 1.442695, %v7050_v33 }
 0x653   : > { %7199 = vst [vmem:[%s12541_s10] sm:$0xff] %v7167_v31  ;;  %v7170_v16 = vsel %vm7010_vm10, %v12473_v39, %v7812_v54  ;;  %10100 = vpow2.f32 %v7087_v42  ;;  %v9194_v13 = vpop.f32.mrb[28].mxu1  ;;  %v7089_v2 = vmul.f32 1.442695, %v7048_v4  ;;  %vm7016_vm6 = vcmp.gt.f32.partialorder %v12545_v7, 0.0 }
 0x654   : > { %v10091_v24 = vpop.eup %10090  ;;  %7202 = vst [vmem:[%s12541_s10 + $0x18] sm:$0xff] %v7170_v16  ;;  %v7168_v59 = vsel %vm7008_vm13, %v12480_v0, %v7810_v49  ;;  %10102 = vpow2.f32 %v7093_v3  ;;  %v12559_v41 = vadd.f32 %v9265_v12, %v9194_v13  ;;  %v6896_v52 = vpop.f32.mrb[29].mxu1 }
 0x655   : > { %v10093_v28 = vpop.eup %10092  ;;  %7200 = vst [vmem:[%s12541_s10 + $0x8] sm:$0xff] %v7168_v59  ;;  %v7815_v39 = vadd.f32 -1.0, %v10091_v24  ;;  %v12567_v26 = vadd.f32 %v9268_v58, %v6896_v52  ;;  %v9195_v43 = vpop.f32.mrb[30].mxu1  ;;  %10104 = vpow2.f32 %v7089_v2 }
 0x656   : > { %v10095_v30 = vpop.eup %10094  ;;  %v7813_v0 = vadd.f32 -1.0, %v10093_v28  ;;  %v7053_v47 = vmin.f32 %v12559_v41, 0.0  ;;  %v12571_v45 = vadd.f32 %v9271_v10, %v9195_v43  ;;  %v6899_v37 = vpop.f32.mrb[31].mxu1  ;;  %vm7021_vm7 = vcmp.gt.f32.partialorder %v12559_v41, 0.0 }
 0x657   : > { %v10097_v40 = vpop.eup %10096  ;;  %v7173_v15 = vsel %vm7013_vm14, %v12494_v18, %v7815_v39  ;;  %v7816_v57 = vadd.f32 -1.0, %v10095_v30  ;;  %v7051_v21 = vmin.f32 %v12567_v26, 0.0  ;;  %v12582_v18 = vadd.f32 %v9274_v17, %v6899_v37 }
 0x658   : > { %7205 = vst [vmem:[%s12541_s10 + $0x30] sm:$0xff] %v7173_v15  ;;  %v7171_v53 = vsel %vm7011_vm15, %v12497_v11, %v7813_v0  ;;  %v7814_v38 = vadd.f32 -1.0, %v10097_v40  ;;  %v7099_v62 = vmul.f32 1.442695, %v7053_v47  ;;  %v7054_v32 = vmin.f32 %v12571_v45, 0.0 }
 0x659   : > { %7203 = vst [vmem:[%s12541_s10 + $0x20] sm:$0xff] %v7171_v53  ;;  %v7174_v1 = vsel %vm7014_vm1, %v12503_v19, %v7816_v57  ;;  %v7095_v35 = vmul.f32 1.442695, %v7051_v21  ;;  %v7052_v14 = vmin.f32 %v12582_v18, 0.0  ;;  %vm7019_vm8 = vcmp.gt.f32.partialorder %v12567_v26, 0.0 }
 0x65a   : > { %7206 = vst [vmem:[%s12541_s10 + $0x38] sm:$0xff] %v7174_v1  ;;  %v7172_v20 = vsel %vm7012_vm2, %v12508_v8, %v7814_v38  ;;  %10106 = vpow2.f32 %v7099_v62  ;;  %v7101_v11 = vmul.f32 1.442695, %v7054_v32  ;;  %vm7022_vm9 = vcmp.gt.f32.partialorder %v12571_v45, 0.0 }
 0x65b   : > { %7204 = vst [vmem:[%s12541_s10 + $0x28] sm:$0xff] %v7172_v20  ;;  %v9198_v50 = vpop.f32.mrb[0].mxu1  ;;  %10108 = vpow2.f32 %v7095_v35  ;;  %v7097_v12 = vmul.f32 1.442695, %v7052_v14  ;;  %vm7020_vm11 = vcmp.gt.f32.partialorder %v12582_v18, 0.0 }
 0x65c   : > { %v10099_v61 = vpop.eup %10098  ;;  %v12589_v19 = vadd.f32 %v12563_v23, %v9198_v50  ;;  %v6912_v25 = vpop.f32.mrb[1].mxu1  ;;  %10110 = vpow2.f32 %v7101_v11 }
 0x65d   : > { %v10101_v55 = vpop.eup %10100  ;;  %v7819_v34 = vadd.f32 -1.0, %v10099_v61  ;;  %v12592_v8 = vadd.f32 %v12563_v23, %v6912_v25  ;;  %v9199_v58 = vpop.f32.mrb[2].mxu1  ;;  %10112 = vpow2.f32 %v7097_v12 }
 0x65e   : > { %v10103_v44 = vpop.eup %10102  ;;  %v7817_v5 = vadd.f32 -1.0, %v10101_v55  ;;  %v7057_v22 = vmin.f32 %v12589_v19, 0.0  ;;  %v12597_v10 = vadd.f32 %v12563_v23, %v9199_v58  ;;  %v6915_v17 = vpop.f32.mrb[3].mxu1  ;;  %vm7025_vm0 = vcmp.gt.f32.partialorder %v12589_v19, 0.0 }
 0x65f   : > { %v7177_v51 = vsel %vm7017_vm3, %v12525_v9, %v7819_v34  ;;  %v7820_v6 = vadd.f32 -1.0, %v10103_v44  ;;  %v7055_v60 = vmin.f32 %v12592_v8, 0.0  ;;  %v10105_v46 = vpop.eup %10104  ;;  %v12609_v9 = vadd.f32 %v12563_v23, %v6915_v17 }
 0x660   : > { %7209 = vst [vmem:[%s12541_s10 + $0x50] sm:$0xff] %v7177_v51  ;;  %v7175_v29 = vsel %vm7015_vm4, %v12529_v36, %v7817_v5  ;;  %v7107_v56 = vmul.f32 1.442695, %v7057_v22  ;;  %v7058_v27 = vmin.f32 %v12597_v10, 0.0  ;;  %v7818_v63 = vadd.f32 -1.0, %v10105_v46 }
 0x661   : > { %7207 = vst [vmem:[%s12541_s10 + $0x40] sm:$0xff] %v7175_v29  ;;  %v7178_v33 = vsel %vm7018_vm5, %v12534_v48, %v7820_v6  ;;  %v7103_v54 = vmul.f32 1.442695, %v7055_v60  ;;  %v7056_v42 = vmin.f32 %v12609_v9, 0.0  ;;  %vm7023_vm10 = vcmp.gt.f32.partialorder %v12592_v8, 0.0 }
 0x662   : > { %7210 = vst [vmem:[%s12541_s10 + $0x58] sm:$0xff] %v7178_v33  ;;  %10114 = vpow2.f32 %v7107_v56  ;;  %v7109_v36 = vmul.f32 1.442695, %v7058_v27  ;;  %v7176_v3 = vsel %vm7016_vm6, %v12545_v7, %v7818_v63  ;;  %vm7026_vm12 = vcmp.gt.f32.partialorder %v12597_v10, 0.0 }
 0x663   : > { %v9202_v31 = vpop.f32.mrb[4].mxu1  ;;  %10116 = vpow2.f32 %v7103_v54  ;;  %7208 = vst [vmem:[%s12541_s10 + $0x48] sm:$0xff] %v7176_v3  ;;  %v7105_v13 = vmul.f32 1.442695, %v7056_v42  ;;  %vm7024_vm13 = vcmp.gt.f32.partialorder %v12609_v9, 0.0 }
 0x664   : > { %v10107_v49 = vpop.eup %10106  ;;  %v12616_v48 = vadd.f32 %v12563_v23, %v9202_v31  ;;  %v6928_v16 = vpop.f32.mrb[5].mxu1  ;;  %10118 = vpow2.f32 %v7109_v36 }
 0x665   : > { %v7823_v4 = vadd.f32 -1.0, %v10107_v49  ;;  %v12620_v24 = vadd.f32 %v12563_v23, %v6928_v16  ;;  %v9203_v59 = vpop.f32.mrb[6].mxu1  ;;  %v10109_v52 = vpop.eup %10108  ;;  %10120 = vpow2.f32 %v7105_v13 }
 0x666   : > { %v7061_v28 = vmin.f32 %v12616_v48, 0.0  ;;  %v12625_v7 = vadd.f32 %v12563_v23, %v9203_v59  ;;  %v6931_v39 = vpop.f32.mrb[7].mxu1  ;;  %v10111_v2 = vpop.eup %10110  ;;  %v7821_v30 = vadd.f32 -1.0, %v10109_v52  ;;  %vm7029_vm14 = vcmp.gt.f32.partialorder %v12616_v48, 0.0 }
 0x667   : > { %v7181_v43 = vsel %vm7021_vm7, %v12559_v41, %v7823_v4  ;;  %v7824_v0 = vadd.f32 -1.0, %v10111_v2  ;;  %v7059_v37 = vmin.f32 %v12620_v24, 0.0  ;;  %v10113_v40 = vpop.eup %10112  ;;  %v12635_v53 = vadd.f32 %v12563_v23, %v6931_v39 }
 0x668   : > { %7213 = vst [vmem:[%s12541_s10 + $0x70] sm:$0xff] %v7181_v43  ;;  %v7115_v47 = vmul.f32 1.442695, %v7061_v28  ;;  %v7179_v15 = vsel %vm7019_vm8, %v12567_v26, %v7821_v30  ;;  %v7062_v57 = vmin.f32 %v12625_v7, 0.0  ;;  %v7822_v38 = vadd.f32 -1.0, %v10113_v40 }
 0x669   : > { %7211 = vst [vmem:[%s12541_s10 + $0x60] sm:$0xff] %v7179_v15  ;;  %v7182_v41 = vsel %vm7022_vm9, %v12571_v45, %v7824_v0  ;;  %v7111_v62 = vmul.f32 1.442695, %v7059_v37  ;;  %v7060_v26 = vmin.f32 %v12635_v53, 0.0  ;;  %vm7027_vm15 = vcmp.gt.f32.partialorder %v12620_v24, 0.0 }
 0x66a   : > { %10122 = vpow2.f32 %v7115_v47  ;;  %7214 = vst [vmem:[%s12541_s10 + $0x78] sm:$0xff] %v7182_v41  ;;  %v7117_v21 = vmul.f32 1.442695, %v7062_v57  ;;  %v7180_v20 = vsel %vm7020_vm11, %v12582_v18, %v7822_v38  ;;  %vm7030_vm1 = vcmp.gt.f32.partialorder %v12625_v7, 0.0 }
 0x66b   : > { %v9206_v1 = vpop.f32.mrb[8].mxu1  ;;  %10124 = vpow2.f32 %v7111_v62  ;;  %7212 = vst [vmem:[%s12541_s10 + $0x68] sm:$0xff] %v7180_v20  ;;  %v7113_v14 = vmul.f32 1.442695, %v7060_v26  ;;  %vm7028_vm2 = vcmp.gt.f32.partialorder %v12635_v53, 0.0 }
 0x66c   : > { %v10115_v32 = vpop.eup %10114  ;;  %v12644_v35 = vadd.f32 %v12563_v23, %v9206_v1  ;;  %v6944_v11 = vpop.f32.mrb[9].mxu1  ;;  %10126 = vpow2.f32 %v7117_v21 }
 0x66d   : > { %v7827_v45 = vadd.f32 -1.0, %v10115_v32  ;;  %v12648_v50 = vadd.f32 %v12563_v23, %v6944_v11  ;;  %v9207_v61 = vpop.f32.mrb[10].mxu1  ;;  %v10117_v25 = vpop.eup %10116  ;;  %10128 = vpow2.f32 %v7113_v14 }
 0x66e   : > { %v7065_v55 = vmin.f32 %v12644_v35, 0.0  ;;  %v12653_v18 = vadd.f32 %v12563_v23, %v9207_v61  ;;  %v6947_v34 = vpop.f32.mrb[11].mxu1  ;;  %v10119_v12 = vpop.eup %10118  ;;  %v7825_v44 = vadd.f32 -1.0, %v10117_v25  ;;  %vm7033_vm3 = vcmp.gt.f32.partialorder %v12644_v35, 0.0 }
 0x66f   : > { %v7185_v58 = vsel %vm7025_vm0, %v12589_v19, %v7827_v45  ;;  %v7828_v5 = vadd.f32 -1.0, %v10119_v12  ;;  %v7063_v17 = vmin.f32 %v12648_v50, 0.0  ;;  %v10121_v51 = vpop.eup %10120  ;;  %v12663_v56 = vadd.f32 %v12563_v23, %v6947_v34 }
 0x670   : > { %7217 = vst [vmem:[%s12541_s10 + $0x90] sm:$0xff] %v7185_v58  ;;  %v7123_v22 = vmul.f32 1.442695, %v7065_v55  ;;  %v7183_v6 = vsel %vm7023_vm10, %v12592_v8, %v7825_v44  ;;  %v7066_v29 = vmin.f32 %v12653_v18, 0.0  ;;  %v7826_v60 = vadd.f32 -1.0, %v10121_v51 }
 0x671   : > { %7215 = vst [vmem:[%s12541_s10 + $0x80] sm:$0xff] %v7183_v6  ;;  %v7186_v19 = vsel %vm7026_vm12, %v12597_v10, %v7828_v5  ;;  %v7119_v46 = vmul.f32 1.442695, %v7063_v17  ;;  %v7064_v8 = vmin.f32 %v12663_v56, 0.0  ;;  %vm7031_vm4 = vcmp.gt.f32.partialorder %v12648_v50, 0.0 }
 0x672   : > { %10130 = vpow2.f32 %v7123_v22  ;;  %7218 = vst [vmem:[%s12541_s10 + $0x98] sm:$0xff] %v7186_v19  ;;  %v7125_v33 = vmul.f32 1.442695, %v7066_v29  ;;  %v7184_v54 = vsel %vm7024_vm13, %v12609_v9, %v7826_v60  ;;  %vm7034_vm5 = vcmp.gt.f32.partialorder %v12653_v18, 0.0 }
 0x673   : > { %v9210_v27 = vpop.f32.mrb[12].mxu1  ;;  %10132 = vpow2.f32 %v7119_v46  ;;  %7216 = vst [vmem:[%s12541_s10 + $0x88] sm:$0xff] %v7184_v54  ;;  %v7121_v31 = vmul.f32 1.442695, %v7064_v8  ;;  %vm7032_vm6 = vcmp.gt.f32.partialorder %v12663_v56, 0.0 }
 0x674   : > { %v10123_v63 = vpop.eup %10122  ;;  %v12672_v36 = vadd.f32 %v12563_v23, %v9210_v27  ;;  %v6960_v42 = vpop.f32.mrb[13].mxu1  ;;  %10134 = vpow2.f32 %v7125_v33 }
 0x675   : > { %v7831_v10 = vadd.f32 -1.0, %v10123_v63  ;;  %v12676_v49 = vadd.f32 %v12563_v23, %v6960_v42  ;;  %v9211_v3 = vpop.f32.mrb[14].mxu1  ;;  %v10125_v16 = vpop.eup %10124  ;;  %10136 = vpow2.f32 %v7121_v31 }
 0x676   : > { %v7069_v4 = vmin.f32 %v12672_v36, 0.0  ;;  %v12681_v9 = vadd.f32 %v12563_v23, %v9211_v3  ;;  %v6963_v13 = vpop.f32.mrb[15].mxu1  ;;  %v10127_v59 = vpop.eup %10126  ;;  %v7829_v28 = vadd.f32 -1.0, %v10125_v16  ;;  %vm7037_vm7 = vcmp.gt.f32.partialorder %v12672_v36, 0.0 }
 0x677   : > { %v7189_v52 = vsel %vm7029_vm14, %v12616_v48, %v7831_v10  ;;  %v7832_v39 = vadd.f32 -1.0, %v10127_v59  ;;  %v7067_v43 = vmin.f32 %v12676_v49, 0.0  ;;  %v10129_v30 = vpop.eup %10128  ;;  %v9307_v48 = vadd.f32 %v12563_v23, %v6963_v13 }
 0x678   : > { %7221 = vst [vmem:[%s12541_s10 + $0xb0] sm:$0xff] %v7189_v52  ;;  %v7131_v2 = vmul.f32 1.442695, %v7069_v4  ;;  %v7187_v0 = vsel %vm7027_vm15, %v12620_v24, %v7829_v28  ;;  %v7070_v47 = vmin.f32 %v12681_v9, 0.0  ;;  %v7830_v40 = vadd.f32 -1.0, %v10129_v30 }
 0x679   : > { %7219 = vst [vmem:[%s12541_s10 + $0xa0] sm:$0xff] %v7187_v0  ;;  %v7190_v37 = vsel %vm7030_vm1, %v12625_v7, %v7832_v39  ;;  %v7127_v15 = vmul.f32 1.442695, %v7067_v43  ;;  %v7068_v41 = vmin.f32 %v9307_v48, 0.0  ;;  %vm7035_vm8 = vcmp.gt.f32.partialorder %v12676_v49, 0.0 }
 0x67a   : > { %10138 = vpow2.f32 %v7131_v2  ;;  %7222 = vst [vmem:[%s12541_s10 + $0xb8] sm:$0xff] %v7190_v37  ;;  %v7133_v57 = vmul.f32 1.442695, %v7070_v47  ;;  %v7188_v38 = vsel %vm7028_vm2, %v12635_v53, %v7830_v40  ;;  %vm7038_vm9 = vcmp.gt.f32.partialorder %v12681_v9, 0.0 }
 0x67b   : > { %10140 = vpow2.f32 %v7127_v15  ;;  %7220 = vst [vmem:[%s12541_s10 + $0xa8] sm:$0xff] %v7188_v38  ;;  %v7129_v23 = vmul.f32 1.442695, %v7068_v41  ;;  %vm7036_vm11 = vcmp.gt.f32.partialorder %v9307_v48, 0.0 }
 0x67c   : > { %v10131_v24 = vpop.eup %10130  ;;  %10142 = vpow2.f32 %v7133_v57 }
 0x67d   : > { %v7835_v62 = vadd.f32 -1.0, %v10131_v24  ;;  %v10133_v7 = vpop.eup %10132  ;;  %10144 = vpow2.f32 %v7129_v23 }
 0x67e   : > { %v10135_v21 = vpop.eup %10134  ;;  %v7833_v1 = vadd.f32 -1.0, %v10133_v7 }
 0x67f   : > { %v7193_v26 = vsel %vm7033_vm3, %v12644_v35, %v7835_v62  ;;  %v7836_v53 = vadd.f32 -1.0, %v10135_v21  ;;  %v10137_v32 = vpop.eup %10136 }
 0x680   : > { %7225 = vst [vmem:[%s12541_s10 + $0xd0] sm:$0xff] %v7193_v26  ;;  %v7191_v20 = vsel %vm7031_vm4, %v12648_v50, %v7833_v1  ;;  %v7834_v45 = vadd.f32 -1.0, %v10137_v32 }
 0x681   : > { %7223 = vst [vmem:[%s12541_s10 + $0xc0] sm:$0xff] %v7191_v20  ;;  %v7194_v11 = vsel %vm7034_vm5, %v12653_v18, %v7836_v53 }
 0x682   : > { %7226 = vst [vmem:[%s12541_s10 + $0xd8] sm:$0xff] %v7194_v11  ;;  %v7192_v14 = vsel %vm7032_vm6, %v12663_v56, %v7834_v45 }
 0x683   : > { %7224 = vst [vmem:[%s12541_s10 + $0xc8] sm:$0xff] %v7192_v14 }
 0x684   : > { %v10139_v35 = vpop.eup %10138 }
 0x685   : > { %v7839_v61 = vadd.f32 -1.0, %v10139_v35  ;;  %v10141_v25 = vpop.eup %10140 }
 0x686   : > { %v10143_v50 = vpop.eup %10142  ;;  %v7837_v34 = vadd.f32 -1.0, %v10141_v25 }
 0x687   : > { %v7197_v55 = vsel %vm7037_vm7, %v12672_v36, %v7839_v61  ;;  %v7840_v18 = vadd.f32 -1.0, %v10143_v50  ;;  %v10145_v12 = vpop.eup %10144 }
 0x688   : > { %7229 = vst [vmem:[%s12541_s10 + $0xf0] sm:$0xff] %v7197_v55  ;;  %v7195_v58 = vsel %vm7035_vm8, %v12676_v49, %v7837_v34  ;;  %v7838_v5 = vadd.f32 -1.0, %v10145_v12 }
 0x689   : > { %7227 = vst [vmem:[%s12541_s10 + $0xe0] sm:$0xff] %v7195_v58  ;;  %v7198_v44 = vsel %vm7038_vm9, %v12681_v9, %v7840_v18 }
 0x68a   : > { %7230 = vst [vmem:[%s12541_s10 + $0xf8] sm:$0xff] %v7198_v44  ;;  %v7196_v22 = vsel %vm7036_vm11, %v9307_v48, %v7838_v5 }
 0x68b   : > { %7228 = vst [vmem:[%s12541_s10 + $0xe8] sm:$0xff] %v7196_v22 }
 0x68c PF: > { %s17_s24 = sadd.s32 1, %s10161_s24  }
 0x68d   : > { %p14_p4 = scmp.ge.s32.totalorder %s17_s24, 4  }
 0x68f   :  { %16 = sbr.rel (!%p14_p4) target bundleno = 1 (0x1), region = 95 }

</bundles_post_ra>
